<compile_context>
chip_gen: v6e
topology: v6e:2x2x1
jax: 0.10.0
libtpu: 0.0.40
codegen_flags: <defaults>
</compile_context>

<pallas_src>
import functools

import jax
import jax.numpy as jnp
import numpy as np
from jax import lax
from jax.experimental import pallas as pl
from jax.experimental.pallas import tpu as pltpu


def _round_up(x, m):
    return ((x + m - 1) // m) * m


# ----------------------------------------------------------------------------
# Stage 1: embedding gather + mean over the context dimension.
# ----------------------------------------------------------------------------
def _gather_mean_kernel(ctx_ref, emb_hbm_ref, out_ref, rows_vmem, sem, *,
                        vocab_size):
    """ctx_ref:     SMEM (B, C) int32  (scalar-prefetched context indices)
       emb_hbm_ref: HBM  (V, D) f32    (embedding table, never fully loaded)
       out_ref:     VMEM (B, D) f32    (mean-pooled context embeddings)
       rows_vmem:   VMEM (B*C, D) f32  (gather landing buffer, c-major)
       sem:         DMA semaphore(s)
    """
    B, C = ctx_ref.shape

    # Issue all B*C row-gather DMAs (HBM -> VMEM) up front, then wait on all,
    # so the copies overlap each other instead of serializing.
    copies = []
    for c in range(C):
        for b in range(B):
            # Clamp: VMEM/HBM refs are not bounds-checked per-element; an
            # out-of-range index would otherwise read garbage / fault the DMA.
            idx = jnp.clip(ctx_ref[b, c], 0, vocab_size - 1)
            cp = pltpu.make_async_copy(
                emb_hbm_ref.at[pl.ds(idx, 1), :],          # (1, D) row in HBM
                rows_vmem.at[pl.ds(c * B + b, 1), :],      # (1, D) slot in VMEM
                sem.at[0],
            )
            cp.start()
            copies.append(cp)
    for cp in copies:
        cp.wait()

    # Rows are laid out c-major: slot c*B + b holds context position c of
    # example b, so each context position is a contiguous (B, D) slab.
    acc = rows_vmem[pl.ds(0, B), :]
    for c in range(1, C):
        acc = acc + rows_vmem[pl.ds(c * B, B), :]
    out_ref[...] = acc * (1.0 / C)                         # scale once, whole block


# ----------------------------------------------------------------------------
# Stage 2: Linear(D -> V), vocab axis tiled and streamed from HBM.
# ----------------------------------------------------------------------------
def _logits_kernel(emb_ref, w_ref, b_ref, out_ref, *, compute_dtype):
    """emb_ref: VMEM (B, D)  f32 (resident across all V tiles)
       w_ref:   VMEM (TN, D) f32 (streamed weight tile, PyTorch layout)
       b_ref:   VMEM (1, TN) f32 (streamed bias tile)
       out_ref: VMEM (B, TN) f32 (logits tile)
    """
    e = emb_ref[...].astype(compute_dtype)
    w = w_ref[...].astype(compute_dtype)
    # (B, D) x (TN, D) contracted on D -> (B, TN): the MXU handles the
    # transposed RHS natively, so no weight transpose is ever materialized.
    acc = lax.dot_general(
        e, w,
        dimension_numbers=(((1,), (1,)), ((), ())),
        preferred_element_type=jnp.float32)
    out_ref[...] = acc + b_ref[...]


# ----------------------------------------------------------------------------
# Wrapper
# ----------------------------------------------------------------------------
def word2vec_forward(context, emb_table, linear_w, linear_b, *, tn=512,
                     compute_dtype=jnp.bfloat16):
    """context:  (B, C) int32
       emb_table:(V, D) f32      nn.Embedding weight
       linear_w: (V, D) f32      nn.Linear weight (PyTorch layout, NOT transposed)
       linear_b: (V,)   f32      nn.Linear bias
       returns   (B, V) f32 logits
    """
    B, C = context.shape
    V, D = emb_table.shape

    # ---- Stage 1: gather + mean -> (B, D); table stays in HBM. ----
    embedded = pl.pallas_call(
        functools.partial(_gather_mean_kernel, vocab_size=V),
        out_shape=jax.ShapeDtypeStruct((B, D), jnp.float32),
        grid_spec=pltpu.PrefetchScalarGridSpec(
            num_scalar_prefetch=1,
            grid=(1,),
            in_specs=[pl.BlockSpec(memory_space=pl.ANY)],   # raw HBM ref
            out_specs=pl.BlockSpec((B, D), lambda i, ctx: (0, 0)),
            scratch_shapes=[
                pltpu.VMEM((B * C, D), jnp.float32),
                pltpu.SemaphoreType.DMA((1,)),
            ],
        ),
        compiler_params=pltpu.CompilerParams(
            dimension_semantics=("arbitrary",)),
    )(context.astype(jnp.int32), emb_table)

    # ---- Stage 2: tiled, streamed Linear over the vocab axis. ----
    tn = min(tn, _round_up(V, 128))          # lane-dense tile, multiple of 128
    v_pad = _round_up(V, tn)
    w = linear_w
    bias = linear_b.reshape(1, V)
    if v_pad != V:                           # pad last tile so grid is exact
        w = jnp.pad(w, ((0, v_pad - V), (0, 0)))
        bias = jnp.pad(bias, ((0, 0), (0, v_pad - V)))

    logits = pl.pallas_call(
        functools.partial(_logits_kernel, compute_dtype=compute_dtype),
        out_shape=jax.ShapeDtypeStruct((B, v_pad), jnp.float32),
        grid=(v_pad // tn,),
        in_specs=[
            pl.BlockSpec((B, D), lambda j: (0, 0)),    # same block every step -> resident
            pl.BlockSpec((tn, D), lambda j: (j, 0)),   # streamed weight tiles
            pl.BlockSpec((1, tn), lambda j: (0, j)),   # streamed bias tiles
        ],
        out_specs=pl.BlockSpec((B, tn), lambda j: (0, j)),
        compiler_params=pltpu.CompilerParams(
            # Independent V tiles: shard across the 2 TensorCores on v7x.
            dimension_semantics=("parallel",),
            # Tiny tiles here; raise this (and tn) for large real vocabularies.
            vmem_limit_bytes=32 * 1024 * 1024,
        ),
    )(embedded, w, bias)

    return logits[:, :V] if v_pad != V else logits


if __name__ == "__main__":
    # Small shapes consistent with the module (vocab tiled into 4 grid steps).
    VOCAB_SIZE = 2048
    EMBED_DIM = 128
    BATCH = 16
    CONTEXT_LEN = 4

    key = jax.random.PRNGKey(0)
    k_emb, k_w, k_b, k_ctx = jax.random.split(key, 4)

    emb_table = jax.random.normal(k_emb, (VOCAB_SIZE, EMBED_DIM), jnp.float32)
    bound = 1.0 / np.sqrt(EMBED_DIM)
    linear_w = jax.random.uniform(k_w, (VOCAB_SIZE, EMBED_DIM), jnp.float32,
                                  -bound, bound)
    linear_b = jax.random.uniform(k_b, (VOCAB_SIZE,), jnp.float32,
                                  -bound, bound)
    context = jax.random.randint(k_ctx, (BATCH, CONTEXT_LEN), 0, VOCAB_SIZE,
                                 jnp.int32)

    out = word2vec_forward(context, emb_table, linear_w, linear_b, tn=512)
    out = jax.block_until_ready(out)
    assert out.shape == (BATCH, VOCAB_SIZE)

    # Reference 1: same recipe (bf16 at the dot, f32 accumulation) -> tight check.
    embedded_ref = jnp.take(emb_table, context, axis=0).mean(axis=1)
    ref_bf16 = lax.dot_general(
        embedded_ref.astype(jnp.bfloat16), linear_w.astype(jnp.bfloat16),
        dimension_numbers=(((1,), (1,)), ((), ())),
        preferred_element_type=jnp.float32) + linear_b
    np.testing.assert_allclose(np.asarray(out), np.asarray(ref_bf16),
                               atol=2e-2, rtol=2e-2)

    # Reference 2: full-f32 module semantics -> loose check (bf16 MXU path).
    ref_f32 = embedded_ref @ linear_w.T + linear_b
    np.testing.assert_allclose(np.asarray(out), np.asarray(ref_f32),
                               atol=5e-2, rtol=5e-2)

    print("KERNEL_OK")
</pallas_src>

<mosaic_0001>
module attributes {stable_mosaic.version = 11 : i64} {
  func.func @_gather_mean_kernel(%arg0: i32, %arg1: memref<16x4xi32, #tpu.memory_space<smem>>, %arg2: memref<2048x128xf32, #tpu.memory_space<any>>, %arg3: memref<16x128xf32, #tpu.memory_space<vmem>>, %arg4: memref<64x128xf32, #tpu.memory_space<vmem>>, %arg5: memref<1x!tpu.dma_semaphore, #tpu.memory_space<semaphore_mem>>) attributes {dimension_semantics = [#tpu.dimension_semantics<arbitrary>], iteration_bounds = array<i64: 1>, scalar_prefetch = 1 : i64, scratch_operands = 2 : i64, tpu.core_type = #tpu.core_type<tc>, window_params = [{}, {pipeline_mode = #tpu.pipeline_mode<synchronous>, transform_indices = @transform_1, window_bounds = array<i64: 16, 128>}]} {
    %c0 = arith.constant 0 : index
    %c0_0 = arith.constant 0 : index
    %0 = memref.load %arg1[%c0, %c0_0] : memref<16x4xi32, #tpu.memory_space<smem>>
    %c0_i32 = arith.constant 0 : i32
    %c2047_i32 = arith.constant 2047 : i32
    %1 = arith.maxsi %c0_i32, %0 : i32
    %2 = arith.minsi %c2047_i32, %1 : i32
    %c0_i32_1 = arith.constant 0 : i32
    %c0_i32_2 = arith.constant 0 : i32
    %3 = tpu.memref_slice %arg2[%2, %c0_i32_2] : memref<2048x128xf32, #tpu.memory_space<any>> -> memref<1x128xf32, #tpu.memory_space<any>>
    %c0_i32_3 = arith.constant 0 : i32
    %c0_i32_4 = arith.constant 0 : i32
    %4 = tpu.memref_slice %arg4[%c0_i32_3, %c0_i32_4] : memref<64x128xf32, #tpu.memory_space<vmem>> -> memref<1x128xf32, #tpu.memory_space<vmem>>
    %5 = tpu.memref_slice %arg5[%c0_i32_1] : memref<1x!tpu.dma_semaphore, #tpu.memory_space<semaphore_mem>> -> memref<1x!tpu.dma_semaphore, #tpu.memory_space<semaphore_mem>>
    %6 = tpu.memref_squeeze %5 : memref<1x!tpu.dma_semaphore, #tpu.memory_space<semaphore_mem>> -> memref<!tpu.dma_semaphore, #tpu.memory_space<semaphore_mem>>
    tpu.enqueue_dma source(%3 : memref<1x128xf32, #tpu.memory_space<any>>) target(%4 : memref<1x128xf32, #tpu.memory_space<vmem>>) target_semaphore(%6 : memref<!tpu.dma_semaphore, #tpu.memory_space<semaphore_mem>>)
    %c1 = arith.constant 1 : index
    %c0_5 = arith.constant 0 : index
    %7 = memref.load %arg1[%c1, %c0_5] : memref<16x4xi32, #tpu.memory_space<smem>>
    %c0_i32_6 = arith.constant 0 : i32
    %c2047_i32_7 = arith.constant 2047 : i32
    %8 = arith.maxsi %c0_i32_6, %7 : i32
    %9 = arith.minsi %c2047_i32_7, %8 : i32
    %c0_i32_8 = arith.constant 0 : i32
    %c0_i32_9 = arith.constant 0 : i32
    %10 = tpu.memref_slice %arg2[%9, %c0_i32_9] : memref<2048x128xf32, #tpu.memory_space<any>> -> memref<1x128xf32, #tpu.memory_space<any>>
    %c1_i32 = arith.constant 1 : i32
    %c0_i32_10 = arith.constant 0 : i32
    %11 = tpu.memref_slice %arg4[%c1_i32, %c0_i32_10] : memref<64x128xf32, #tpu.memory_space<vmem>> -> memref<1x128xf32, #tpu.memory_space<vmem>>
    %12 = tpu.memref_slice %arg5[%c0_i32_8] : memref<1x!tpu.dma_semaphore, #tpu.memory_space<semaphore_mem>> -> memref<1x!tpu.dma_semaphore, #tpu.memory_space<semaphore_mem>>
    %13 = tpu.memref_squeeze %12 : memref<1x!tpu.dma_semaphore, #tpu.memory_space<semaphore_mem>> -> memref<!tpu.dma_semaphore, #tpu.memory_space<semaphore_mem>>
    tpu.enqueue_dma source(%10 : memref<1x128xf32, #tpu.memory_space<any>>) target(%11 : memref<1x128xf32, #tpu.memory_space<vmem>>) target_semaphore(%13 : memref<!tpu.dma_semaphore, #tpu.memory_space<semaphore_mem>>)
    %c2 = arith.constant 2 : index
    %c0_11 = arith.constant 0 : index
    %14 = memref.load %arg1[%c2, %c0_11] : memref<16x4xi32, #tpu.memory_space<smem>>
    %c0_i32_12 = arith.constant 0 : i32
    %c2047_i32_13 = arith.constant 2047 : i32
    %15 = arith.maxsi %c0_i32_12, %14 : i32
    %16 = arith.minsi %c2047_i32_13, %15 : i32
    %c0_i32_14 = arith.constant 0 : i32
    %c0_i32_15 = arith.constant 0 : i32
    %17 = tpu.memref_slice %arg2[%16, %c0_i32_15] : memref<2048x128xf32, #tpu.memory_space<any>> -> memref<1x128xf32, #tpu.memory_space<any>>
    %c2_i32 = arith.constant 2 : i32
    %c0_i32_16 = arith.constant 0 : i32
    %18 = tpu.memref_slice %arg4[%c2_i32, %c0_i32_16] : memref<64x128xf32, #tpu.memory_space<vmem>> -> memref<1x128xf32, #tpu.memory_space<vmem>>
    %19 = tpu.memref_slice %arg5[%c0_i32_14] : memref<1x!tpu.dma_semaphore, #tpu.memory_space<semaphore_mem>> -> memref<1x!tpu.dma_semaphore, #tpu.memory_space<semaphore_mem>>
    %20 = tpu.memref_squeeze %19 : memref<1x!tpu.dma_semaphore, #tpu.memory_space<semaphore_mem>> -> memref<!tpu.dma_semaphore, #tpu.memory_space<semaphore_mem>>
    tpu.enqueue_dma source(%17 : memref<1x128xf32, #tpu.memory_space<any>>) target(%18 : memref<1x128xf32, #tpu.memory_space<vmem>>) target_semaphore(%20 : memref<!tpu.dma_semaphore, #tpu.memory_space<semaphore_mem>>)
    %c3 = arith.constant 3 : index
    %c0_17 = arith.constant 0 : index
    %21 = memref.load %arg1[%c3, %c0_17] : memref<16x4xi32, #tpu.memory_space<smem>>
    %c0_i32_18 = arith.constant 0 : i32
    %c2047_i32_19 = arith.constant 2047 : i32
    %22 = arith.maxsi %c0_i32_18, %21 : i32
    %23 = arith.minsi %c2047_i32_19, %22 : i32
    %c0_i32_20 = arith.constant 0 : i32
    %c0_i32_21 = arith.constant 0 : i32
    %24 = tpu.memref_slice %arg2[%23, %c0_i32_21] : memref<2048x128xf32, #tpu.memory_space<any>> -> memref<1x128xf32, #tpu.memory_space<any>>
    %c3_i32 = arith.constant 3 : i32
    %c0_i32_22 = arith.constant 0 : i32
    %25 = tpu.memref_slice %arg4[%c3_i32, %c0_i32_22] : memref<64x128xf32, #tpu.memory_space<vmem>> -> memref<1x128xf32, #tpu.memory_space<vmem>>
    %26 = tpu.memref_slice %arg5[%c0_i32_20] : memref<1x!tpu.dma_semaphore, #tpu.memory_space<semaphore_mem>> -> memref<1x!tpu.dma_semaphore, #tpu.memory_space<semaphore_mem>>
    %27 = tpu.memref_squeeze %26 : memref<1x!tpu.dma_semaphore, #tpu.memory_space<semaphore_mem>> -> memref<!tpu.dma_semaphore, #tpu.memory_space<semaphore_mem>>
    tpu.enqueue_dma source(%24 : memref<1x128xf32, #tpu.memory_space<any>>) target(%25 : memref<1x128xf32, #tpu.memory_space<vmem>>) target_semaphore(%27 : memref<!tpu.dma_semaphore, #tpu.memory_space<semaphore_mem>>)
    %c4 = arith.constant 4 : index
    %c0_23 = arith.constant 0 : index
    %28 = memref.load %arg1[%c4, %c0_23] : memref<16x4xi32, #tpu.memory_space<smem>>
    %c0_i32_24 = arith.constant 0 : i32
    %c2047_i32_25 = arith.constant 2047 : i32
    %29 = arith.maxsi %c0_i32_24, %28 : i32
    %30 = arith.minsi %c2047_i32_25, %29 : i32
    %c0_i32_26 = arith.constant 0 : i32
    %c0_i32_27 = arith.constant 0 : i32
    %31 = tpu.memref_slice %arg2[%30, %c0_i32_27] : memref<2048x128xf32, #tpu.memory_space<any>> -> memref<1x128xf32, #tpu.memory_space<any>>
    %c4_i32 = arith.constant 4 : i32
    %c0_i32_28 = arith.constant 0 : i32
    %32 = tpu.memref_slice %arg4[%c4_i32, %c0_i32_28] : memref<64x128xf32, #tpu.memory_space<vmem>> -> memref<1x128xf32, #tpu.memory_space<vmem>>
    %33 = tpu.memref_slice %arg5[%c0_i32_26] : memref<1x!tpu.dma_semaphore, #tpu.memory_space<semaphore_mem>> -> memref<1x!tpu.dma_semaphore, #tpu.memory_space<semaphore_mem>>
    %34 = tpu.memref_squeeze %33 : memref<1x!tpu.dma_semaphore, #tpu.memory_space<semaphore_mem>> -> memref<!tpu.dma_semaphore, #tpu.memory_space<semaphore_mem>>
    tpu.enqueue_dma source(%31 : memref<1x128xf32, #tpu.memory_space<any>>) target(%32 : memref<1x128xf32, #tpu.memory_space<vmem>>) target_semaphore(%34 : memref<!tpu.dma_semaphore, #tpu.memory_space<semaphore_mem>>)
    %c5 = arith.constant 5 : index
    %c0_29 = arith.constant 0 : index
    %35 = memref.load %arg1[%c5, %c0_29] : memref<16x4xi32, #tpu.memory_space<smem>>
    %c0_i32_30 = arith.constant 0 : i32
    %c2047_i32_31 = arith.constant 2047 : i32
    %36 = arith.maxsi %c0_i32_30, %35 : i32
    %37 = arith.minsi %c2047_i32_31, %36 : i32
    %c0_i32_32 = arith.constant 0 : i32
    %c0_i32_33 = arith.constant 0 : i32
    %38 = tpu.memref_slice %arg2[%37, %c0_i32_33] : memref<2048x128xf32, #tpu.memory_space<any>> -> memref<1x128xf32, #tpu.memory_space<any>>
    %c5_i32 = arith.constant 5 : i32
    %c0_i32_34 = arith.constant 0 : i32
    %39 = tpu.memref_slice %arg4[%c5_i32, %c0_i32_34] : memref<64x128xf32, #tpu.memory_space<vmem>> -> memref<1x128xf32, #tpu.memory_space<vmem>>
    %40 = tpu.memref_slice %arg5[%c0_i32_32] : memref<1x!tpu.dma_semaphore, #tpu.memory_space<semaphore_mem>> -> memref<1x!tpu.dma_semaphore, #tpu.memory_space<semaphore_mem>>
    %41 = tpu.memref_squeeze %40 : memref<1x!tpu.dma_semaphore, #tpu.memory_space<semaphore_mem>> -> memref<!tpu.dma_semaphore, #tpu.memory_space<semaphore_mem>>
    tpu.enqueue_dma source(%38 : memref<1x128xf32, #tpu.memory_space<any>>) target(%39 : memref<1x128xf32, #tpu.memory_space<vmem>>) target_semaphore(%41 : memref<!tpu.dma_semaphore, #tpu.memory_space<semaphore_mem>>)
    %c6 = arith.constant 6 : index
    %c0_35 = arith.constant 0 : index
    %42 = memref.load %arg1[%c6, %c0_35] : memref<16x4xi32, #tpu.memory_space<smem>>
    %c0_i32_36 = arith.constant 0 : i32
    %c2047_i32_37 = arith.constant 2047 : i32
    %43 = arith.maxsi %c0_i32_36, %42 : i32
    %44 = arith.minsi %c2047_i32_37, %43 : i32
    %c0_i32_38 = arith.constant 0 : i32
    %c0_i32_39 = arith.constant 0 : i32
    %45 = tpu.memref_slice %arg2[%44, %c0_i32_39] : memref<2048x128xf32, #tpu.memory_space<any>> -> memref<1x128xf32, #tpu.memory_space<any>>
    %c6_i32 = arith.constant 6 : i32
    %c0_i32_40 = arith.constant 0 : i32
    %46 = tpu.memref_slice %arg4[%c6_i32, %c0_i32_40] : memref<64x128xf32, #tpu.memory_space<vmem>> -> memref<1x128xf32, #tpu.memory_space<vmem>>
    %47 = tpu.memref_slice %arg5[%c0_i32_38] : memref<1x!tpu.dma_semaphore, #tpu.memory_space<semaphore_mem>> -> memref<1x!tpu.dma_semaphore, #tpu.memory_space<semaphore_mem>>
    %48 = tpu.memref_squeeze %47 : memref<1x!tpu.dma_semaphore, #tpu.memory_space<semaphore_mem>> -> memref<!tpu.dma_semaphore, #tpu.memory_space<semaphore_mem>>
    tpu.enqueue_dma source(%45 : memref<1x128xf32, #tpu.memory_space<any>>) target(%46 : memref<1x128xf32, #tpu.memory_space<vmem>>) target_semaphore(%48 : memref<!tpu.dma_semaphore, #tpu.memory_space<semaphore_mem>>)
    %c7 = arith.constant 7 : index
    %c0_41 = arith.constant 0 : index
    %49 = memref.load %arg1[%c7, %c0_41] : memref<16x4xi32, #tpu.memory_space<smem>>
    %c0_i32_42 = arith.constant 0 : i32
    %c2047_i32_43 = arith.constant 2047 : i32
    %50 = arith.maxsi %c0_i32_42, %49 : i32
    %51 = arith.minsi %c2047_i32_43, %50 : i32
    %c0_i32_44 = arith.constant 0 : i32
    %c0_i32_45 = arith.constant 0 : i32
    %52 = tpu.memref_slice %arg2[%51, %c0_i32_45] : memref<2048x128xf32, #tpu.memory_space<any>> -> memref<1x128xf32, #tpu.memory_space<any>>
    %c7_i32 = arith.constant 7 : i32
    %c0_i32_46 = arith.constant 0 : i32
    %53 = tpu.memref_slice %arg4[%c7_i32, %c0_i32_46] : memref<64x128xf32, #tpu.memory_space<vmem>> -> memref<1x128xf32, #tpu.memory_space<vmem>>
    %54 = tpu.memref_slice %arg5[%c0_i32_44] : memref<1x!tpu.dma_semaphore, #tpu.memory_space<semaphore_mem>> -> memref<1x!tpu.dma_semaphore, #tpu.memory_space<semaphore_mem>>
    %55 = tpu.memref_squeeze %54 : memref<1x!tpu.dma_semaphore, #tpu.memory_space<semaphore_mem>> -> memref<!tpu.dma_semaphore, #tpu.memory_space<semaphore_mem>>
    tpu.enqueue_dma source(%52 : memref<1x128xf32, #tpu.memory_space<any>>) target(%53 : memref<1x128xf32, #tpu.memory_space<vmem>>) target_semaphore(%55 : memref<!tpu.dma_semaphore, #tpu.memory_space<semaphore_mem>>)
    %c8 = arith.constant 8 : index
    %c0_47 = arith.constant 0 : index
    %56 = memref.load %arg1[%c8, %c0_47] : memref<16x4xi32, #tpu.memory_space<smem>>
    %c0_i32_48 = arith.constant 0 : i32
    %c2047_i32_49 = arith.constant 2047 : i32
    %57 = arith.maxsi %c0_i32_48, %56 : i32
    %58 = arith.minsi %c2047_i32_49, %57 : i32
    %c0_i32_50 = arith.constant 0 : i32
    %c0_i32_51 = arith.constant 0 : i32
    %59 = tpu.memref_slice %arg2[%58, %c0_i32_51] : memref<2048x128xf32, #tpu.memory_space<any>> -> memref<1x128xf32, #tpu.memory_space<any>>
    %c8_i32 = arith.constant 8 : i32
    %c0_i32_52 = arith.constant 0 : i32
    %60 = tpu.memref_slice %arg4[%c8_i32, %c0_i32_52] : memref<64x128xf32, #tpu.memory_space<vmem>> -> memref<1x128xf32, #tpu.memory_space<vmem>>
    %61 = tpu.memref_slice %arg5[%c0_i32_50] : memref<1x!tpu.dma_semaphore, #tpu.memory_space<semaphore_mem>> -> memref<1x!tpu.dma_semaphore, #tpu.memory_space<semaphore_mem>>
    %62 = tpu.memref_squeeze %61 : memref<1x!tpu.dma_semaphore, #tpu.memory_space<semaphore_mem>> -> memref<!tpu.dma_semaphore, #tpu.memory_space<semaphore_mem>>
    tpu.enqueue_dma source(%59 : memref<1x128xf32, #tpu.memory_space<any>>) target(%60 : memref<1x128xf32, #tpu.memory_space<vmem>>) target_semaphore(%62 : memref<!tpu.dma_semaphore, #tpu.memory_space<semaphore_mem>>)
    %c9 = arith.constant 9 : index
    %c0_53 = arith.constant 0 : index
    %63 = memref.load %arg1[%c9, %c0_53] : memref<16x4xi32, #tpu.memory_space<smem>>
    %c0_i32_54 = arith.constant 0 : i32
    %c2047_i32_55 = arith.constant 2047 : i32
    %64 = arith.maxsi %c0_i32_54, %63 : i32
    %65 = arith.minsi %c2047_i32_55, %64 : i32
    %c0_i32_56 = arith.constant 0 : i32
    %c0_i32_57 = arith.constant 0 : i32
    %66 = tpu.memref_slice %arg2[%65, %c0_i32_57] : memref<2048x128xf32, #tpu.memory_space<any>> -> memref<1x128xf32, #tpu.memory_space<any>>
    %c9_i32 = arith.constant 9 : i32
    %c0_i32_58 = arith.constant 0 : i32
    %67 = tpu.memref_slice %arg4[%c9_i32, %c0_i32_58] : memref<64x128xf32, #tpu.memory_space<vmem>> -> memref<1x128xf32, #tpu.memory_space<vmem>>
    %68 = tpu.memref_slice %arg5[%c0_i32_56] : memref<1x!tpu.dma_semaphore, #tpu.memory_space<semaphore_mem>> -> memref<1x!tpu.dma_semaphore, #tpu.memory_space<semaphore_mem>>
    %69 = tpu.memref_squeeze %68 : memref<1x!tpu.dma_semaphore, #tpu.memory_space<semaphore_mem>> -> memref<!tpu.dma_semaphore, #tpu.memory_space<semaphore_mem>>
    tpu.enqueue_dma source(%66 : memref<1x128xf32, #tpu.memory_space<any>>) target(%67 : memref<1x128xf32, #tpu.memory_space<vmem>>) target_semaphore(%69 : memref<!tpu.dma_semaphore, #tpu.memory_space<semaphore_mem>>)
    %c10 = arith.constant 10 : index
    %c0_59 = arith.constant 0 : index
    %70 = memref.load %arg1[%c10, %c0_59] : memref<16x4xi32, #tpu.memory_space<smem>>
    %c0_i32_60 = arith.constant 0 : i32
    %c2047_i32_61 = arith.constant 2047 : i32
    %71 = arith.maxsi %c0_i32_60, %70 : i32
    %72 = arith.minsi %c2047_i32_61, %71 : i32
    %c0_i32_62 = arith.constant 0 : i32
    %c0_i32_63 = arith.constant 0 : i32
    %73 = tpu.memref_slice %arg2[%72, %c0_i32_63] : memref<2048x128xf32, #tpu.memory_space<any>> -> memref<1x128xf32, #tpu.memory_space<any>>
    %c10_i32 = arith.constant 10 : i32
    %c0_i32_64 = arith.constant 0 : i32
    %74 = tpu.memref_slice %arg4[%c10_i32, %c0_i32_64] : memref<64x128xf32, #tpu.memory_space<vmem>> -> memref<1x128xf32, #tpu.memory_space<vmem>>
    %75 = tpu.memref_slice %arg5[%c0_i32_62] : memref<1x!tpu.dma_semaphore, #tpu.memory_space<semaphore_mem>> -> memref<1x!tpu.dma_semaphore, #tpu.memory_space<semaphore_mem>>
    %76 = tpu.memref_squeeze %75 : memref<1x!tpu.dma_semaphore, #tpu.memory_space<semaphore_mem>> -> memref<!tpu.dma_semaphore, #tpu.memory_space<semaphore_mem>>
    tpu.enqueue_dma source(%73 : memref<1x128xf32, #tpu.memory_space<any>>) target(%74 : memref<1x128xf32, #tpu.memory_space<vmem>>) target_semaphore(%76 : memref<!tpu.dma_semaphore, #tpu.memory_space<semaphore_mem>>)
    %c11 = arith.constant 11 : index
    %c0_65 = arith.constant 0 : index
    %77 = memref.load %arg1[%c11, %c0_65] : memref<16x4xi32, #tpu.memory_space<smem>>
    %c0_i32_66 = arith.constant 0 : i32
    %c2047_i32_67 = arith.constant 2047 : i32
    %78 = arith.maxsi %c0_i32_66, %77 : i32
    %79 = arith.minsi %c2047_i32_67, %78 : i32
    %c0_i32_68 = arith.constant 0 : i32
    %c0_i32_69 = arith.constant 0 : i32
    %80 = tpu.memref_slice %arg2[%79, %c0_i32_69] : memref<2048x128xf32, #tpu.memory_space<any>> -> memref<1x128xf32, #tpu.memory_space<any>>
    %c11_i32 = arith.constant 11 : i32
    %c0_i32_70 = arith.constant 0 : i32
    %81 = tpu.memref_slice %arg4[%c11_i32, %c0_i32_70] : memref<64x128xf32, #tpu.memory_space<vmem>> -> memref<1x128xf32, #tpu.memory_space<vmem>>
    %82 = tpu.memref_slice %arg5[%c0_i32_68] : memref<1x!tpu.dma_semaphore, #tpu.memory_space<semaphore_mem>> -> memref<1x!tpu.dma_semaphore, #tpu.memory_space<semaphore_mem>>
    %83 = tpu.memref_squeeze %82 : memref<1x!tpu.dma_semaphore, #tpu.memory_space<semaphore_mem>> -> memref<!tpu.dma_semaphore, #tpu.memory_space<semaphore_mem>>
    tpu.enqueue_dma source(%80 : memref<1x128xf32, #tpu.memory_space<any>>) target(%81 : memref<1x128xf32, #tpu.memory_space<vmem>>) target_semaphore(%83 : memref<!tpu.dma_semaphore, #tpu.memory_space<semaphore_mem>>)
    %c12 = arith.constant 12 : index
    %c0_71 = arith.constant 0 : index
    %84 = memref.load %arg1[%c12, %c0_71] : memref<16x4xi32, #tpu.memory_space<smem>>
    %c0_i32_72 = arith.constant 0 : i32
    %c2047_i32_73 = arith.constant 2047 : i32
    %85 = arith.maxsi %c0_i32_72, %84 : i32
    %86 = arith.minsi %c2047_i32_73, %85 : i32
    %c0_i32_74 = arith.constant 0 : i32
    %c0_i32_75 = arith.constant 0 : i32
    %87 = tpu.memref_slice %arg2[%86, %c0_i32_75] : memref<2048x128xf32, #tpu.memory_space<any>> -> memref<1x128xf32, #tpu.memory_space<any>>
    %c12_i32 = arith.constant 12 : i32
    %c0_i32_76 = arith.constant 0 : i32
    %88 = tpu.memref_slice %arg4[%c12_i32, %c0_i32_76] : memref<64x128xf32, #tpu.memory_space<vmem>> -> memref<1x128xf32, #tpu.memory_space<vmem>>
    %89 = tpu.memref_slice %arg5[%c0_i32_74] : memref<1x!tpu.dma_semaphore, #tpu.memory_space<semaphore_mem>> -> memref<1x!tpu.dma_semaphore, #tpu.memory_space<semaphore_mem>>
    %90 = tpu.memref_squeeze %89 : memref<1x!tpu.dma_semaphore, #tpu.memory_space<semaphore_mem>> -> memref<!tpu.dma_semaphore, #tpu.memory_space<semaphore_mem>>
    tpu.enqueue_dma source(%87 : memref<1x128xf32, #tpu.memory_space<any>>) target(%88 : memref<1x128xf32, #tpu.memory_space<vmem>>) target_semaphore(%90 : memref<!tpu.dma_semaphore, #tpu.memory_space<semaphore_mem>>)
    %c13 = arith.constant 13 : index
    %c0_77 = arith.constant 0 : index
    %91 = memref.load %arg1[%c13, %c0_77] : memref<16x4xi32, #tpu.memory_space<smem>>
    %c0_i32_78 = arith.constant 0 : i32
    %c2047_i32_79 = arith.constant 2047 : i32
    %92 = arith.maxsi %c0_i32_78, %91 : i32
    %93 = arith.minsi %c2047_i32_79, %92 : i32
    %c0_i32_80 = arith.constant 0 : i32
    %c0_i32_81 = arith.constant 0 : i32
    %94 = tpu.memref_slice %arg2[%93, %c0_i32_81] : memref<2048x128xf32, #tpu.memory_space<any>> -> memref<1x128xf32, #tpu.memory_space<any>>
    %c13_i32 = arith.constant 13 : i32
    %c0_i32_82 = arith.constant 0 : i32
    %95 = tpu.memref_slice %arg4[%c13_i32, %c0_i32_82] : memref<64x128xf32, #tpu.memory_space<vmem>> -> memref<1x128xf32, #tpu.memory_space<vmem>>
    %96 = tpu.memref_slice %arg5[%c0_i32_80] : memref<1x!tpu.dma_semaphore, #tpu.memory_space<semaphore_mem>> -> memref<1x!tpu.dma_semaphore, #tpu.memory_space<semaphore_mem>>
    %97 = tpu.memref_squeeze %96 : memref<1x!tpu.dma_semaphore, #tpu.memory_space<semaphore_mem>> -> memref<!tpu.dma_semaphore, #tpu.memory_space<semaphore_mem>>
    tpu.enqueue_dma source(%94 : memref<1x128xf32, #tpu.memory_space<any>>) target(%95 : memref<1x128xf32, #tpu.memory_space<vmem>>) target_semaphore(%97 : memref<!tpu.dma_semaphore, #tpu.memory_space<semaphore_mem>>)
    %c14 = arith.constant 14 : index
    %c0_83 = arith.constant 0 : index
    %98 = memref.load %arg1[%c14, %c0_83] : memref<16x4xi32, #tpu.memory_space<smem>>
    %c0_i32_84 = arith.constant 0 : i32
    %c2047_i32_85 = arith.constant 2047 : i32
    %99 = arith.maxsi %c0_i32_84, %98 : i32
    %100 = arith.minsi %c2047_i32_85, %99 : i32
    %c0_i32_86 = arith.constant 0 : i32
    %c0_i32_87 = arith.constant 0 : i32
    %101 = tpu.memref_slice %arg2[%100, %c0_i32_87] : memref<2048x128xf32, #tpu.memory_space<any>> -> memref<1x128xf32, #tpu.memory_space<any>>
    %c14_i32 = arith.constant 14 : i32
    %c0_i32_88 = arith.constant 0 : i32
    %102 = tpu.memref_slice %arg4[%c14_i32, %c0_i32_88] : memref<64x128xf32, #tpu.memory_space<vmem>> -> memref<1x128xf32, #tpu.memory_space<vmem>>
    %103 = tpu.memref_slice %arg5[%c0_i32_86] : memref<1x!tpu.dma_semaphore, #tpu.memory_space<semaphore_mem>> -> memref<1x!tpu.dma_semaphore, #tpu.memory_space<semaphore_mem>>
    %104 = tpu.memref_squeeze %103 : memref<1x!tpu.dma_semaphore, #tpu.memory_space<semaphore_mem>> -> memref<!tpu.dma_semaphore, #tpu.memory_space<semaphore_mem>>
    tpu.enqueue_dma source(%101 : memref<1x128xf32, #tpu.memory_space<any>>) target(%102 : memref<1x128xf32, #tpu.memory_space<vmem>>) target_semaphore(%104 : memref<!tpu.dma_semaphore, #tpu.memory_space<semaphore_mem>>)
    %c15 = arith.constant 15 : index
    %c0_89 = arith.constant 0 : index
    %105 = memref.load %arg1[%c15, %c0_89] : memref<16x4xi32, #tpu.memory_space<smem>>
    %c0_i32_90 = arith.constant 0 : i32
    %c2047_i32_91 = arith.constant 2047 : i32
    %106 = arith.maxsi %c0_i32_90, %105 : i32
    %107 = arith.minsi %c2047_i32_91, %106 : i32
    %c0_i32_92 = arith.constant 0 : i32
    %c0_i32_93 = arith.constant 0 : i32
    %108 = tpu.memref_slice %arg2[%107, %c0_i32_93] : memref<2048x128xf32, #tpu.memory_space<any>> -> memref<1x128xf32, #tpu.memory_space<any>>
    %c15_i32 = arith.constant 15 : i32
    %c0_i32_94 = arith.constant 0 : i32
    %109 = tpu.memref_slice %arg4[%c15_i32, %c0_i32_94] : memref<64x128xf32, #tpu.memory_space<vmem>> -> memref<1x128xf32, #tpu.memory_space<vmem>>
    %110 = tpu.memref_slice %arg5[%c0_i32_92] : memref<1x!tpu.dma_semaphore, #tpu.memory_space<semaphore_mem>> -> memref<1x!tpu.dma_semaphore, #tpu.memory_space<semaphore_mem>>
    %111 = tpu.memref_squeeze %110 : memref<1x!tpu.dma_semaphore, #tpu.memory_space<semaphore_mem>> -> memref<!tpu.dma_semaphore, #tpu.memory_space<semaphore_mem>>
    tpu.enqueue_dma source(%108 : memref<1x128xf32, #tpu.memory_space<any>>) target(%109 : memref<1x128xf32, #tpu.memory_space<vmem>>) target_semaphore(%111 : memref<!tpu.dma_semaphore, #tpu.memory_space<semaphore_mem>>)
    %c0_95 = arith.constant 0 : index
    %c1_96 = arith.constant 1 : index
    %112 = memref.load %arg1[%c0_95, %c1_96] : memref<16x4xi32, #tpu.memory_space<smem>>
    %c0_i32_97 = arith.constant 0 : i32
    %c2047_i32_98 = arith.constant 2047 : i32
    %113 = arith.maxsi %c0_i32_97, %112 : i32
    %114 = arith.minsi %c2047_i32_98, %113 : i32
    %c0_i32_99 = arith.constant 0 : i32
    %c0_i32_100 = arith.constant 0 : i32
    %115 = tpu.memref_slice %arg2[%114, %c0_i32_100] : memref<2048x128xf32, #tpu.memory_space<any>> -> memref<1x128xf32, #tpu.memory_space<any>>
    %c16_i32 = arith.constant 16 : i32
    %c0_i32_101 = arith.constant 0 : i32
    %116 = tpu.memref_slice %arg4[%c16_i32, %c0_i32_101] : memref<64x128xf32, #tpu.memory_space<vmem>> -> memref<1x128xf32, #tpu.memory_space<vmem>>
    %117 = tpu.memref_slice %arg5[%c0_i32_99] : memref<1x!tpu.dma_semaphore, #tpu.memory_space<semaphore_mem>> -> memref<1x!tpu.dma_semaphore, #tpu.memory_space<semaphore_mem>>
    %118 = tpu.memref_squeeze %117 : memref<1x!tpu.dma_semaphore, #tpu.memory_space<semaphore_mem>> -> memref<!tpu.dma_semaphore, #tpu.memory_space<semaphore_mem>>
    tpu.enqueue_dma source(%115 : memref<1x128xf32, #tpu.memory_space<any>>) target(%116 : memref<1x128xf32, #tpu.memory_space<vmem>>) target_semaphore(%118 : memref<!tpu.dma_semaphore, #tpu.memory_space<semaphore_mem>>)
    %c1_102 = arith.constant 1 : index
    %c1_103 = arith.constant 1 : index
    %119 = memref.load %arg1[%c1_102, %c1_103] : memref<16x4xi32, #tpu.memory_space<smem>>
    %c0_i32_104 = arith.constant 0 : i32
    %c2047_i32_105 = arith.constant 2047 : i32
    %120 = arith.maxsi %c0_i32_104, %119 : i32
    %121 = arith.minsi %c2047_i32_105, %120 : i32
    %c0_i32_106 = arith.constant 0 : i32
    %c0_i32_107 = arith.constant 0 : i32
    %122 = tpu.memref_slice %arg2[%121, %c0_i32_107] : memref<2048x128xf32, #tpu.memory_space<any>> -> memref<1x128xf32, #tpu.memory_space<any>>
    %c17_i32 = arith.constant 17 : i32
    %c0_i32_108 = arith.constant 0 : i32
    %123 = tpu.memref_slice %arg4[%c17_i32, %c0_i32_108] : memref<64x128xf32, #tpu.memory_space<vmem>> -> memref<1x128xf32, #tpu.memory_space<vmem>>
    %124 = tpu.memref_slice %arg5[%c0_i32_106] : memref<1x!tpu.dma_semaphore, #tpu.memory_space<semaphore_mem>> -> memref<1x!tpu.dma_semaphore, #tpu.memory_space<semaphore_mem>>
    %125 = tpu.memref_squeeze %124 : memref<1x!tpu.dma_semaphore, #tpu.memory_space<semaphore_mem>> -> memref<!tpu.dma_semaphore, #tpu.memory_space<semaphore_mem>>
    tpu.enqueue_dma source(%122 : memref<1x128xf32, #tpu.memory_space<any>>) target(%123 : memref<1x128xf32, #tpu.memory_space<vmem>>) target_semaphore(%125 : memref<!tpu.dma_semaphore, #tpu.memory_space<semaphore_mem>>)
    %c2_109 = arith.constant 2 : index
    %c1_110 = arith.constant 1 : index
    %126 = memref.load %arg1[%c2_109, %c1_110] : memref<16x4xi32, #tpu.memory_space<smem>>
    %c0_i32_111 = arith.constant 0 : i32
    %c2047_i32_112 = arith.constant 2047 : i32
    %127 = arith.maxsi %c0_i32_111, %126 : i32
    %128 = arith.minsi %c2047_i32_112, %127 : i32
    %c0_i32_113 = arith.constant 0 : i32
    %c0_i32_114 = arith.constant 0 : i32
    %129 = tpu.memref_slice %arg2[%128, %c0_i32_114] : memref<2048x128xf32, #tpu.memory_space<any>> -> memref<1x128xf32, #tpu.memory_space<any>>
    %c18_i32 = arith.constant 18 : i32
    %c0_i32_115 = arith.constant 0 : i32
    %130 = tpu.memref_slice %arg4[%c18_i32, %c0_i32_115] : memref<64x128xf32, #tpu.memory_space<vmem>> -> memref<1x128xf32, #tpu.memory_space<vmem>>
    %131 = tpu.memref_slice %arg5[%c0_i32_113] : memref<1x!tpu.dma_semaphore, #tpu.memory_space<semaphore_mem>> -> memref<1x!tpu.dma_semaphore, #tpu.memory_space<semaphore_mem>>
    %132 = tpu.memref_squeeze %131 : memref<1x!tpu.dma_semaphore, #tpu.memory_space<semaphore_mem>> -> memref<!tpu.dma_semaphore, #tpu.memory_space<semaphore_mem>>
    tpu.enqueue_dma source(%129 : memref<1x128xf32, #tpu.memory_space<any>>) target(%130 : memref<1x128xf32, #tpu.memory_space<vmem>>) target_semaphore(%132 : memref<!tpu.dma_semaphore, #tpu.memory_space<semaphore_mem>>)
    %c3_116 = arith.constant 3 : index
    %c1_117 = arith.constant 1 : index
    %133 = memref.load %arg1[%c3_116, %c1_117] : memref<16x4xi32, #tpu.memory_space<smem>>
    %c0_i32_118 = arith.constant 0 : i32
    %c2047_i32_119 = arith.constant 2047 : i32
    %134 = arith.maxsi %c0_i32_118, %133 : i32
    %135 = arith.minsi %c2047_i32_119, %134 : i32
    %c0_i32_120 = arith.constant 0 : i32
    %c0_i32_121 = arith.constant 0 : i32
    %136 = tpu.memref_slice %arg2[%135, %c0_i32_121] : memref<2048x128xf32, #tpu.memory_space<any>> -> memref<1x128xf32, #tpu.memory_space<any>>
    %c19_i32 = arith.constant 19 : i32
    %c0_i32_122 = arith.constant 0 : i32
    %137 = tpu.memref_slice %arg4[%c19_i32, %c0_i32_122] : memref<64x128xf32, #tpu.memory_space<vmem>> -> memref<1x128xf32, #tpu.memory_space<vmem>>
    %138 = tpu.memref_slice %arg5[%c0_i32_120] : memref<1x!tpu.dma_semaphore, #tpu.memory_space<semaphore_mem>> -> memref<1x!tpu.dma_semaphore, #tpu.memory_space<semaphore_mem>>
    %139 = tpu.memref_squeeze %138 : memref<1x!tpu.dma_semaphore, #tpu.memory_space<semaphore_mem>> -> memref<!tpu.dma_semaphore, #tpu.memory_space<semaphore_mem>>
    tpu.enqueue_dma source(%136 : memref<1x128xf32, #tpu.memory_space<any>>) target(%137 : memref<1x128xf32, #tpu.memory_space<vmem>>) target_semaphore(%139 : memref<!tpu.dma_semaphore, #tpu.memory_space<semaphore_mem>>)
    %c4_123 = arith.constant 4 : index
    %c1_124 = arith.constant 1 : index
    %140 = memref.load %arg1[%c4_123, %c1_124] : memref<16x4xi32, #tpu.memory_space<smem>>
    %c0_i32_125 = arith.constant 0 : i32
    %c2047_i32_126 = arith.constant 2047 : i32
    %141 = arith.maxsi %c0_i32_125, %140 : i32
    %142 = arith.minsi %c2047_i32_126, %141 : i32
    %c0_i32_127 = arith.constant 0 : i32
    %c0_i32_128 = arith.constant 0 : i32
    %143 = tpu.memref_slice %arg2[%142, %c0_i32_128] : memref<2048x128xf32, #tpu.memory_space<any>> -> memref<1x128xf32, #tpu.memory_space<any>>
    %c20_i32 = arith.constant 20 : i32
    %c0_i32_129 = arith.constant 0 : i32
    %144 = tpu.memref_slice %arg4[%c20_i32, %c0_i32_129] : memref<64x128xf32, #tpu.memory_space<vmem>> -> memref<1x128xf32, #tpu.memory_space<vmem>>
    %145 = tpu.memref_slice %arg5[%c0_i32_127] : memref<1x!tpu.dma_semaphore, #tpu.memory_space<semaphore_mem>> -> memref<1x!tpu.dma_semaphore, #tpu.memory_space<semaphore_mem>>
    %146 = tpu.memref_squeeze %145 : memref<1x!tpu.dma_semaphore, #tpu.memory_space<semaphore_mem>> -> memref<!tpu.dma_semaphore, #tpu.memory_space<semaphore_mem>>
    tpu.enqueue_dma source(%143 : memref<1x128xf32, #tpu.memory_space<any>>) target(%144 : memref<1x128xf32, #tpu.memory_space<vmem>>) target_semaphore(%146 : memref<!tpu.dma_semaphore, #tpu.memory_space<semaphore_mem>>)
    %c5_130 = arith.constant 5 : index
    %c1_131 = arith.constant 1 : index
    %147 = memref.load %arg1[%c5_130, %c1_131] : memref<16x4xi32, #tpu.memory_space<smem>>
    %c0_i32_132 = arith.constant 0 : i32
    %c2047_i32_133 = arith.constant 2047 : i32
    %148 = arith.maxsi %c0_i32_132, %147 : i32
    %149 = arith.minsi %c2047_i32_133, %148 : i32
    %c0_i32_134 = arith.constant 0 : i32
    %c0_i32_135 = arith.constant 0 : i32
    %150 = tpu.memref_slice %arg2[%149, %c0_i32_135] : memref<2048x128xf32, #tpu.memory_space<any>> -> memref<1x128xf32, #tpu.memory_space<any>>
    %c21_i32 = arith.constant 21 : i32
    %c0_i32_136 = arith.constant 0 : i32
    %151 = tpu.memref_slice %arg4[%c21_i32, %c0_i32_136] : memref<64x128xf32, #tpu.memory_space<vmem>> -> memref<1x128xf32, #tpu.memory_space<vmem>>
    %152 = tpu.memref_slice %arg5[%c0_i32_134] : memref<1x!tpu.dma_semaphore, #tpu.memory_space<semaphore_mem>> -> memref<1x!tpu.dma_semaphore, #tpu.memory_space<semaphore_mem>>
    %153 = tpu.memref_squeeze %152 : memref<1x!tpu.dma_semaphore, #tpu.memory_space<semaphore_mem>> -> memref<!tpu.dma_semaphore, #tpu.memory_space<semaphore_mem>>
    tpu.enqueue_dma source(%150 : memref<1x128xf32, #tpu.memory_space<any>>) target(%151 : memref<1x128xf32, #tpu.memory_space<vmem>>) target_semaphore(%153 : memref<!tpu.dma_semaphore, #tpu.memory_space<semaphore_mem>>)
    %c6_137 = arith.constant 6 : index
    %c1_138 = arith.constant 1 : index
    %154 = memref.load %arg1[%c6_137, %c1_138] : memref<16x4xi32, #tpu.memory_space<smem>>
    %c0_i32_139 = arith.constant 0 : i32
    %c2047_i32_140 = arith.constant 2047 : i32
    %155 = arith.maxsi %c0_i32_139, %154 : i32
    %156 = arith.minsi %c2047_i32_140, %155 : i32
    %c0_i32_141 = arith.constant 0 : i32
    %c0_i32_142 = arith.constant 0 : i32
    %157 = tpu.memref_slice %arg2[%156, %c0_i32_142] : memref<2048x128xf32, #tpu.memory_space<any>> -> memref<1x128xf32, #tpu.memory_space<any>>
    %c22_i32 = arith.constant 22 : i32
    %c0_i32_143 = arith.constant 0 : i32
    %158 = tpu.memref_slice %arg4[%c22_i32, %c0_i32_143] : memref<64x128xf32, #tpu.memory_space<vmem>> -> memref<1x128xf32, #tpu.memory_space<vmem>>
    %159 = tpu.memref_slice %arg5[%c0_i32_141] : memref<1x!tpu.dma_semaphore, #tpu.memory_space<semaphore_mem>> -> memref<1x!tpu.dma_semaphore, #tpu.memory_space<semaphore_mem>>
    %160 = tpu.memref_squeeze %159 : memref<1x!tpu.dma_semaphore, #tpu.memory_space<semaphore_mem>> -> memref<!tpu.dma_semaphore, #tpu.memory_space<semaphore_mem>>
    tpu.enqueue_dma source(%157 : memref<1x128xf32, #tpu.memory_space<any>>) target(%158 : memref<1x128xf32, #tpu.memory_space<vmem>>) target_semaphore(%160 : memref<!tpu.dma_semaphore, #tpu.memory_space<semaphore_mem>>)
    %c7_144 = arith.constant 7 : index
    %c1_145 = arith.constant 1 : index
    %161 = memref.load %arg1[%c7_144, %c1_145] : memref<16x4xi32, #tpu.memory_space<smem>>
    %c0_i32_146 = arith.constant 0 : i32
    %c2047_i32_147 = arith.constant 2047 : i32
    %162 = arith.maxsi %c0_i32_146, %161 : i32
    %163 = arith.minsi %c2047_i32_147, %162 : i32
    %c0_i32_148 = arith.constant 0 : i32
    %c0_i32_149 = arith.constant 0 : i32
    %164 = tpu.memref_slice %arg2[%163, %c0_i32_149] : memref<2048x128xf32, #tpu.memory_space<any>> -> memref<1x128xf32, #tpu.memory_space<any>>
    %c23_i32 = arith.constant 23 : i32
    %c0_i32_150 = arith.constant 0 : i32
    %165 = tpu.memref_slice %arg4[%c23_i32, %c0_i32_150] : memref<64x128xf32, #tpu.memory_space<vmem>> -> memref<1x128xf32, #tpu.memory_space<vmem>>
    %166 = tpu.memref_slice %arg5[%c0_i32_148] : memref<1x!tpu.dma_semaphore, #tpu.memory_space<semaphore_mem>> -> memref<1x!tpu.dma_semaphore, #tpu.memory_space<semaphore_mem>>
    %167 = tpu.memref_squeeze %166 : memref<1x!tpu.dma_semaphore, #tpu.memory_space<semaphore_mem>> -> memref<!tpu.dma_semaphore, #tpu.memory_space<semaphore_mem>>
    tpu.enqueue_dma source(%164 : memref<1x128xf32, #tpu.memory_space<any>>) target(%165 : memref<1x128xf32, #tpu.memory_space<vmem>>) target_semaphore(%167 : memref<!tpu.dma_semaphore, #tpu.memory_space<semaphore_mem>>)
    %c8_151 = arith.constant 8 : index
    %c1_152 = arith.constant 1 : index
    %168 = memref.load %arg1[%c8_151, %c1_152] : memref<16x4xi32, #tpu.memory_space<smem>>
    %c0_i32_153 = arith.constant 0 : i32
    %c2047_i32_154 = arith.constant 2047 : i32
    %169 = arith.maxsi %c0_i32_153, %168 : i32
    %170 = arith.minsi %c2047_i32_154, %169 : i32
    %c0_i32_155 = arith.constant 0 : i32
    %c0_i32_156 = arith.constant 0 : i32
    %171 = tpu.memref_slice %arg2[%170, %c0_i32_156] : memref<2048x128xf32, #tpu.memory_space<any>> -> memref<1x128xf32, #tpu.memory_space<any>>
    %c24_i32 = arith.constant 24 : i32
    %c0_i32_157 = arith.constant 0 : i32
    %172 = tpu.memref_slice %arg4[%c24_i32, %c0_i32_157] : memref<64x128xf32, #tpu.memory_space<vmem>> -> memref<1x128xf32, #tpu.memory_space<vmem>>
    %173 = tpu.memref_slice %arg5[%c0_i32_155] : memref<1x!tpu.dma_semaphore, #tpu.memory_space<semaphore_mem>> -> memref<1x!tpu.dma_semaphore, #tpu.memory_space<semaphore_mem>>
    %174 = tpu.memref_squeeze %173 : memref<1x!tpu.dma_semaphore, #tpu.memory_space<semaphore_mem>> -> memref<!tpu.dma_semaphore, #tpu.memory_space<semaphore_mem>>
    tpu.enqueue_dma source(%171 : memref<1x128xf32, #tpu.memory_space<any>>) target(%172 : memref<1x128xf32, #tpu.memory_space<vmem>>) target_semaphore(%174 : memref<!tpu.dma_semaphore, #tpu.memory_space<semaphore_mem>>)
    %c9_158 = arith.constant 9 : index
    %c1_159 = arith.constant 1 : index
    %175 = memref.load %arg1[%c9_158, %c1_159] : memref<16x4xi32, #tpu.memory_space<smem>>
    %c0_i32_160 = arith.constant 0 : i32
    %c2047_i32_161 = arith.constant 2047 : i32
    %176 = arith.maxsi %c0_i32_160, %175 : i32
    %177 = arith.minsi %c2047_i32_161, %176 : i32
    %c0_i32_162 = arith.constant 0 : i32
    %c0_i32_163 = arith.constant 0 : i32
    %178 = tpu.memref_slice %arg2[%177, %c0_i32_163] : memref<2048x128xf32, #tpu.memory_space<any>> -> memref<1x128xf32, #tpu.memory_space<any>>
    %c25_i32 = arith.constant 25 : i32
    %c0_i32_164 = arith.constant 0 : i32
    %179 = tpu.memref_slice %arg4[%c25_i32, %c0_i32_164] : memref<64x128xf32, #tpu.memory_space<vmem>> -> memref<1x128xf32, #tpu.memory_space<vmem>>
    %180 = tpu.memref_slice %arg5[%c0_i32_162] : memref<1x!tpu.dma_semaphore, #tpu.memory_space<semaphore_mem>> -> memref<1x!tpu.dma_semaphore, #tpu.memory_space<semaphore_mem>>
    %181 = tpu.memref_squeeze %180 : memref<1x!tpu.dma_semaphore, #tpu.memory_space<semaphore_mem>> -> memref<!tpu.dma_semaphore, #tpu.memory_space<semaphore_mem>>
    tpu.enqueue_dma source(%178 : memref<1x128xf32, #tpu.memory_space<any>>) target(%179 : memref<1x128xf32, #tpu.memory_space<vmem>>) target_semaphore(%181 : memref<!tpu.dma_semaphore, #tpu.memory_space<semaphore_mem>>)
    %c10_165 = arith.constant 10 : index
    %c1_166 = arith.constant 1 : index
    %182 = memref.load %arg1[%c10_165, %c1_166] : memref<16x4xi32, #tpu.memory_space<smem>>
    %c0_i32_167 = arith.constant 0 : i32
    %c2047_i32_168 = arith.constant 2047 : i32
    %183 = arith.maxsi %c0_i32_167, %182 : i32
    %184 = arith.minsi %c2047_i32_168, %183 : i32
    %c0_i32_169 = arith.constant 0 : i32
    %c0_i32_170 = arith.constant 0 : i32
    %185 = tpu.memref_slice %arg2[%184, %c0_i32_170] : memref<2048x128xf32, #tpu.memory_space<any>> -> memref<1x128xf32, #tpu.memory_space<any>>
    %c26_i32 = arith.constant 26 : i32
    %c0_i32_171 = arith.constant 0 : i32
    %186 = tpu.memref_slice %arg4[%c26_i32, %c0_i32_171] : memref<64x128xf32, #tpu.memory_space<vmem>> -> memref<1x128xf32, #tpu.memory_space<vmem>>
    %187 = tpu.memref_slice %arg5[%c0_i32_169] : memref<1x!tpu.dma_semaphore, #tpu.memory_space<semaphore_mem>> -> memref<1x!tpu.dma_semaphore, #tpu.memory_space<semaphore_mem>>
    %188 = tpu.memref_squeeze %187 : memref<1x!tpu.dma_semaphore, #tpu.memory_space<semaphore_mem>> -> memref<!tpu.dma_semaphore, #tpu.memory_space<semaphore_mem>>
    tpu.enqueue_dma source(%185 : memref<1x128xf32, #tpu.memory_space<any>>) target(%186 : memref<1x128xf32, #tpu.memory_space<vmem>>) target_semaphore(%188 : memref<!tpu.dma_semaphore, #tpu.memory_space<semaphore_mem>>)
    %c11_172 = arith.constant 11 : index
    %c1_173 = arith.constant 1 : index
    %189 = memref.load %arg1[%c11_172, %c1_173] : memref<16x4xi32, #tpu.memory_space<smem>>
    %c0_i32_174 = arith.constant 0 : i32
    %c2047_i32_175 = arith.constant 2047 : i32
    %190 = arith.maxsi %c0_i32_174, %189 : i32
    %191 = arith.minsi %c2047_i32_175, %190 : i32
    %c0_i32_176 = arith.constant 0 : i32
    %c0_i32_177 = arith.constant 0 : i32
    %192 = tpu.memref_slice %arg2[%191, %c0_i32_177] : memref<2048x128xf32, #tpu.memory_space<any>> -> memref<1x128xf32, #tpu.memory_space<any>>
    %c27_i32 = arith.constant 27 : i32
    %c0_i32_178 = arith.constant 0 : i32
    %193 = tpu.memref_slice %arg4[%c27_i32, %c0_i32_178] : memref<64x128xf32, #tpu.memory_space<vmem>> -> memref<1x128xf32, #tpu.memory_space<vmem>>
    %194 = tpu.memref_slice %arg5[%c0_i32_176] : memref<1x!tpu.dma_semaphore, #tpu.memory_space<semaphore_mem>> -> memref<1x!tpu.dma_semaphore, #tpu.memory_space<semaphore_mem>>
    %195 = tpu.memref_squeeze %194 : memref<1x!tpu.dma_semaphore, #tpu.memory_space<semaphore_mem>> -> memref<!tpu.dma_semaphore, #tpu.memory_space<semaphore_mem>>
    tpu.enqueue_dma source(%192 : memref<1x128xf32, #tpu.memory_space<any>>) target(%193 : memref<1x128xf32, #tpu.memory_space<vmem>>) target_semaphore(%195 : memref<!tpu.dma_semaphore, #tpu.memory_space<semaphore_mem>>)
    %c12_179 = arith.constant 12 : index
    %c1_180 = arith.constant 1 : index
    %196 = memref.load %arg1[%c12_179, %c1_180] : memref<16x4xi32, #tpu.memory_space<smem>>
    %c0_i32_181 = arith.constant 0 : i32
    %c2047_i32_182 = arith.constant 2047 : i32
    %197 = arith.maxsi %c0_i32_181, %196 : i32
    %198 = arith.minsi %c2047_i32_182, %197 : i32
    %c0_i32_183 = arith.constant 0 : i32
    %c0_i32_184 = arith.constant 0 : i32
    %199 = tpu.memref_slice %arg2[%198, %c0_i32_184] : memref<2048x128xf32, #tpu.memory_space<any>> -> memref<1x128xf32, #tpu.memory_space<any>>
    %c28_i32 = arith.constant 28 : i32
    %c0_i32_185 = arith.constant 0 : i32
    %200 = tpu.memref_slice %arg4[%c28_i32, %c0_i32_185] : memref<64x128xf32, #tpu.memory_space<vmem>> -> memref<1x128xf32, #tpu.memory_space<vmem>>
    %201 = tpu.memref_slice %arg5[%c0_i32_183] : memref<1x!tpu.dma_semaphore, #tpu.memory_space<semaphore_mem>> -> memref<1x!tpu.dma_semaphore, #tpu.memory_space<semaphore_mem>>
    %202 = tpu.memref_squeeze %201 : memref<1x!tpu.dma_semaphore, #tpu.memory_space<semaphore_mem>> -> memref<!tpu.dma_semaphore, #tpu.memory_space<semaphore_mem>>
    tpu.enqueue_dma source(%199 : memref<1x128xf32, #tpu.memory_space<any>>) target(%200 : memref<1x128xf32, #tpu.memory_space<vmem>>) target_semaphore(%202 : memref<!tpu.dma_semaphore, #tpu.memory_space<semaphore_mem>>)
    %c13_186 = arith.constant 13 : index
    %c1_187 = arith.constant 1 : index
    %203 = memref.load %arg1[%c13_186, %c1_187] : memref<16x4xi32, #tpu.memory_space<smem>>
    %c0_i32_188 = arith.constant 0 : i32
    %c2047_i32_189 = arith.constant 2047 : i32
    %204 = arith.maxsi %c0_i32_188, %203 : i32
    %205 = arith.minsi %c2047_i32_189, %204 : i32
    %c0_i32_190 = arith.constant 0 : i32
    %c0_i32_191 = arith.constant 0 : i32
    %206 = tpu.memref_slice %arg2[%205, %c0_i32_191] : memref<2048x128xf32, #tpu.memory_space<any>> -> memref<1x128xf32, #tpu.memory_space<any>>
    %c29_i32 = arith.constant 29 : i32
    %c0_i32_192 = arith.constant 0 : i32
    %207 = tpu.memref_slice %arg4[%c29_i32, %c0_i32_192] : memref<64x128xf32, #tpu.memory_space<vmem>> -> memref<1x128xf32, #tpu.memory_space<vmem>>
    %208 = tpu.memref_slice %arg5[%c0_i32_190] : memref<1x!tpu.dma_semaphore, #tpu.memory_space<semaphore_mem>> -> memref<1x!tpu.dma_semaphore, #tpu.memory_space<semaphore_mem>>
    %209 = tpu.memref_squeeze %208 : memref<1x!tpu.dma_semaphore, #tpu.memory_space<semaphore_mem>> -> memref<!tpu.dma_semaphore, #tpu.memory_space<semaphore_mem>>
    tpu.enqueue_dma source(%206 : memref<1x128xf32, #tpu.memory_space<any>>) target(%207 : memref<1x128xf32, #tpu.memory_space<vmem>>) target_semaphore(%209 : memref<!tpu.dma_semaphore, #tpu.memory_space<semaphore_mem>>)
    %c14_193 = arith.constant 14 : index
    %c1_194 = arith.constant 1 : index
    %210 = memref.load %arg1[%c14_193, %c1_194] : memref<16x4xi32, #tpu.memory_space<smem>>
    %c0_i32_195 = arith.constant 0 : i32
    %c2047_i32_196 = arith.constant 2047 : i32
    %211 = arith.maxsi %c0_i32_195, %210 : i32
    %212 = arith.minsi %c2047_i32_196, %211 : i32
    %c0_i32_197 = arith.constant 0 : i32
    %c0_i32_198 = arith.constant 0 : i32
    %213 = tpu.memref_slice %arg2[%212, %c0_i32_198] : memref<2048x128xf32, #tpu.memory_space<any>> -> memref<1x128xf32, #tpu.memory_space<any>>
    %c30_i32 = arith.constant 30 : i32
    %c0_i32_199 = arith.constant 0 : i32
    %214 = tpu.memref_slice %arg4[%c30_i32, %c0_i32_199] : memref<64x128xf32, #tpu.memory_space<vmem>> -> memref<1x128xf32, #tpu.memory_space<vmem>>
    %215 = tpu.memref_slice %arg5[%c0_i32_197] : memref<1x!tpu.dma_semaphore, #tpu.memory_space<semaphore_mem>> -> memref<1x!tpu.dma_semaphore, #tpu.memory_space<semaphore_mem>>
    %216 = tpu.memref_squeeze %215 : memref<1x!tpu.dma_semaphore, #tpu.memory_space<semaphore_mem>> -> memref<!tpu.dma_semaphore, #tpu.memory_space<semaphore_mem>>
    tpu.enqueue_dma source(%213 : memref<1x128xf32, #tpu.memory_space<any>>) target(%214 : memref<1x128xf32, #tpu.memory_space<vmem>>) target_semaphore(%216 : memref<!tpu.dma_semaphore, #tpu.memory_space<semaphore_mem>>)
    %c15_200 = arith.constant 15 : index
    %c1_201 = arith.constant 1 : index
    %217 = memref.load %arg1[%c15_200, %c1_201] : memref<16x4xi32, #tpu.memory_space<smem>>
    %c0_i32_202 = arith.constant 0 : i32
    %c2047_i32_203 = arith.constant 2047 : i32
    %218 = arith.maxsi %c0_i32_202, %217 : i32
    %219 = arith.minsi %c2047_i32_203, %218 : i32
    %c0_i32_204 = arith.constant 0 : i32
    %c0_i32_205 = arith.constant 0 : i32
    %220 = tpu.memref_slice %arg2[%219, %c0_i32_205] : memref<2048x128xf32, #tpu.memory_space<any>> -> memref<1x128xf32, #tpu.memory_space<any>>
    %c31_i32 = arith.constant 31 : i32
    %c0_i32_206 = arith.constant 0 : i32
    %221 = tpu.memref_slice %arg4[%c31_i32, %c0_i32_206] : memref<64x128xf32, #tpu.memory_space<vmem>> -> memref<1x128xf32, #tpu.memory_space<vmem>>
    %222 = tpu.memref_slice %arg5[%c0_i32_204] : memref<1x!tpu.dma_semaphore, #tpu.memory_space<semaphore_mem>> -> memref<1x!tpu.dma_semaphore, #tpu.memory_space<semaphore_mem>>
    %223 = tpu.memref_squeeze %222 : memref<1x!tpu.dma_semaphore, #tpu.memory_space<semaphore_mem>> -> memref<!tpu.dma_semaphore, #tpu.memory_space<semaphore_mem>>
    tpu.enqueue_dma source(%220 : memref<1x128xf32, #tpu.memory_space<any>>) target(%221 : memref<1x128xf32, #tpu.memory_space<vmem>>) target_semaphore(%223 : memref<!tpu.dma_semaphore, #tpu.memory_space<semaphore_mem>>)
    %c0_207 = arith.constant 0 : index
    %c2_208 = arith.constant 2 : index
    %224 = memref.load %arg1[%c0_207, %c2_208] : memref<16x4xi32, #tpu.memory_space<smem>>
    %c0_i32_209 = arith.constant 0 : i32
    %c2047_i32_210 = arith.constant 2047 : i32
    %225 = arith.maxsi %c0_i32_209, %224 : i32
    %226 = arith.minsi %c2047_i32_210, %225 : i32
    %c0_i32_211 = arith.constant 0 : i32
    %c0_i32_212 = arith.constant 0 : i32
    %227 = tpu.memref_slice %arg2[%226, %c0_i32_212] : memref<2048x128xf32, #tpu.memory_space<any>> -> memref<1x128xf32, #tpu.memory_space<any>>
    %c32_i32 = arith.constant 32 : i32
    %c0_i32_213 = arith.constant 0 : i32
    %228 = tpu.memref_slice %arg4[%c32_i32, %c0_i32_213] : memref<64x128xf32, #tpu.memory_space<vmem>> -> memref<1x128xf32, #tpu.memory_space<vmem>>
    %229 = tpu.memref_slice %arg5[%c0_i32_211] : memref<1x!tpu.dma_semaphore, #tpu.memory_space<semaphore_mem>> -> memref<1x!tpu.dma_semaphore, #tpu.memory_space<semaphore_mem>>
    %230 = tpu.memref_squeeze %229 : memref<1x!tpu.dma_semaphore, #tpu.memory_space<semaphore_mem>> -> memref<!tpu.dma_semaphore, #tpu.memory_space<semaphore_mem>>
    tpu.enqueue_dma source(%227 : memref<1x128xf32, #tpu.memory_space<any>>) target(%228 : memref<1x128xf32, #tpu.memory_space<vmem>>) target_semaphore(%230 : memref<!tpu.dma_semaphore, #tpu.memory_space<semaphore_mem>>)
    %c1_214 = arith.constant 1 : index
    %c2_215 = arith.constant 2 : index
    %231 = memref.load %arg1[%c1_214, %c2_215] : memref<16x4xi32, #tpu.memory_space<smem>>
    %c0_i32_216 = arith.constant 0 : i32
    %c2047_i32_217 = arith.constant 2047 : i32
    %232 = arith.maxsi %c0_i32_216, %231 : i32
    %233 = arith.minsi %c2047_i32_217, %232 : i32
    %c0_i32_218 = arith.constant 0 : i32
    %c0_i32_219 = arith.constant 0 : i32
    %234 = tpu.memref_slice %arg2[%233, %c0_i32_219] : memref<2048x128xf32, #tpu.memory_space<any>> -> memref<1x128xf32, #tpu.memory_space<any>>
    %c33_i32 = arith.constant 33 : i32
    %c0_i32_220 = arith.constant 0 : i32
    %235 = tpu.memref_slice %arg4[%c33_i32, %c0_i32_220] : memref<64x128xf32, #tpu.memory_space<vmem>> -> memref<1x128xf32, #tpu.memory_space<vmem>>
    %236 = tpu.memref_slice %arg5[%c0_i32_218] : memref<1x!tpu.dma_semaphore, #tpu.memory_space<semaphore_mem>> -> memref<1x!tpu.dma_semaphore, #tpu.memory_space<semaphore_mem>>
    %237 = tpu.memref_squeeze %236 : memref<1x!tpu.dma_semaphore, #tpu.memory_space<semaphore_mem>> -> memref<!tpu.dma_semaphore, #tpu.memory_space<semaphore_mem>>
    tpu.enqueue_dma source(%234 : memref<1x128xf32, #tpu.memory_space<any>>) target(%235 : memref<1x128xf32, #tpu.memory_space<vmem>>) target_semaphore(%237 : memref<!tpu.dma_semaphore, #tpu.memory_space<semaphore_mem>>)
    %c2_221 = arith.constant 2 : index
    %c2_222 = arith.constant 2 : index
    %238 = memref.load %arg1[%c2_221, %c2_222] : memref<16x4xi32, #tpu.memory_space<smem>>
    %c0_i32_223 = arith.constant 0 : i32
    %c2047_i32_224 = arith.constant 2047 : i32
    %239 = arith.maxsi %c0_i32_223, %238 : i32
    %240 = arith.minsi %c2047_i32_224, %239 : i32
    %c0_i32_225 = arith.constant 0 : i32
    %c0_i32_226 = arith.constant 0 : i32
    %241 = tpu.memref_slice %arg2[%240, %c0_i32_226] : memref<2048x128xf32, #tpu.memory_space<any>> -> memref<1x128xf32, #tpu.memory_space<any>>
    %c34_i32 = arith.constant 34 : i32
    %c0_i32_227 = arith.constant 0 : i32
    %242 = tpu.memref_slice %arg4[%c34_i32, %c0_i32_227] : memref<64x128xf32, #tpu.memory_space<vmem>> -> memref<1x128xf32, #tpu.memory_space<vmem>>
    %243 = tpu.memref_slice %arg5[%c0_i32_225] : memref<1x!tpu.dma_semaphore, #tpu.memory_space<semaphore_mem>> -> memref<1x!tpu.dma_semaphore, #tpu.memory_space<semaphore_mem>>
    %244 = tpu.memref_squeeze %243 : memref<1x!tpu.dma_semaphore, #tpu.memory_space<semaphore_mem>> -> memref<!tpu.dma_semaphore, #tpu.memory_space<semaphore_mem>>
    tpu.enqueue_dma source(%241 : memref<1x128xf32, #tpu.memory_space<any>>) target(%242 : memref<1x128xf32, #tpu.memory_space<vmem>>) target_semaphore(%244 : memref<!tpu.dma_semaphore, #tpu.memory_space<semaphore_mem>>)
    %c3_228 = arith.constant 3 : index
    %c2_229 = arith.constant 2 : index
    %245 = memref.load %arg1[%c3_228, %c2_229] : memref<16x4xi32, #tpu.memory_space<smem>>
    %c0_i32_230 = arith.constant 0 : i32
    %c2047_i32_231 = arith.constant 2047 : i32
    %246 = arith.maxsi %c0_i32_230, %245 : i32
    %247 = arith.minsi %c2047_i32_231, %246 : i32
    %c0_i32_232 = arith.constant 0 : i32
    %c0_i32_233 = arith.constant 0 : i32
    %248 = tpu.memref_slice %arg2[%247, %c0_i32_233] : memref<2048x128xf32, #tpu.memory_space<any>> -> memref<1x128xf32, #tpu.memory_space<any>>
    %c35_i32 = arith.constant 35 : i32
    %c0_i32_234 = arith.constant 0 : i32
    %249 = tpu.memref_slice %arg4[%c35_i32, %c0_i32_234] : memref<64x128xf32, #tpu.memory_space<vmem>> -> memref<1x128xf32, #tpu.memory_space<vmem>>
    %250 = tpu.memref_slice %arg5[%c0_i32_232] : memref<1x!tpu.dma_semaphore, #tpu.memory_space<semaphore_mem>> -> memref<1x!tpu.dma_semaphore, #tpu.memory_space<semaphore_mem>>
    %251 = tpu.memref_squeeze %250 : memref<1x!tpu.dma_semaphore, #tpu.memory_space<semaphore_mem>> -> memref<!tpu.dma_semaphore, #tpu.memory_space<semaphore_mem>>
    tpu.enqueue_dma source(%248 : memref<1x128xf32, #tpu.memory_space<any>>) target(%249 : memref<1x128xf32, #tpu.memory_space<vmem>>) target_semaphore(%251 : memref<!tpu.dma_semaphore, #tpu.memory_space<semaphore_mem>>)
    %c4_235 = arith.constant 4 : index
    %c2_236 = arith.constant 2 : index
    %252 = memref.load %arg1[%c4_235, %c2_236] : memref<16x4xi32, #tpu.memory_space<smem>>
    %c0_i32_237 = arith.constant 0 : i32
    %c2047_i32_238 = arith.constant 2047 : i32
    %253 = arith.maxsi %c0_i32_237, %252 : i32
    %254 = arith.minsi %c2047_i32_238, %253 : i32
    %c0_i32_239 = arith.constant 0 : i32
    %c0_i32_240 = arith.constant 0 : i32
    %255 = tpu.memref_slice %arg2[%254, %c0_i32_240] : memref<2048x128xf32, #tpu.memory_space<any>> -> memref<1x128xf32, #tpu.memory_space<any>>
    %c36_i32 = arith.constant 36 : i32
    %c0_i32_241 = arith.constant 0 : i32
    %256 = tpu.memref_slice %arg4[%c36_i32, %c0_i32_241] : memref<64x128xf32, #tpu.memory_space<vmem>> -> memref<1x128xf32, #tpu.memory_space<vmem>>
    %257 = tpu.memref_slice %arg5[%c0_i32_239] : memref<1x!tpu.dma_semaphore, #tpu.memory_space<semaphore_mem>> -> memref<1x!tpu.dma_semaphore, #tpu.memory_space<semaphore_mem>>
    %258 = tpu.memref_squeeze %257 : memref<1x!tpu.dma_semaphore, #tpu.memory_space<semaphore_mem>> -> memref<!tpu.dma_semaphore, #tpu.memory_space<semaphore_mem>>
    tpu.enqueue_dma source(%255 : memref<1x128xf32, #tpu.memory_space<any>>) target(%256 : memref<1x128xf32, #tpu.memory_space<vmem>>) target_semaphore(%258 : memref<!tpu.dma_semaphore, #tpu.memory_space<semaphore_mem>>)
    %c5_242 = arith.constant 5 : index
    %c2_243 = arith.constant 2 : index
    %259 = memref.load %arg1[%c5_242, %c2_243] : memref<16x4xi32, #tpu.memory_space<smem>>
    %c0_i32_244 = arith.constant 0 : i32
    %c2047_i32_245 = arith.constant 2047 : i32
    %260 = arith.maxsi %c0_i32_244, %259 : i32
    %261 = arith.minsi %c2047_i32_245, %260 : i32
    %c0_i32_246 = arith.constant 0 : i32
    %c0_i32_247 = arith.constant 0 : i32
    %262 = tpu.memref_slice %arg2[%261, %c0_i32_247] : memref<2048x128xf32, #tpu.memory_space<any>> -> memref<1x128xf32, #tpu.memory_space<any>>
    %c37_i32 = arith.constant 37 : i32
    %c0_i32_248 = arith.constant 0 : i32
    %263 = tpu.memref_slice %arg4[%c37_i32, %c0_i32_248] : memref<64x128xf32, #tpu.memory_space<vmem>> -> memref<1x128xf32, #tpu.memory_space<vmem>>
    %264 = tpu.memref_slice %arg5[%c0_i32_246] : memref<1x!tpu.dma_semaphore, #tpu.memory_space<semaphore_mem>> -> memref<1x!tpu.dma_semaphore, #tpu.memory_space<semaphore_mem>>
    %265 = tpu.memref_squeeze %264 : memref<1x!tpu.dma_semaphore, #tpu.memory_space<semaphore_mem>> -> memref<!tpu.dma_semaphore, #tpu.memory_space<semaphore_mem>>
    tpu.enqueue_dma source(%262 : memref<1x128xf32, #tpu.memory_space<any>>) target(%263 : memref<1x128xf32, #tpu.memory_space<vmem>>) target_semaphore(%265 : memref<!tpu.dma_semaphore, #tpu.memory_space<semaphore_mem>>)
    %c6_249 = arith.constant 6 : index
    %c2_250 = arith.constant 2 : index
    %266 = memref.load %arg1[%c6_249, %c2_250] : memref<16x4xi32, #tpu.memory_space<smem>>
    %c0_i32_251 = arith.constant 0 : i32
    %c2047_i32_252 = arith.constant 2047 : i32
    %267 = arith.maxsi %c0_i32_251, %266 : i32
    %268 = arith.minsi %c2047_i32_252, %267 : i32
    %c0_i32_253 = arith.constant 0 : i32
    %c0_i32_254 = arith.constant 0 : i32
    %269 = tpu.memref_slice %arg2[%268, %c0_i32_254] : memref<2048x128xf32, #tpu.memory_space<any>> -> memref<1x128xf32, #tpu.memory_space<any>>
    %c38_i32 = arith.constant 38 : i32
    %c0_i32_255 = arith.constant 0 : i32
    %270 = tpu.memref_slice %arg4[%c38_i32, %c0_i32_255] : memref<64x128xf32, #tpu.memory_space<vmem>> -> memref<1x128xf32, #tpu.memory_space<vmem>>
    %271 = tpu.memref_slice %arg5[%c0_i32_253] : memref<1x!tpu.dma_semaphore, #tpu.memory_space<semaphore_mem>> -> memref<1x!tpu.dma_semaphore, #tpu.memory_space<semaphore_mem>>
    %272 = tpu.memref_squeeze %271 : memref<1x!tpu.dma_semaphore, #tpu.memory_space<semaphore_mem>> -> memref<!tpu.dma_semaphore, #tpu.memory_space<semaphore_mem>>
    tpu.enqueue_dma source(%269 : memref<1x128xf32, #tpu.memory_space<any>>) target(%270 : memref<1x128xf32, #tpu.memory_space<vmem>>) target_semaphore(%272 : memref<!tpu.dma_semaphore, #tpu.memory_space<semaphore_mem>>)
    %c7_256 = arith.constant 7 : index
    %c2_257 = arith.constant 2 : index
    %273 = memref.load %arg1[%c7_256, %c2_257] : memref<16x4xi32, #tpu.memory_space<smem>>
    %c0_i32_258 = arith.constant 0 : i32
    %c2047_i32_259 = arith.constant 2047 : i32
    %274 = arith.maxsi %c0_i32_258, %273 : i32
    %275 = arith.minsi %c2047_i32_259, %274 : i32
    %c0_i32_260 = arith.constant 0 : i32
    %c0_i32_261 = arith.constant 0 : i32
    %276 = tpu.memref_slice %arg2[%275, %c0_i32_261] : memref<2048x128xf32, #tpu.memory_space<any>> -> memref<1x128xf32, #tpu.memory_space<any>>
    %c39_i32 = arith.constant 39 : i32
    %c0_i32_262 = arith.constant 0 : i32
    %277 = tpu.memref_slice %arg4[%c39_i32, %c0_i32_262] : memref<64x128xf32, #tpu.memory_space<vmem>> -> memref<1x128xf32, #tpu.memory_space<vmem>>
    %278 = tpu.memref_slice %arg5[%c0_i32_260] : memref<1x!tpu.dma_semaphore, #tpu.memory_space<semaphore_mem>> -> memref<1x!tpu.dma_semaphore, #tpu.memory_space<semaphore_mem>>
    %279 = tpu.memref_squeeze %278 : memref<1x!tpu.dma_semaphore, #tpu.memory_space<semaphore_mem>> -> memref<!tpu.dma_semaphore, #tpu.memory_space<semaphore_mem>>
    tpu.enqueue_dma source(%276 : memref<1x128xf32, #tpu.memory_space<any>>) target(%277 : memref<1x128xf32, #tpu.memory_space<vmem>>) target_semaphore(%279 : memref<!tpu.dma_semaphore, #tpu.memory_space<semaphore_mem>>)
    %c8_263 = arith.constant 8 : index
    %c2_264 = arith.constant 2 : index
    %280 = memref.load %arg1[%c8_263, %c2_264] : memref<16x4xi32, #tpu.memory_space<smem>>
    %c0_i32_265 = arith.constant 0 : i32
    %c2047_i32_266 = arith.constant 2047 : i32
    %281 = arith.maxsi %c0_i32_265, %280 : i32
    %282 = arith.minsi %c2047_i32_266, %281 : i32
    %c0_i32_267 = arith.constant 0 : i32
    %c0_i32_268 = arith.constant 0 : i32
    %283 = tpu.memref_slice %arg2[%282, %c0_i32_268] : memref<2048x128xf32, #tpu.memory_space<any>> -> memref<1x128xf32, #tpu.memory_space<any>>
    %c40_i32 = arith.constant 40 : i32
    %c0_i32_269 = arith.constant 0 : i32
    %284 = tpu.memref_slice %arg4[%c40_i32, %c0_i32_269] : memref<64x128xf32, #tpu.memory_space<vmem>> -> memref<1x128xf32, #tpu.memory_space<vmem>>
    %285 = tpu.memref_slice %arg5[%c0_i32_267] : memref<1x!tpu.dma_semaphore, #tpu.memory_space<semaphore_mem>> -> memref<1x!tpu.dma_semaphore, #tpu.memory_space<semaphore_mem>>
    %286 = tpu.memref_squeeze %285 : memref<1x!tpu.dma_semaphore, #tpu.memory_space<semaphore_mem>> -> memref<!tpu.dma_semaphore, #tpu.memory_space<semaphore_mem>>
    tpu.enqueue_dma source(%283 : memref<1x128xf32, #tpu.memory_space<any>>) target(%284 : memref<1x128xf32, #tpu.memory_space<vmem>>) target_semaphore(%286 : memref<!tpu.dma_semaphore, #tpu.memory_space<semaphore_mem>>)
    %c9_270 = arith.constant 9 : index
    %c2_271 = arith.constant 2 : index
    %287 = memref.load %arg1[%c9_270, %c2_271] : memref<16x4xi32, #tpu.memory_space<smem>>
    %c0_i32_272 = arith.constant 0 : i32
    %c2047_i32_273 = arith.constant 2047 : i32
    %288 = arith.maxsi %c0_i32_272, %287 : i32
    %289 = arith.minsi %c2047_i32_273, %288 : i32
    %c0_i32_274 = arith.constant 0 : i32
    %c0_i32_275 = arith.constant 0 : i32
    %290 = tpu.memref_slice %arg2[%289, %c0_i32_275] : memref<2048x128xf32, #tpu.memory_space<any>> -> memref<1x128xf32, #tpu.memory_space<any>>
    %c41_i32 = arith.constant 41 : i32
    %c0_i32_276 = arith.constant 0 : i32
    %291 = tpu.memref_slice %arg4[%c41_i32, %c0_i32_276] : memref<64x128xf32, #tpu.memory_space<vmem>> -> memref<1x128xf32, #tpu.memory_space<vmem>>
    %292 = tpu.memref_slice %arg5[%c0_i32_274] : memref<1x!tpu.dma_semaphore, #tpu.memory_space<semaphore_mem>> -> memref<1x!tpu.dma_semaphore, #tpu.memory_space<semaphore_mem>>
    %293 = tpu.memref_squeeze %292 : memref<1x!tpu.dma_semaphore, #tpu.memory_space<semaphore_mem>> -> memref<!tpu.dma_semaphore, #tpu.memory_space<semaphore_mem>>
    tpu.enqueue_dma source(%290 : memref<1x128xf32, #tpu.memory_space<any>>) target(%291 : memref<1x128xf32, #tpu.memory_space<vmem>>) target_semaphore(%293 : memref<!tpu.dma_semaphore, #tpu.memory_space<semaphore_mem>>)
    %c10_277 = arith.constant 10 : index
    %c2_278 = arith.constant 2 : index
    %294 = memref.load %arg1[%c10_277, %c2_278] : memref<16x4xi32, #tpu.memory_space<smem>>
    %c0_i32_279 = arith.constant 0 : i32
    %c2047_i32_280 = arith.constant 2047 : i32
    %295 = arith.maxsi %c0_i32_279, %294 : i32
    %296 = arith.minsi %c2047_i32_280, %295 : i32
    %c0_i32_281 = arith.constant 0 : i32
    %c0_i32_282 = arith.constant 0 : i32
    %297 = tpu.memref_slice %arg2[%296, %c0_i32_282] : memref<2048x128xf32, #tpu.memory_space<any>> -> memref<1x128xf32, #tpu.memory_space<any>>
    %c42_i32 = arith.constant 42 : i32
    %c0_i32_283 = arith.constant 0 : i32
    %298 = tpu.memref_slice %arg4[%c42_i32, %c0_i32_283] : memref<64x128xf32, #tpu.memory_space<vmem>> -> memref<1x128xf32, #tpu.memory_space<vmem>>
    %299 = tpu.memref_slice %arg5[%c0_i32_281] : memref<1x!tpu.dma_semaphore, #tpu.memory_space<semaphore_mem>> -> memref<1x!tpu.dma_semaphore, #tpu.memory_space<semaphore_mem>>
    %300 = tpu.memref_squeeze %299 : memref<1x!tpu.dma_semaphore, #tpu.memory_space<semaphore_mem>> -> memref<!tpu.dma_semaphore, #tpu.memory_space<semaphore_mem>>
    tpu.enqueue_dma source(%297 : memref<1x128xf32, #tpu.memory_space<any>>) target(%298 : memref<1x128xf32, #tpu.memory_space<vmem>>) target_semaphore(%300 : memref<!tpu.dma_semaphore, #tpu.memory_space<semaphore_mem>>)
    %c11_284 = arith.constant 11 : index
    %c2_285 = arith.constant 2 : index
    %301 = memref.load %arg1[%c11_284, %c2_285] : memref<16x4xi32, #tpu.memory_space<smem>>
    %c0_i32_286 = arith.constant 0 : i32
    %c2047_i32_287 = arith.constant 2047 : i32
    %302 = arith.maxsi %c0_i32_286, %301 : i32
    %303 = arith.minsi %c2047_i32_287, %302 : i32
    %c0_i32_288 = arith.constant 0 : i32
    %c0_i32_289 = arith.constant 0 : i32
    %304 = tpu.memref_slice %arg2[%303, %c0_i32_289] : memref<2048x128xf32, #tpu.memory_space<any>> -> memref<1x128xf32, #tpu.memory_space<any>>
    %c43_i32 = arith.constant 43 : i32
    %c0_i32_290 = arith.constant 0 : i32
    %305 = tpu.memref_slice %arg4[%c43_i32, %c0_i32_290] : memref<64x128xf32, #tpu.memory_space<vmem>> -> memref<1x128xf32, #tpu.memory_space<vmem>>
    %306 = tpu.memref_slice %arg5[%c0_i32_288] : memref<1x!tpu.dma_semaphore, #tpu.memory_space<semaphore_mem>> -> memref<1x!tpu.dma_semaphore, #tpu.memory_space<semaphore_mem>>
    %307 = tpu.memref_squeeze %306 : memref<1x!tpu.dma_semaphore, #tpu.memory_space<semaphore_mem>> -> memref<!tpu.dma_semaphore, #tpu.memory_space<semaphore_mem>>
    tpu.enqueue_dma source(%304 : memref<1x128xf32, #tpu.memory_space<any>>) target(%305 : memref<1x128xf32, #tpu.memory_space<vmem>>) target_semaphore(%307 : memref<!tpu.dma_semaphore, #tpu.memory_space<semaphore_mem>>)
    %c12_291 = arith.constant 12 : index
    %c2_292 = arith.constant 2 : index
    %308 = memref.load %arg1[%c12_291, %c2_292] : memref<16x4xi32, #tpu.memory_space<smem>>
    %c0_i32_293 = arith.constant 0 : i32
    %c2047_i32_294 = arith.constant 2047 : i32
    %309 = arith.maxsi %c0_i32_293, %308 : i32
    %310 = arith.minsi %c2047_i32_294, %309 : i32
    %c0_i32_295 = arith.constant 0 : i32
    %c0_i32_296 = arith.constant 0 : i32
    %311 = tpu.memref_slice %arg2[%310, %c0_i32_296] : memref<2048x128xf32, #tpu.memory_space<any>> -> memref<1x128xf32, #tpu.memory_space<any>>
    %c44_i32 = arith.constant 44 : i32
    %c0_i32_297 = arith.constant 0 : i32
    %312 = tpu.memref_slice %arg4[%c44_i32, %c0_i32_297] : memref<64x128xf32, #tpu.memory_space<vmem>> -> memref<1x128xf32, #tpu.memory_space<vmem>>
    %313 = tpu.memref_slice %arg5[%c0_i32_295] : memref<1x!tpu.dma_semaphore, #tpu.memory_space<semaphore_mem>> -> memref<1x!tpu.dma_semaphore, #tpu.memory_space<semaphore_mem>>
    %314 = tpu.memref_squeeze %313 : memref<1x!tpu.dma_semaphore, #tpu.memory_space<semaphore_mem>> -> memref<!tpu.dma_semaphore, #tpu.memory_space<semaphore_mem>>
    tpu.enqueue_dma source(%311 : memref<1x128xf32, #tpu.memory_space<any>>) target(%312 : memref<1x128xf32, #tpu.memory_space<vmem>>) target_semaphore(%314 : memref<!tpu.dma_semaphore, #tpu.memory_space<semaphore_mem>>)
    %c13_298 = arith.constant 13 : index
    %c2_299 = arith.constant 2 : index
    %315 = memref.load %arg1[%c13_298, %c2_299] : memref<16x4xi32, #tpu.memory_space<smem>>
    %c0_i32_300 = arith.constant 0 : i32
    %c2047_i32_301 = arith.constant 2047 : i32
    %316 = arith.maxsi %c0_i32_300, %315 : i32
    %317 = arith.minsi %c2047_i32_301, %316 : i32
    %c0_i32_302 = arith.constant 0 : i32
    %c0_i32_303 = arith.constant 0 : i32
    %318 = tpu.memref_slice %arg2[%317, %c0_i32_303] : memref<2048x128xf32, #tpu.memory_space<any>> -> memref<1x128xf32, #tpu.memory_space<any>>
    %c45_i32 = arith.constant 45 : i32
    %c0_i32_304 = arith.constant 0 : i32
    %319 = tpu.memref_slice %arg4[%c45_i32, %c0_i32_304] : memref<64x128xf32, #tpu.memory_space<vmem>> -> memref<1x128xf32, #tpu.memory_space<vmem>>
    %320 = tpu.memref_slice %arg5[%c0_i32_302] : memref<1x!tpu.dma_semaphore, #tpu.memory_space<semaphore_mem>> -> memref<1x!tpu.dma_semaphore, #tpu.memory_space<semaphore_mem>>
    %321 = tpu.memref_squeeze %320 : memref<1x!tpu.dma_semaphore, #tpu.memory_space<semaphore_mem>> -> memref<!tpu.dma_semaphore, #tpu.memory_space<semaphore_mem>>
    tpu.enqueue_dma source(%318 : memref<1x128xf32, #tpu.memory_space<any>>) target(%319 : memref<1x128xf32, #tpu.memory_space<vmem>>) target_semaphore(%321 : memref<!tpu.dma_semaphore, #tpu.memory_space<semaphore_mem>>)
    %c14_305 = arith.constant 14 : index
    %c2_306 = arith.constant 2 : index
    %322 = memref.load %arg1[%c14_305, %c2_306] : memref<16x4xi32, #tpu.memory_space<smem>>
    %c0_i32_307 = arith.constant 0 : i32
    %c2047_i32_308 = arith.constant 2047 : i32
    %323 = arith.maxsi %c0_i32_307, %322 : i32
    %324 = arith.minsi %c2047_i32_308, %323 : i32
    %c0_i32_309 = arith.constant 0 : i32
    %c0_i32_310 = arith.constant 0 : i32
    %325 = tpu.memref_slice %arg2[%324, %c0_i32_310] : memref<2048x128xf32, #tpu.memory_space<any>> -> memref<1x128xf32, #tpu.memory_space<any>>
    %c46_i32 = arith.constant 46 : i32
    %c0_i32_311 = arith.constant 0 : i32
    %326 = tpu.memref_slice %arg4[%c46_i32, %c0_i32_311] : memref<64x128xf32, #tpu.memory_space<vmem>> -> memref<1x128xf32, #tpu.memory_space<vmem>>
    %327 = tpu.memref_slice %arg5[%c0_i32_309] : memref<1x!tpu.dma_semaphore, #tpu.memory_space<semaphore_mem>> -> memref<1x!tpu.dma_semaphore, #tpu.memory_space<semaphore_mem>>
    %328 = tpu.memref_squeeze %327 : memref<1x!tpu.dma_semaphore, #tpu.memory_space<semaphore_mem>> -> memref<!tpu.dma_semaphore, #tpu.memory_space<semaphore_mem>>
    tpu.enqueue_dma source(%325 : memref<1x128xf32, #tpu.memory_space<any>>) target(%326 : memref<1x128xf32, #tpu.memory_space<vmem>>) target_semaphore(%328 : memref<!tpu.dma_semaphore, #tpu.memory_space<semaphore_mem>>)
    %c15_312 = arith.constant 15 : index
    %c2_313 = arith.constant 2 : index
    %329 = memref.load %arg1[%c15_312, %c2_313] : memref<16x4xi32, #tpu.memory_space<smem>>
    %c0_i32_314 = arith.constant 0 : i32
    %c2047_i32_315 = arith.constant 2047 : i32
    %330 = arith.maxsi %c0_i32_314, %329 : i32
    %331 = arith.minsi %c2047_i32_315, %330 : i32
    %c0_i32_316 = arith.constant 0 : i32
    %c0_i32_317 = arith.constant 0 : i32
    %332 = tpu.memref_slice %arg2[%331, %c0_i32_317] : memref<2048x128xf32, #tpu.memory_space<any>> -> memref<1x128xf32, #tpu.memory_space<any>>
    %c47_i32 = arith.constant 47 : i32
    %c0_i32_318 = arith.constant 0 : i32
    %333 = tpu.memref_slice %arg4[%c47_i32, %c0_i32_318] : memref<64x128xf32, #tpu.memory_space<vmem>> -> memref<1x128xf32, #tpu.memory_space<vmem>>
    %334 = tpu.memref_slice %arg5[%c0_i32_316] : memref<1x!tpu.dma_semaphore, #tpu.memory_space<semaphore_mem>> -> memref<1x!tpu.dma_semaphore, #tpu.memory_space<semaphore_mem>>
    %335 = tpu.memref_squeeze %334 : memref<1x!tpu.dma_semaphore, #tpu.memory_space<semaphore_mem>> -> memref<!tpu.dma_semaphore, #tpu.memory_space<semaphore_mem>>
    tpu.enqueue_dma source(%332 : memref<1x128xf32, #tpu.memory_space<any>>) target(%333 : memref<1x128xf32, #tpu.memory_space<vmem>>) target_semaphore(%335 : memref<!tpu.dma_semaphore, #tpu.memory_space<semaphore_mem>>)
    %c0_319 = arith.constant 0 : index
    %c3_320 = arith.constant 3 : index
    %336 = memref.load %arg1[%c0_319, %c3_320] : memref<16x4xi32, #tpu.memory_space<smem>>
    %c0_i32_321 = arith.constant 0 : i32
    %c2047_i32_322 = arith.constant 2047 : i32
    %337 = arith.maxsi %c0_i32_321, %336 : i32
    %338 = arith.minsi %c2047_i32_322, %337 : i32
    %c0_i32_323 = arith.constant 0 : i32
    %c0_i32_324 = arith.constant 0 : i32
    %339 = tpu.memref_slice %arg2[%338, %c0_i32_324] : memref<2048x128xf32, #tpu.memory_space<any>> -> memref<1x128xf32, #tpu.memory_space<any>>
    %c48_i32 = arith.constant 48 : i32
    %c0_i32_325 = arith.constant 0 : i32
    %340 = tpu.memref_slice %arg4[%c48_i32, %c0_i32_325] : memref<64x128xf32, #tpu.memory_space<vmem>> -> memref<1x128xf32, #tpu.memory_space<vmem>>
    %341 = tpu.memref_slice %arg5[%c0_i32_323] : memref<1x!tpu.dma_semaphore, #tpu.memory_space<semaphore_mem>> -> memref<1x!tpu.dma_semaphore, #tpu.memory_space<semaphore_mem>>
    %342 = tpu.memref_squeeze %341 : memref<1x!tpu.dma_semaphore, #tpu.memory_space<semaphore_mem>> -> memref<!tpu.dma_semaphore, #tpu.memory_space<semaphore_mem>>
    tpu.enqueue_dma source(%339 : memref<1x128xf32, #tpu.memory_space<any>>) target(%340 : memref<1x128xf32, #tpu.memory_space<vmem>>) target_semaphore(%342 : memref<!tpu.dma_semaphore, #tpu.memory_space<semaphore_mem>>)
    %c1_326 = arith.constant 1 : index
    %c3_327 = arith.constant 3 : index
    %343 = memref.load %arg1[%c1_326, %c3_327] : memref<16x4xi32, #tpu.memory_space<smem>>
    %c0_i32_328 = arith.constant 0 : i32
    %c2047_i32_329 = arith.constant 2047 : i32
    %344 = arith.maxsi %c0_i32_328, %343 : i32
    %345 = arith.minsi %c2047_i32_329, %344 : i32
    %c0_i32_330 = arith.constant 0 : i32
    %c0_i32_331 = arith.constant 0 : i32
    %346 = tpu.memref_slice %arg2[%345, %c0_i32_331] : memref<2048x128xf32, #tpu.memory_space<any>> -> memref<1x128xf32, #tpu.memory_space<any>>
    %c49_i32 = arith.constant 49 : i32
    %c0_i32_332 = arith.constant 0 : i32
    %347 = tpu.memref_slice %arg4[%c49_i32, %c0_i32_332] : memref<64x128xf32, #tpu.memory_space<vmem>> -> memref<1x128xf32, #tpu.memory_space<vmem>>
    %348 = tpu.memref_slice %arg5[%c0_i32_330] : memref<1x!tpu.dma_semaphore, #tpu.memory_space<semaphore_mem>> -> memref<1x!tpu.dma_semaphore, #tpu.memory_space<semaphore_mem>>
    %349 = tpu.memref_squeeze %348 : memref<1x!tpu.dma_semaphore, #tpu.memory_space<semaphore_mem>> -> memref<!tpu.dma_semaphore, #tpu.memory_space<semaphore_mem>>
    tpu.enqueue_dma source(%346 : memref<1x128xf32, #tpu.memory_space<any>>) target(%347 : memref<1x128xf32, #tpu.memory_space<vmem>>) target_semaphore(%349 : memref<!tpu.dma_semaphore, #tpu.memory_space<semaphore_mem>>)
    %c2_333 = arith.constant 2 : index
    %c3_334 = arith.constant 3 : index
    %350 = memref.load %arg1[%c2_333, %c3_334] : memref<16x4xi32, #tpu.memory_space<smem>>
    %c0_i32_335 = arith.constant 0 : i32
    %c2047_i32_336 = arith.constant 2047 : i32
    %351 = arith.maxsi %c0_i32_335, %350 : i32
    %352 = arith.minsi %c2047_i32_336, %351 : i32
    %c0_i32_337 = arith.constant 0 : i32
    %c0_i32_338 = arith.constant 0 : i32
    %353 = tpu.memref_slice %arg2[%352, %c0_i32_338] : memref<2048x128xf32, #tpu.memory_space<any>> -> memref<1x128xf32, #tpu.memory_space<any>>
    %c50_i32 = arith.constant 50 : i32
    %c0_i32_339 = arith.constant 0 : i32
    %354 = tpu.memref_slice %arg4[%c50_i32, %c0_i32_339] : memref<64x128xf32, #tpu.memory_space<vmem>> -> memref<1x128xf32, #tpu.memory_space<vmem>>
    %355 = tpu.memref_slice %arg5[%c0_i32_337] : memref<1x!tpu.dma_semaphore, #tpu.memory_space<semaphore_mem>> -> memref<1x!tpu.dma_semaphore, #tpu.memory_space<semaphore_mem>>
    %356 = tpu.memref_squeeze %355 : memref<1x!tpu.dma_semaphore, #tpu.memory_space<semaphore_mem>> -> memref<!tpu.dma_semaphore, #tpu.memory_space<semaphore_mem>>
    tpu.enqueue_dma source(%353 : memref<1x128xf32, #tpu.memory_space<any>>) target(%354 : memref<1x128xf32, #tpu.memory_space<vmem>>) target_semaphore(%356 : memref<!tpu.dma_semaphore, #tpu.memory_space<semaphore_mem>>)
    %c3_340 = arith.constant 3 : index
    %c3_341 = arith.constant 3 : index
    %357 = memref.load %arg1[%c3_340, %c3_341] : memref<16x4xi32, #tpu.memory_space<smem>>
    %c0_i32_342 = arith.constant 0 : i32
    %c2047_i32_343 = arith.constant 2047 : i32
    %358 = arith.maxsi %c0_i32_342, %357 : i32
    %359 = arith.minsi %c2047_i32_343, %358 : i32
    %c0_i32_344 = arith.constant 0 : i32
    %c0_i32_345 = arith.constant 0 : i32
    %360 = tpu.memref_slice %arg2[%359, %c0_i32_345] : memref<2048x128xf32, #tpu.memory_space<any>> -> memref<1x128xf32, #tpu.memory_space<any>>
    %c51_i32 = arith.constant 51 : i32
    %c0_i32_346 = arith.constant 0 : i32
    %361 = tpu.memref_slice %arg4[%c51_i32, %c0_i32_346] : memref<64x128xf32, #tpu.memory_space<vmem>> -> memref<1x128xf32, #tpu.memory_space<vmem>>
    %362 = tpu.memref_slice %arg5[%c0_i32_344] : memref<1x!tpu.dma_semaphore, #tpu.memory_space<semaphore_mem>> -> memref<1x!tpu.dma_semaphore, #tpu.memory_space<semaphore_mem>>
    %363 = tpu.memref_squeeze %362 : memref<1x!tpu.dma_semaphore, #tpu.memory_space<semaphore_mem>> -> memref<!tpu.dma_semaphore, #tpu.memory_space<semaphore_mem>>
    tpu.enqueue_dma source(%360 : memref<1x128xf32, #tpu.memory_space<any>>) target(%361 : memref<1x128xf32, #tpu.memory_space<vmem>>) target_semaphore(%363 : memref<!tpu.dma_semaphore, #tpu.memory_space<semaphore_mem>>)
    %c4_347 = arith.constant 4 : index
    %c3_348 = arith.constant 3 : index
    %364 = memref.load %arg1[%c4_347, %c3_348] : memref<16x4xi32, #tpu.memory_space<smem>>
    %c0_i32_349 = arith.constant 0 : i32
    %c2047_i32_350 = arith.constant 2047 : i32
    %365 = arith.maxsi %c0_i32_349, %364 : i32
    %366 = arith.minsi %c2047_i32_350, %365 : i32
    %c0_i32_351 = arith.constant 0 : i32
    %c0_i32_352 = arith.constant 0 : i32
    %367 = tpu.memref_slice %arg2[%366, %c0_i32_352] : memref<2048x128xf32, #tpu.memory_space<any>> -> memref<1x128xf32, #tpu.memory_space<any>>
    %c52_i32 = arith.constant 52 : i32
    %c0_i32_353 = arith.constant 0 : i32
    %368 = tpu.memref_slice %arg4[%c52_i32, %c0_i32_353] : memref<64x128xf32, #tpu.memory_space<vmem>> -> memref<1x128xf32, #tpu.memory_space<vmem>>
    %369 = tpu.memref_slice %arg5[%c0_i32_351] : memref<1x!tpu.dma_semaphore, #tpu.memory_space<semaphore_mem>> -> memref<1x!tpu.dma_semaphore, #tpu.memory_space<semaphore_mem>>
    %370 = tpu.memref_squeeze %369 : memref<1x!tpu.dma_semaphore, #tpu.memory_space<semaphore_mem>> -> memref<!tpu.dma_semaphore, #tpu.memory_space<semaphore_mem>>
    tpu.enqueue_dma source(%367 : memref<1x128xf32, #tpu.memory_space<any>>) target(%368 : memref<1x128xf32, #tpu.memory_space<vmem>>) target_semaphore(%370 : memref<!tpu.dma_semaphore, #tpu.memory_space<semaphore_mem>>)
    %c5_354 = arith.constant 5 : index
    %c3_355 = arith.constant 3 : index
    %371 = memref.load %arg1[%c5_354, %c3_355] : memref<16x4xi32, #tpu.memory_space<smem>>
    %c0_i32_356 = arith.constant 0 : i32
    %c2047_i32_357 = arith.constant 2047 : i32
    %372 = arith.maxsi %c0_i32_356, %371 : i32
    %373 = arith.minsi %c2047_i32_357, %372 : i32
    %c0_i32_358 = arith.constant 0 : i32
    %c0_i32_359 = arith.constant 0 : i32
    %374 = tpu.memref_slice %arg2[%373, %c0_i32_359] : memref<2048x128xf32, #tpu.memory_space<any>> -> memref<1x128xf32, #tpu.memory_space<any>>
    %c53_i32 = arith.constant 53 : i32
    %c0_i32_360 = arith.constant 0 : i32
    %375 = tpu.memref_slice %arg4[%c53_i32, %c0_i32_360] : memref<64x128xf32, #tpu.memory_space<vmem>> -> memref<1x128xf32, #tpu.memory_space<vmem>>
    %376 = tpu.memref_slice %arg5[%c0_i32_358] : memref<1x!tpu.dma_semaphore, #tpu.memory_space<semaphore_mem>> -> memref<1x!tpu.dma_semaphore, #tpu.memory_space<semaphore_mem>>
    %377 = tpu.memref_squeeze %376 : memref<1x!tpu.dma_semaphore, #tpu.memory_space<semaphore_mem>> -> memref<!tpu.dma_semaphore, #tpu.memory_space<semaphore_mem>>
    tpu.enqueue_dma source(%374 : memref<1x128xf32, #tpu.memory_space<any>>) target(%375 : memref<1x128xf32, #tpu.memory_space<vmem>>) target_semaphore(%377 : memref<!tpu.dma_semaphore, #tpu.memory_space<semaphore_mem>>)
    %c6_361 = arith.constant 6 : index
    %c3_362 = arith.constant 3 : index
    %378 = memref.load %arg1[%c6_361, %c3_362] : memref<16x4xi32, #tpu.memory_space<smem>>
    %c0_i32_363 = arith.constant 0 : i32
    %c2047_i32_364 = arith.constant 2047 : i32
    %379 = arith.maxsi %c0_i32_363, %378 : i32
    %380 = arith.minsi %c2047_i32_364, %379 : i32
    %c0_i32_365 = arith.constant 0 : i32
    %c0_i32_366 = arith.constant 0 : i32
    %381 = tpu.memref_slice %arg2[%380, %c0_i32_366] : memref<2048x128xf32, #tpu.memory_space<any>> -> memref<1x128xf32, #tpu.memory_space<any>>
    %c54_i32 = arith.constant 54 : i32
    %c0_i32_367 = arith.constant 0 : i32
    %382 = tpu.memref_slice %arg4[%c54_i32, %c0_i32_367] : memref<64x128xf32, #tpu.memory_space<vmem>> -> memref<1x128xf32, #tpu.memory_space<vmem>>
    %383 = tpu.memref_slice %arg5[%c0_i32_365] : memref<1x!tpu.dma_semaphore, #tpu.memory_space<semaphore_mem>> -> memref<1x!tpu.dma_semaphore, #tpu.memory_space<semaphore_mem>>
    %384 = tpu.memref_squeeze %383 : memref<1x!tpu.dma_semaphore, #tpu.memory_space<semaphore_mem>> -> memref<!tpu.dma_semaphore, #tpu.memory_space<semaphore_mem>>
    tpu.enqueue_dma source(%381 : memref<1x128xf32, #tpu.memory_space<any>>) target(%382 : memref<1x128xf32, #tpu.memory_space<vmem>>) target_semaphore(%384 : memref<!tpu.dma_semaphore, #tpu.memory_space<semaphore_mem>>)
    %c7_368 = arith.constant 7 : index
    %c3_369 = arith.constant 3 : index
    %385 = memref.load %arg1[%c7_368, %c3_369] : memref<16x4xi32, #tpu.memory_space<smem>>
    %c0_i32_370 = arith.constant 0 : i32
    %c2047_i32_371 = arith.constant 2047 : i32
    %386 = arith.maxsi %c0_i32_370, %385 : i32
    %387 = arith.minsi %c2047_i32_371, %386 : i32
    %c0_i32_372 = arith.constant 0 : i32
    %c0_i32_373 = arith.constant 0 : i32
    %388 = tpu.memref_slice %arg2[%387, %c0_i32_373] : memref<2048x128xf32, #tpu.memory_space<any>> -> memref<1x128xf32, #tpu.memory_space<any>>
    %c55_i32 = arith.constant 55 : i32
    %c0_i32_374 = arith.constant 0 : i32
    %389 = tpu.memref_slice %arg4[%c55_i32, %c0_i32_374] : memref<64x128xf32, #tpu.memory_space<vmem>> -> memref<1x128xf32, #tpu.memory_space<vmem>>
    %390 = tpu.memref_slice %arg5[%c0_i32_372] : memref<1x!tpu.dma_semaphore, #tpu.memory_space<semaphore_mem>> -> memref<1x!tpu.dma_semaphore, #tpu.memory_space<semaphore_mem>>
    %391 = tpu.memref_squeeze %390 : memref<1x!tpu.dma_semaphore, #tpu.memory_space<semaphore_mem>> -> memref<!tpu.dma_semaphore, #tpu.memory_space<semaphore_mem>>
    tpu.enqueue_dma source(%388 : memref<1x128xf32, #tpu.memory_space<any>>) target(%389 : memref<1x128xf32, #tpu.memory_space<vmem>>) target_semaphore(%391 : memref<!tpu.dma_semaphore, #tpu.memory_space<semaphore_mem>>)
    %c8_375 = arith.constant 8 : index
    %c3_376 = arith.constant 3 : index
    %392 = memref.load %arg1[%c8_375, %c3_376] : memref<16x4xi32, #tpu.memory_space<smem>>
    %c0_i32_377 = arith.constant 0 : i32
    %c2047_i32_378 = arith.constant 2047 : i32
    %393 = arith.maxsi %c0_i32_377, %392 : i32
    %394 = arith.minsi %c2047_i32_378, %393 : i32
    %c0_i32_379 = arith.constant 0 : i32
    %c0_i32_380 = arith.constant 0 : i32
    %395 = tpu.memref_slice %arg2[%394, %c0_i32_380] : memref<2048x128xf32, #tpu.memory_space<any>> -> memref<1x128xf32, #tpu.memory_space<any>>
    %c56_i32 = arith.constant 56 : i32
    %c0_i32_381 = arith.constant 0 : i32
    %396 = tpu.memref_slice %arg4[%c56_i32, %c0_i32_381] : memref<64x128xf32, #tpu.memory_space<vmem>> -> memref<1x128xf32, #tpu.memory_space<vmem>>
    %397 = tpu.memref_slice %arg5[%c0_i32_379] : memref<1x!tpu.dma_semaphore, #tpu.memory_space<semaphore_mem>> -> memref<1x!tpu.dma_semaphore, #tpu.memory_space<semaphore_mem>>
    %398 = tpu.memref_squeeze %397 : memref<1x!tpu.dma_semaphore, #tpu.memory_space<semaphore_mem>> -> memref<!tpu.dma_semaphore, #tpu.memory_space<semaphore_mem>>
    tpu.enqueue_dma source(%395 : memref<1x128xf32, #tpu.memory_space<any>>) target(%396 : memref<1x128xf32, #tpu.memory_space<vmem>>) target_semaphore(%398 : memref<!tpu.dma_semaphore, #tpu.memory_space<semaphore_mem>>)
    %c9_382 = arith.constant 9 : index
    %c3_383 = arith.constant 3 : index
    %399 = memref.load %arg1[%c9_382, %c3_383] : memref<16x4xi32, #tpu.memory_space<smem>>
    %c0_i32_384 = arith.constant 0 : i32
    %c2047_i32_385 = arith.constant 2047 : i32
    %400 = arith.maxsi %c0_i32_384, %399 : i32
    %401 = arith.minsi %c2047_i32_385, %400 : i32
    %c0_i32_386 = arith.constant 0 : i32
    %c0_i32_387 = arith.constant 0 : i32
    %402 = tpu.memref_slice %arg2[%401, %c0_i32_387] : memref<2048x128xf32, #tpu.memory_space<any>> -> memref<1x128xf32, #tpu.memory_space<any>>
    %c57_i32 = arith.constant 57 : i32
    %c0_i32_388 = arith.constant 0 : i32
    %403 = tpu.memref_slice %arg4[%c57_i32, %c0_i32_388] : memref<64x128xf32, #tpu.memory_space<vmem>> -> memref<1x128xf32, #tpu.memory_space<vmem>>
    %404 = tpu.memref_slice %arg5[%c0_i32_386] : memref<1x!tpu.dma_semaphore, #tpu.memory_space<semaphore_mem>> -> memref<1x!tpu.dma_semaphore, #tpu.memory_space<semaphore_mem>>
    %405 = tpu.memref_squeeze %404 : memref<1x!tpu.dma_semaphore, #tpu.memory_space<semaphore_mem>> -> memref<!tpu.dma_semaphore, #tpu.memory_space<semaphore_mem>>
    tpu.enqueue_dma source(%402 : memref<1x128xf32, #tpu.memory_space<any>>) target(%403 : memref<1x128xf32, #tpu.memory_space<vmem>>) target_semaphore(%405 : memref<!tpu.dma_semaphore, #tpu.memory_space<semaphore_mem>>)
    %c10_389 = arith.constant 10 : index
    %c3_390 = arith.constant 3 : index
    %406 = memref.load %arg1[%c10_389, %c3_390] : memref<16x4xi32, #tpu.memory_space<smem>>
    %c0_i32_391 = arith.constant 0 : i32
    %c2047_i32_392 = arith.constant 2047 : i32
    %407 = arith.maxsi %c0_i32_391, %406 : i32
    %408 = arith.minsi %c2047_i32_392, %407 : i32
    %c0_i32_393 = arith.constant 0 : i32
    %c0_i32_394 = arith.constant 0 : i32
    %409 = tpu.memref_slice %arg2[%408, %c0_i32_394] : memref<2048x128xf32, #tpu.memory_space<any>> -> memref<1x128xf32, #tpu.memory_space<any>>
    %c58_i32 = arith.constant 58 : i32
    %c0_i32_395 = arith.constant 0 : i32
    %410 = tpu.memref_slice %arg4[%c58_i32, %c0_i32_395] : memref<64x128xf32, #tpu.memory_space<vmem>> -> memref<1x128xf32, #tpu.memory_space<vmem>>
    %411 = tpu.memref_slice %arg5[%c0_i32_393] : memref<1x!tpu.dma_semaphore, #tpu.memory_space<semaphore_mem>> -> memref<1x!tpu.dma_semaphore, #tpu.memory_space<semaphore_mem>>
    %412 = tpu.memref_squeeze %411 : memref<1x!tpu.dma_semaphore, #tpu.memory_space<semaphore_mem>> -> memref<!tpu.dma_semaphore, #tpu.memory_space<semaphore_mem>>
    tpu.enqueue_dma source(%409 : memref<1x128xf32, #tpu.memory_space<any>>) target(%410 : memref<1x128xf32, #tpu.memory_space<vmem>>) target_semaphore(%412 : memref<!tpu.dma_semaphore, #tpu.memory_space<semaphore_mem>>)
    %c11_396 = arith.constant 11 : index
    %c3_397 = arith.constant 3 : index
    %413 = memref.load %arg1[%c11_396, %c3_397] : memref<16x4xi32, #tpu.memory_space<smem>>
    %c0_i32_398 = arith.constant 0 : i32
    %c2047_i32_399 = arith.constant 2047 : i32
    %414 = arith.maxsi %c0_i32_398, %413 : i32
    %415 = arith.minsi %c2047_i32_399, %414 : i32
    %c0_i32_400 = arith.constant 0 : i32
    %c0_i32_401 = arith.constant 0 : i32
    %416 = tpu.memref_slice %arg2[%415, %c0_i32_401] : memref<2048x128xf32, #tpu.memory_space<any>> -> memref<1x128xf32, #tpu.memory_space<any>>
    %c59_i32 = arith.constant 59 : i32
    %c0_i32_402 = arith.constant 0 : i32
    %417 = tpu.memref_slice %arg4[%c59_i32, %c0_i32_402] : memref<64x128xf32, #tpu.memory_space<vmem>> -> memref<1x128xf32, #tpu.memory_space<vmem>>
    %418 = tpu.memref_slice %arg5[%c0_i32_400] : memref<1x!tpu.dma_semaphore, #tpu.memory_space<semaphore_mem>> -> memref<1x!tpu.dma_semaphore, #tpu.memory_space<semaphore_mem>>
    %419 = tpu.memref_squeeze %418 : memref<1x!tpu.dma_semaphore, #tpu.memory_space<semaphore_mem>> -> memref<!tpu.dma_semaphore, #tpu.memory_space<semaphore_mem>>
    tpu.enqueue_dma source(%416 : memref<1x128xf32, #tpu.memory_space<any>>) target(%417 : memref<1x128xf32, #tpu.memory_space<vmem>>) target_semaphore(%419 : memref<!tpu.dma_semaphore, #tpu.memory_space<semaphore_mem>>)
    %c12_403 = arith.constant 12 : index
    %c3_404 = arith.constant 3 : index
    %420 = memref.load %arg1[%c12_403, %c3_404] : memref<16x4xi32, #tpu.memory_space<smem>>
    %c0_i32_405 = arith.constant 0 : i32
    %c2047_i32_406 = arith.constant 2047 : i32
    %421 = arith.maxsi %c0_i32_405, %420 : i32
    %422 = arith.minsi %c2047_i32_406, %421 : i32
    %c0_i32_407 = arith.constant 0 : i32
    %c0_i32_408 = arith.constant 0 : i32
    %423 = tpu.memref_slice %arg2[%422, %c0_i32_408] : memref<2048x128xf32, #tpu.memory_space<any>> -> memref<1x128xf32, #tpu.memory_space<any>>
    %c60_i32 = arith.constant 60 : i32
    %c0_i32_409 = arith.constant 0 : i32
    %424 = tpu.memref_slice %arg4[%c60_i32, %c0_i32_409] : memref<64x128xf32, #tpu.memory_space<vmem>> -> memref<1x128xf32, #tpu.memory_space<vmem>>
    %425 = tpu.memref_slice %arg5[%c0_i32_407] : memref<1x!tpu.dma_semaphore, #tpu.memory_space<semaphore_mem>> -> memref<1x!tpu.dma_semaphore, #tpu.memory_space<semaphore_mem>>
    %426 = tpu.memref_squeeze %425 : memref<1x!tpu.dma_semaphore, #tpu.memory_space<semaphore_mem>> -> memref<!tpu.dma_semaphore, #tpu.memory_space<semaphore_mem>>
    tpu.enqueue_dma source(%423 : memref<1x128xf32, #tpu.memory_space<any>>) target(%424 : memref<1x128xf32, #tpu.memory_space<vmem>>) target_semaphore(%426 : memref<!tpu.dma_semaphore, #tpu.memory_space<semaphore_mem>>)
    %c13_410 = arith.constant 13 : index
    %c3_411 = arith.constant 3 : index
    %427 = memref.load %arg1[%c13_410, %c3_411] : memref<16x4xi32, #tpu.memory_space<smem>>
    %c0_i32_412 = arith.constant 0 : i32
    %c2047_i32_413 = arith.constant 2047 : i32
    %428 = arith.maxsi %c0_i32_412, %427 : i32
    %429 = arith.minsi %c2047_i32_413, %428 : i32
    %c0_i32_414 = arith.constant 0 : i32
    %c0_i32_415 = arith.constant 0 : i32
    %430 = tpu.memref_slice %arg2[%429, %c0_i32_415] : memref<2048x128xf32, #tpu.memory_space<any>> -> memref<1x128xf32, #tpu.memory_space<any>>
    %c61_i32 = arith.constant 61 : i32
    %c0_i32_416 = arith.constant 0 : i32
    %431 = tpu.memref_slice %arg4[%c61_i32, %c0_i32_416] : memref<64x128xf32, #tpu.memory_space<vmem>> -> memref<1x128xf32, #tpu.memory_space<vmem>>
    %432 = tpu.memref_slice %arg5[%c0_i32_414] : memref<1x!tpu.dma_semaphore, #tpu.memory_space<semaphore_mem>> -> memref<1x!tpu.dma_semaphore, #tpu.memory_space<semaphore_mem>>
    %433 = tpu.memref_squeeze %432 : memref<1x!tpu.dma_semaphore, #tpu.memory_space<semaphore_mem>> -> memref<!tpu.dma_semaphore, #tpu.memory_space<semaphore_mem>>
    tpu.enqueue_dma source(%430 : memref<1x128xf32, #tpu.memory_space<any>>) target(%431 : memref<1x128xf32, #tpu.memory_space<vmem>>) target_semaphore(%433 : memref<!tpu.dma_semaphore, #tpu.memory_space<semaphore_mem>>)
    %c14_417 = arith.constant 14 : index
    %c3_418 = arith.constant 3 : index
    %434 = memref.load %arg1[%c14_417, %c3_418] : memref<16x4xi32, #tpu.memory_space<smem>>
    %c0_i32_419 = arith.constant 0 : i32
    %c2047_i32_420 = arith.constant 2047 : i32
    %435 = arith.maxsi %c0_i32_419, %434 : i32
    %436 = arith.minsi %c2047_i32_420, %435 : i32
    %c0_i32_421 = arith.constant 0 : i32
    %c0_i32_422 = arith.constant 0 : i32
    %437 = tpu.memref_slice %arg2[%436, %c0_i32_422] : memref<2048x128xf32, #tpu.memory_space<any>> -> memref<1x128xf32, #tpu.memory_space<any>>
    %c62_i32 = arith.constant 62 : i32
    %c0_i32_423 = arith.constant 0 : i32
    %438 = tpu.memref_slice %arg4[%c62_i32, %c0_i32_423] : memref<64x128xf32, #tpu.memory_space<vmem>> -> memref<1x128xf32, #tpu.memory_space<vmem>>
    %439 = tpu.memref_slice %arg5[%c0_i32_421] : memref<1x!tpu.dma_semaphore, #tpu.memory_space<semaphore_mem>> -> memref<1x!tpu.dma_semaphore, #tpu.memory_space<semaphore_mem>>
    %440 = tpu.memref_squeeze %439 : memref<1x!tpu.dma_semaphore, #tpu.memory_space<semaphore_mem>> -> memref<!tpu.dma_semaphore, #tpu.memory_space<semaphore_mem>>
    tpu.enqueue_dma source(%437 : memref<1x128xf32, #tpu.memory_space<any>>) target(%438 : memref<1x128xf32, #tpu.memory_space<vmem>>) target_semaphore(%440 : memref<!tpu.dma_semaphore, #tpu.memory_space<semaphore_mem>>)
    %c15_424 = arith.constant 15 : index
    %c3_425 = arith.constant 3 : index
    %441 = memref.load %arg1[%c15_424, %c3_425] : memref<16x4xi32, #tpu.memory_space<smem>>
    %c0_i32_426 = arith.constant 0 : i32
    %c2047_i32_427 = arith.constant 2047 : i32
    %442 = arith.maxsi %c0_i32_426, %441 : i32
    %443 = arith.minsi %c2047_i32_427, %442 : i32
    %c0_i32_428 = arith.constant 0 : i32
    %c0_i32_429 = arith.constant 0 : i32
    %444 = tpu.memref_slice %arg2[%443, %c0_i32_429] : memref<2048x128xf32, #tpu.memory_space<any>> -> memref<1x128xf32, #tpu.memory_space<any>>
    %c63_i32 = arith.constant 63 : i32
    %c0_i32_430 = arith.constant 0 : i32
    %445 = tpu.memref_slice %arg4[%c63_i32, %c0_i32_430] : memref<64x128xf32, #tpu.memory_space<vmem>> -> memref<1x128xf32, #tpu.memory_space<vmem>>
    %446 = tpu.memref_slice %arg5[%c0_i32_428] : memref<1x!tpu.dma_semaphore, #tpu.memory_space<semaphore_mem>> -> memref<1x!tpu.dma_semaphore, #tpu.memory_space<semaphore_mem>>
    %447 = tpu.memref_squeeze %446 : memref<1x!tpu.dma_semaphore, #tpu.memory_space<semaphore_mem>> -> memref<!tpu.dma_semaphore, #tpu.memory_space<semaphore_mem>>
    tpu.enqueue_dma source(%444 : memref<1x128xf32, #tpu.memory_space<any>>) target(%445 : memref<1x128xf32, #tpu.memory_space<vmem>>) target_semaphore(%447 : memref<!tpu.dma_semaphore, #tpu.memory_space<semaphore_mem>>)
    %c0_i32_431 = arith.constant 0 : i32
    %c0_i32_432 = arith.constant 0 : i32
    %448 = tpu.memref_slice %arg2[%2, %c0_i32_432] : memref<2048x128xf32, #tpu.memory_space<any>> -> memref<1x128xf32, #tpu.memory_space<any>>
    %c0_i32_433 = arith.constant 0 : i32
    %c0_i32_434 = arith.constant 0 : i32
    %449 = tpu.memref_slice %arg4[%c0_i32_433, %c0_i32_434] : memref<64x128xf32, #tpu.memory_space<vmem>> -> memref<1x128xf32, #tpu.memory_space<vmem>>
    %450 = tpu.memref_slice %arg5[%c0_i32_431] : memref<1x!tpu.dma_semaphore, #tpu.memory_space<semaphore_mem>> -> memref<1x!tpu.dma_semaphore, #tpu.memory_space<semaphore_mem>>
    %451 = tpu.memref_squeeze %450 : memref<1x!tpu.dma_semaphore, #tpu.memory_space<semaphore_mem>> -> memref<!tpu.dma_semaphore, #tpu.memory_space<semaphore_mem>>
    tpu.wait_dma2 semaphore(%451 : memref<!tpu.dma_semaphore, #tpu.memory_space<semaphore_mem>>) src(%448 : memref<1x128xf32, #tpu.memory_space<any>>) dst(%449 : memref<1x128xf32, #tpu.memory_space<vmem>>)
    %c0_i32_435 = arith.constant 0 : i32
    %c0_i32_436 = arith.constant 0 : i32
    %452 = tpu.memref_slice %arg2[%9, %c0_i32_436] : memref<2048x128xf32, #tpu.memory_space<any>> -> memref<1x128xf32, #tpu.memory_space<any>>
    %c1_i32_437 = arith.constant 1 : i32
    %c0_i32_438 = arith.constant 0 : i32
    %453 = tpu.memref_slice %arg4[%c1_i32_437, %c0_i32_438] : memref<64x128xf32, #tpu.memory_space<vmem>> -> memref<1x128xf32, #tpu.memory_space<vmem>>
    %454 = tpu.memref_slice %arg5[%c0_i32_435] : memref<1x!tpu.dma_semaphore, #tpu.memory_space<semaphore_mem>> -> memref<1x!tpu.dma_semaphore, #tpu.memory_space<semaphore_mem>>
    %455 = tpu.memref_squeeze %454 : memref<1x!tpu.dma_semaphore, #tpu.memory_space<semaphore_mem>> -> memref<!tpu.dma_semaphore, #tpu.memory_space<semaphore_mem>>
    tpu.wait_dma2 semaphore(%455 : memref<!tpu.dma_semaphore, #tpu.memory_space<semaphore_mem>>) src(%452 : memref<1x128xf32, #tpu.memory_space<any>>) dst(%453 : memref<1x128xf32, #tpu.memory_space<vmem>>)
    %c0_i32_439 = arith.constant 0 : i32
    %c0_i32_440 = arith.constant 0 : i32
    %456 = tpu.memref_slice %arg2[%16, %c0_i32_440] : memref<2048x128xf32, #tpu.memory_space<any>> -> memref<1x128xf32, #tpu.memory_space<any>>
    %c2_i32_441 = arith.constant 2 : i32
    %c0_i32_442 = arith.constant 0 : i32
    %457 = tpu.memref_slice %arg4[%c2_i32_441, %c0_i32_442] : memref<64x128xf32, #tpu.memory_space<vmem>> -> memref<1x128xf32, #tpu.memory_space<vmem>>
    %458 = tpu.memref_slice %arg5[%c0_i32_439] : memref<1x!tpu.dma_semaphore, #tpu.memory_space<semaphore_mem>> -> memref<1x!tpu.dma_semaphore, #tpu.memory_space<semaphore_mem>>
    %459 = tpu.memref_squeeze %458 : memref<1x!tpu.dma_semaphore, #tpu.memory_space<semaphore_mem>> -> memref<!tpu.dma_semaphore, #tpu.memory_space<semaphore_mem>>
    tpu.wait_dma2 semaphore(%459 : memref<!tpu.dma_semaphore, #tpu.memory_space<semaphore_mem>>) src(%456 : memref<1x128xf32, #tpu.memory_space<any>>) dst(%457 : memref<1x128xf32, #tpu.memory_space<vmem>>)
    %c0_i32_443 = arith.constant 0 : i32
    %c0_i32_444 = arith.constant 0 : i32
    %460 = tpu.memref_slice %arg2[%23, %c0_i32_444] : memref<2048x128xf32, #tpu.memory_space<any>> -> memref<1x128xf32, #tpu.memory_space<any>>
    %c3_i32_445 = arith.constant 3 : i32
    %c0_i32_446 = arith.constant 0 : i32
    %461 = tpu.memref_slice %arg4[%c3_i32_445, %c0_i32_446] : memref<64x128xf32, #tpu.memory_space<vmem>> -> memref<1x128xf32, #tpu.memory_space<vmem>>
    %462 = tpu.memref_slice %arg5[%c0_i32_443] : memref<1x!tpu.dma_semaphore, #tpu.memory_space<semaphore_mem>> -> memref<1x!tpu.dma_semaphore, #tpu.memory_space<semaphore_mem>>
    %463 = tpu.memref_squeeze %462 : memref<1x!tpu.dma_semaphore, #tpu.memory_space<semaphore_mem>> -> memref<!tpu.dma_semaphore, #tpu.memory_space<semaphore_mem>>
    tpu.wait_dma2 semaphore(%463 : memref<!tpu.dma_semaphore, #tpu.memory_space<semaphore_mem>>) src(%460 : memref<1x128xf32, #tpu.memory_space<any>>) dst(%461 : memref<1x128xf32, #tpu.memory_space<vmem>>)
    %c0_i32_447 = arith.constant 0 : i32
    %c0_i32_448 = arith.constant 0 : i32
    %464 = tpu.memref_slice %arg2[%30, %c0_i32_448] : memref<2048x128xf32, #tpu.memory_space<any>> -> memref<1x128xf32, #tpu.memory_space<any>>
    %c4_i32_449 = arith.constant 4 : i32
    %c0_i32_450 = arith.constant 0 : i32
    %465 = tpu.memref_slice %arg4[%c4_i32_449, %c0_i32_450] : memref<64x128xf32, #tpu.memory_space<vmem>> -> memref<1x128xf32, #tpu.memory_space<vmem>>
    %466 = tpu.memref_slice %arg5[%c0_i32_447] : memref<1x!tpu.dma_semaphore, #tpu.memory_space<semaphore_mem>> -> memref<1x!tpu.dma_semaphore, #tpu.memory_space<semaphore_mem>>
    %467 = tpu.memref_squeeze %466 : memref<1x!tpu.dma_semaphore, #tpu.memory_space<semaphore_mem>> -> memref<!tpu.dma_semaphore, #tpu.memory_space<semaphore_mem>>
    tpu.wait_dma2 semaphore(%467 : memref<!tpu.dma_semaphore, #tpu.memory_space<semaphore_mem>>) src(%464 : memref<1x128xf32, #tpu.memory_space<any>>) dst(%465 : memref<1x128xf32, #tpu.memory_space<vmem>>)
    %c0_i32_451 = arith.constant 0 : i32
    %c0_i32_452 = arith.constant 0 : i32
    %468 = tpu.memref_slice %arg2[%37, %c0_i32_452] : memref<2048x128xf32, #tpu.memory_space<any>> -> memref<1x128xf32, #tpu.memory_space<any>>
    %c5_i32_453 = arith.constant 5 : i32
    %c0_i32_454 = arith.constant 0 : i32
    %469 = tpu.memref_slice %arg4[%c5_i32_453, %c0_i32_454] : memref<64x128xf32, #tpu.memory_space<vmem>> -> memref<1x128xf32, #tpu.memory_space<vmem>>
    %470 = tpu.memref_slice %arg5[%c0_i32_451] : memref<1x!tpu.dma_semaphore, #tpu.memory_space<semaphore_mem>> -> memref<1x!tpu.dma_semaphore, #tpu.memory_space<semaphore_mem>>
    %471 = tpu.memref_squeeze %470 : memref<1x!tpu.dma_semaphore, #tpu.memory_space<semaphore_mem>> -> memref<!tpu.dma_semaphore, #tpu.memory_space<semaphore_mem>>
    tpu.wait_dma2 semaphore(%471 : memref<!tpu.dma_semaphore, #tpu.memory_space<semaphore_mem>>) src(%468 : memref<1x128xf32, #tpu.memory_space<any>>) dst(%469 : memref<1x128xf32, #tpu.memory_space<vmem>>)
    %c0_i32_455 = arith.constant 0 : i32
    %c0_i32_456 = arith.constant 0 : i32
    %472 = tpu.memref_slice %arg2[%44, %c0_i32_456] : memref<2048x128xf32, #tpu.memory_space<any>> -> memref<1x128xf32, #tpu.memory_space<any>>
    %c6_i32_457 = arith.constant 6 : i32
    %c0_i32_458 = arith.constant 0 : i32
    %473 = tpu.memref_slice %arg4[%c6_i32_457, %c0_i32_458] : memref<64x128xf32, #tpu.memory_space<vmem>> -> memref<1x128xf32, #tpu.memory_space<vmem>>
    %474 = tpu.memref_slice %arg5[%c0_i32_455] : memref<1x!tpu.dma_semaphore, #tpu.memory_space<semaphore_mem>> -> memref<1x!tpu.dma_semaphore, #tpu.memory_space<semaphore_mem>>
    %475 = tpu.memref_squeeze %474 : memref<1x!tpu.dma_semaphore, #tpu.memory_space<semaphore_mem>> -> memref<!tpu.dma_semaphore, #tpu.memory_space<semaphore_mem>>
    tpu.wait_dma2 semaphore(%475 : memref<!tpu.dma_semaphore, #tpu.memory_space<semaphore_mem>>) src(%472 : memref<1x128xf32, #tpu.memory_space<any>>) dst(%473 : memref<1x128xf32, #tpu.memory_space<vmem>>)
    %c0_i32_459 = arith.constant 0 : i32
    %c0_i32_460 = arith.constant 0 : i32
    %476 = tpu.memref_slice %arg2[%51, %c0_i32_460] : memref<2048x128xf32, #tpu.memory_space<any>> -> memref<1x128xf32, #tpu.memory_space<any>>
    %c7_i32_461 = arith.constant 7 : i32
    %c0_i32_462 = arith.constant 0 : i32
    %477 = tpu.memref_slice %arg4[%c7_i32_461, %c0_i32_462] : memref<64x128xf32, #tpu.memory_space<vmem>> -> memref<1x128xf32, #tpu.memory_space<vmem>>
    %478 = tpu.memref_slice %arg5[%c0_i32_459] : memref<1x!tpu.dma_semaphore, #tpu.memory_space<semaphore_mem>> -> memref<1x!tpu.dma_semaphore, #tpu.memory_space<semaphore_mem>>
    %479 = tpu.memref_squeeze %478 : memref<1x!tpu.dma_semaphore, #tpu.memory_space<semaphore_mem>> -> memref<!tpu.dma_semaphore, #tpu.memory_space<semaphore_mem>>
    tpu.wait_dma2 semaphore(%479 : memref<!tpu.dma_semaphore, #tpu.memory_space<semaphore_mem>>) src(%476 : memref<1x128xf32, #tpu.memory_space<any>>) dst(%477 : memref<1x128xf32, #tpu.memory_space<vmem>>)
    %c0_i32_463 = arith.constant 0 : i32
    %c0_i32_464 = arith.constant 0 : i32
    %480 = tpu.memref_slice %arg2[%58, %c0_i32_464] : memref<2048x128xf32, #tpu.memory_space<any>> -> memref<1x128xf32, #tpu.memory_space<any>>
    %c8_i32_465 = arith.constant 8 : i32
    %c0_i32_466 = arith.constant 0 : i32
    %481 = tpu.memref_slice %arg4[%c8_i32_465, %c0_i32_466] : memref<64x128xf32, #tpu.memory_space<vmem>> -> memref<1x128xf32, #tpu.memory_space<vmem>>
    %482 = tpu.memref_slice %arg5[%c0_i32_463] : memref<1x!tpu.dma_semaphore, #tpu.memory_space<semaphore_mem>> -> memref<1x!tpu.dma_semaphore, #tpu.memory_space<semaphore_mem>>
    %483 = tpu.memref_squeeze %482 : memref<1x!tpu.dma_semaphore, #tpu.memory_space<semaphore_mem>> -> memref<!tpu.dma_semaphore, #tpu.memory_space<semaphore_mem>>
    tpu.wait_dma2 semaphore(%483 : memref<!tpu.dma_semaphore, #tpu.memory_space<semaphore_mem>>) src(%480 : memref<1x128xf32, #tpu.memory_space<any>>) dst(%481 : memref<1x128xf32, #tpu.memory_space<vmem>>)
    %c0_i32_467 = arith.constant 0 : i32
    %c0_i32_468 = arith.constant 0 : i32
    %484 = tpu.memref_slice %arg2[%65, %c0_i32_468] : memref<2048x128xf32, #tpu.memory_space<any>> -> memref<1x128xf32, #tpu.memory_space<any>>
    %c9_i32_469 = arith.constant 9 : i32
    %c0_i32_470 = arith.constant 0 : i32
    %485 = tpu.memref_slice %arg4[%c9_i32_469, %c0_i32_470] : memref<64x128xf32, #tpu.memory_space<vmem>> -> memref<1x128xf32, #tpu.memory_space<vmem>>
    %486 = tpu.memref_slice %arg5[%c0_i32_467] : memref<1x!tpu.dma_semaphore, #tpu.memory_space<semaphore_mem>> -> memref<1x!tpu.dma_semaphore, #tpu.memory_space<semaphore_mem>>
    %487 = tpu.memref_squeeze %486 : memref<1x!tpu.dma_semaphore, #tpu.memory_space<semaphore_mem>> -> memref<!tpu.dma_semaphore, #tpu.memory_space<semaphore_mem>>
    tpu.wait_dma2 semaphore(%487 : memref<!tpu.dma_semaphore, #tpu.memory_space<semaphore_mem>>) src(%484 : memref<1x128xf32, #tpu.memory_space<any>>) dst(%485 : memref<1x128xf32, #tpu.memory_space<vmem>>)
    %c0_i32_471 = arith.constant 0 : i32
    %c0_i32_472 = arith.constant 0 : i32
    %488 = tpu.memref_slice %arg2[%72, %c0_i32_472] : memref<2048x128xf32, #tpu.memory_space<any>> -> memref<1x128xf32, #tpu.memory_space<any>>
    %c10_i32_473 = arith.constant 10 : i32
    %c0_i32_474 = arith.constant 0 : i32
    %489 = tpu.memref_slice %arg4[%c10_i32_473, %c0_i32_474] : memref<64x128xf32, #tpu.memory_space<vmem>> -> memref<1x128xf32, #tpu.memory_space<vmem>>
    %490 = tpu.memref_slice %arg5[%c0_i32_471] : memref<1x!tpu.dma_semaphore, #tpu.memory_space<semaphore_mem>> -> memref<1x!tpu.dma_semaphore, #tpu.memory_space<semaphore_mem>>
    %491 = tpu.memref_squeeze %490 : memref<1x!tpu.dma_semaphore, #tpu.memory_space<semaphore_mem>> -> memref<!tpu.dma_semaphore, #tpu.memory_space<semaphore_mem>>
    tpu.wait_dma2 semaphore(%491 : memref<!tpu.dma_semaphore, #tpu.memory_space<semaphore_mem>>) src(%488 : memref<1x128xf32, #tpu.memory_space<any>>) dst(%489 : memref<1x128xf32, #tpu.memory_space<vmem>>)
    %c0_i32_475 = arith.constant 0 : i32
    %c0_i32_476 = arith.constant 0 : i32
    %492 = tpu.memref_slice %arg2[%79, %c0_i32_476] : memref<2048x128xf32, #tpu.memory_space<any>> -> memref<1x128xf32, #tpu.memory_space<any>>
    %c11_i32_477 = arith.constant 11 : i32
    %c0_i32_478 = arith.constant 0 : i32
    %493 = tpu.memref_slice %arg4[%c11_i32_477, %c0_i32_478] : memref<64x128xf32, #tpu.memory_space<vmem>> -> memref<1x128xf32, #tpu.memory_space<vmem>>
    %494 = tpu.memref_slice %arg5[%c0_i32_475] : memref<1x!tpu.dma_semaphore, #tpu.memory_space<semaphore_mem>> -> memref<1x!tpu.dma_semaphore, #tpu.memory_space<semaphore_mem>>
    %495 = tpu.memref_squeeze %494 : memref<1x!tpu.dma_semaphore, #tpu.memory_space<semaphore_mem>> -> memref<!tpu.dma_semaphore, #tpu.memory_space<semaphore_mem>>
    tpu.wait_dma2 semaphore(%495 : memref<!tpu.dma_semaphore, #tpu.memory_space<semaphore_mem>>) src(%492 : memref<1x128xf32, #tpu.memory_space<any>>) dst(%493 : memref<1x128xf32, #tpu.memory_space<vmem>>)
    %c0_i32_479 = arith.constant 0 : i32
    %c0_i32_480 = arith.constant 0 : i32
    %496 = tpu.memref_slice %arg2[%86, %c0_i32_480] : memref<2048x128xf32, #tpu.memory_space<any>> -> memref<1x128xf32, #tpu.memory_space<any>>
    %c12_i32_481 = arith.constant 12 : i32
    %c0_i32_482 = arith.constant 0 : i32
    %497 = tpu.memref_slice %arg4[%c12_i32_481, %c0_i32_482] : memref<64x128xf32, #tpu.memory_space<vmem>> -> memref<1x128xf32, #tpu.memory_space<vmem>>
    %498 = tpu.memref_slice %arg5[%c0_i32_479] : memref<1x!tpu.dma_semaphore, #tpu.memory_space<semaphore_mem>> -> memref<1x!tpu.dma_semaphore, #tpu.memory_space<semaphore_mem>>
    %499 = tpu.memref_squeeze %498 : memref<1x!tpu.dma_semaphore, #tpu.memory_space<semaphore_mem>> -> memref<!tpu.dma_semaphore, #tpu.memory_space<semaphore_mem>>
    tpu.wait_dma2 semaphore(%499 : memref<!tpu.dma_semaphore, #tpu.memory_space<semaphore_mem>>) src(%496 : memref<1x128xf32, #tpu.memory_space<any>>) dst(%497 : memref<1x128xf32, #tpu.memory_space<vmem>>)
    %c0_i32_483 = arith.constant 0 : i32
    %c0_i32_484 = arith.constant 0 : i32
    %500 = tpu.memref_slice %arg2[%93, %c0_i32_484] : memref<2048x128xf32, #tpu.memory_space<any>> -> memref<1x128xf32, #tpu.memory_space<any>>
    %c13_i32_485 = arith.constant 13 : i32
    %c0_i32_486 = arith.constant 0 : i32
    %501 = tpu.memref_slice %arg4[%c13_i32_485, %c0_i32_486] : memref<64x128xf32, #tpu.memory_space<vmem>> -> memref<1x128xf32, #tpu.memory_space<vmem>>
    %502 = tpu.memref_slice %arg5[%c0_i32_483] : memref<1x!tpu.dma_semaphore, #tpu.memory_space<semaphore_mem>> -> memref<1x!tpu.dma_semaphore, #tpu.memory_space<semaphore_mem>>
    %503 = tpu.memref_squeeze %502 : memref<1x!tpu.dma_semaphore, #tpu.memory_space<semaphore_mem>> -> memref<!tpu.dma_semaphore, #tpu.memory_space<semaphore_mem>>
    tpu.wait_dma2 semaphore(%503 : memref<!tpu.dma_semaphore, #tpu.memory_space<semaphore_mem>>) src(%500 : memref<1x128xf32, #tpu.memory_space<any>>) dst(%501 : memref<1x128xf32, #tpu.memory_space<vmem>>)
    %c0_i32_487 = arith.constant 0 : i32
    %c0_i32_488 = arith.constant 0 : i32
    %504 = tpu.memref_slice %arg2[%100, %c0_i32_488] : memref<2048x128xf32, #tpu.memory_space<any>> -> memref<1x128xf32, #tpu.memory_space<any>>
    %c14_i32_489 = arith.constant 14 : i32
    %c0_i32_490 = arith.constant 0 : i32
    %505 = tpu.memref_slice %arg4[%c14_i32_489, %c0_i32_490] : memref<64x128xf32, #tpu.memory_space<vmem>> -> memref<1x128xf32, #tpu.memory_space<vmem>>
    %506 = tpu.memref_slice %arg5[%c0_i32_487] : memref<1x!tpu.dma_semaphore, #tpu.memory_space<semaphore_mem>> -> memref<1x!tpu.dma_semaphore, #tpu.memory_space<semaphore_mem>>
    %507 = tpu.memref_squeeze %506 : memref<1x!tpu.dma_semaphore, #tpu.memory_space<semaphore_mem>> -> memref<!tpu.dma_semaphore, #tpu.memory_space<semaphore_mem>>
    tpu.wait_dma2 semaphore(%507 : memref<!tpu.dma_semaphore, #tpu.memory_space<semaphore_mem>>) src(%504 : memref<1x128xf32, #tpu.memory_space<any>>) dst(%505 : memref<1x128xf32, #tpu.memory_space<vmem>>)
    %c0_i32_491 = arith.constant 0 : i32
    %c0_i32_492 = arith.constant 0 : i32
    %508 = tpu.memref_slice %arg2[%107, %c0_i32_492] : memref<2048x128xf32, #tpu.memory_space<any>> -> memref<1x128xf32, #tpu.memory_space<any>>
    %c15_i32_493 = arith.constant 15 : i32
    %c0_i32_494 = arith.constant 0 : i32
    %509 = tpu.memref_slice %arg4[%c15_i32_493, %c0_i32_494] : memref<64x128xf32, #tpu.memory_space<vmem>> -> memref<1x128xf32, #tpu.memory_space<vmem>>
    %510 = tpu.memref_slice %arg5[%c0_i32_491] : memref<1x!tpu.dma_semaphore, #tpu.memory_space<semaphore_mem>> -> memref<1x!tpu.dma_semaphore, #tpu.memory_space<semaphore_mem>>
    %511 = tpu.memref_squeeze %510 : memref<1x!tpu.dma_semaphore, #tpu.memory_space<semaphore_mem>> -> memref<!tpu.dma_semaphore, #tpu.memory_space<semaphore_mem>>
    tpu.wait_dma2 semaphore(%511 : memref<!tpu.dma_semaphore, #tpu.memory_space<semaphore_mem>>) src(%508 : memref<1x128xf32, #tpu.memory_space<any>>) dst(%509 : memref<1x128xf32, #tpu.memory_space<vmem>>)
    %c0_i32_495 = arith.constant 0 : i32
    %c0_i32_496 = arith.constant 0 : i32
    %512 = tpu.memref_slice %arg2[%114, %c0_i32_496] : memref<2048x128xf32, #tpu.memory_space<any>> -> memref<1x128xf32, #tpu.memory_space<any>>
    %c16_i32_497 = arith.constant 16 : i32
    %c0_i32_498 = arith.constant 0 : i32
    %513 = tpu.memref_slice %arg4[%c16_i32_497, %c0_i32_498] : memref<64x128xf32, #tpu.memory_space<vmem>> -> memref<1x128xf32, #tpu.memory_space<vmem>>
    %514 = tpu.memref_slice %arg5[%c0_i32_495] : memref<1x!tpu.dma_semaphore, #tpu.memory_space<semaphore_mem>> -> memref<1x!tpu.dma_semaphore, #tpu.memory_space<semaphore_mem>>
    %515 = tpu.memref_squeeze %514 : memref<1x!tpu.dma_semaphore, #tpu.memory_space<semaphore_mem>> -> memref<!tpu.dma_semaphore, #tpu.memory_space<semaphore_mem>>
    tpu.wait_dma2 semaphore(%515 : memref<!tpu.dma_semaphore, #tpu.memory_space<semaphore_mem>>) src(%512 : memref<1x128xf32, #tpu.memory_space<any>>) dst(%513 : memref<1x128xf32, #tpu.memory_space<vmem>>)
    %c0_i32_499 = arith.constant 0 : i32
    %c0_i32_500 = arith.constant 0 : i32
    %516 = tpu.memref_slice %arg2[%121, %c0_i32_500] : memref<2048x128xf32, #tpu.memory_space<any>> -> memref<1x128xf32, #tpu.memory_space<any>>
    %c17_i32_501 = arith.constant 17 : i32
    %c0_i32_502 = arith.constant 0 : i32
    %517 = tpu.memref_slice %arg4[%c17_i32_501, %c0_i32_502] : memref<64x128xf32, #tpu.memory_space<vmem>> -> memref<1x128xf32, #tpu.memory_space<vmem>>
    %518 = tpu.memref_slice %arg5[%c0_i32_499] : memref<1x!tpu.dma_semaphore, #tpu.memory_space<semaphore_mem>> -> memref<1x!tpu.dma_semaphore, #tpu.memory_space<semaphore_mem>>
    %519 = tpu.memref_squeeze %518 : memref<1x!tpu.dma_semaphore, #tpu.memory_space<semaphore_mem>> -> memref<!tpu.dma_semaphore, #tpu.memory_space<semaphore_mem>>
    tpu.wait_dma2 semaphore(%519 : memref<!tpu.dma_semaphore, #tpu.memory_space<semaphore_mem>>) src(%516 : memref<1x128xf32, #tpu.memory_space<any>>) dst(%517 : memref<1x128xf32, #tpu.memory_space<vmem>>)
    %c0_i32_503 = arith.constant 0 : i32
    %c0_i32_504 = arith.constant 0 : i32
    %520 = tpu.memref_slice %arg2[%128, %c0_i32_504] : memref<2048x128xf32, #tpu.memory_space<any>> -> memref<1x128xf32, #tpu.memory_space<any>>
    %c18_i32_505 = arith.constant 18 : i32
    %c0_i32_506 = arith.constant 0 : i32
    %521 = tpu.memref_slice %arg4[%c18_i32_505, %c0_i32_506] : memref<64x128xf32, #tpu.memory_space<vmem>> -> memref<1x128xf32, #tpu.memory_space<vmem>>
    %522 = tpu.memref_slice %arg5[%c0_i32_503] : memref<1x!tpu.dma_semaphore, #tpu.memory_space<semaphore_mem>> -> memref<1x!tpu.dma_semaphore, #tpu.memory_space<semaphore_mem>>
    %523 = tpu.memref_squeeze %522 : memref<1x!tpu.dma_semaphore, #tpu.memory_space<semaphore_mem>> -> memref<!tpu.dma_semaphore, #tpu.memory_space<semaphore_mem>>
    tpu.wait_dma2 semaphore(%523 : memref<!tpu.dma_semaphore, #tpu.memory_space<semaphore_mem>>) src(%520 : memref<1x128xf32, #tpu.memory_space<any>>) dst(%521 : memref<1x128xf32, #tpu.memory_space<vmem>>)
    %c0_i32_507 = arith.constant 0 : i32
    %c0_i32_508 = arith.constant 0 : i32
    %524 = tpu.memref_slice %arg2[%135, %c0_i32_508] : memref<2048x128xf32, #tpu.memory_space<any>> -> memref<1x128xf32, #tpu.memory_space<any>>
    %c19_i32_509 = arith.constant 19 : i32
    %c0_i32_510 = arith.constant 0 : i32
    %525 = tpu.memref_slice %arg4[%c19_i32_509, %c0_i32_510] : memref<64x128xf32, #tpu.memory_space<vmem>> -> memref<1x128xf32, #tpu.memory_space<vmem>>
    %526 = tpu.memref_slice %arg5[%c0_i32_507] : memref<1x!tpu.dma_semaphore, #tpu.memory_space<semaphore_mem>> -> memref<1x!tpu.dma_semaphore, #tpu.memory_space<semaphore_mem>>
    %527 = tpu.memref_squeeze %526 : memref<1x!tpu.dma_semaphore, #tpu.memory_space<semaphore_mem>> -> memref<!tpu.dma_semaphore, #tpu.memory_space<semaphore_mem>>
    tpu.wait_dma2 semaphore(%527 : memref<!tpu.dma_semaphore, #tpu.memory_space<semaphore_mem>>) src(%524 : memref<1x128xf32, #tpu.memory_space<any>>) dst(%525 : memref<1x128xf32, #tpu.memory_space<vmem>>)
    %c0_i32_511 = arith.constant 0 : i32
    %c0_i32_512 = arith.constant 0 : i32
    %528 = tpu.memref_slice %arg2[%142, %c0_i32_512] : memref<2048x128xf32, #tpu.memory_space<any>> -> memref<1x128xf32, #tpu.memory_space<any>>
    %c20_i32_513 = arith.constant 20 : i32
    %c0_i32_514 = arith.constant 0 : i32
    %529 = tpu.memref_slice %arg4[%c20_i32_513, %c0_i32_514] : memref<64x128xf32, #tpu.memory_space<vmem>> -> memref<1x128xf32, #tpu.memory_space<vmem>>
    %530 = tpu.memref_slice %arg5[%c0_i32_511] : memref<1x!tpu.dma_semaphore, #tpu.memory_space<semaphore_mem>> -> memref<1x!tpu.dma_semaphore, #tpu.memory_space<semaphore_mem>>
    %531 = tpu.memref_squeeze %530 : memref<1x!tpu.dma_semaphore, #tpu.memory_space<semaphore_mem>> -> memref<!tpu.dma_semaphore, #tpu.memory_space<semaphore_mem>>
    tpu.wait_dma2 semaphore(%531 : memref<!tpu.dma_semaphore, #tpu.memory_space<semaphore_mem>>) src(%528 : memref<1x128xf32, #tpu.memory_space<any>>) dst(%529 : memref<1x128xf32, #tpu.memory_space<vmem>>)
    %c0_i32_515 = arith.constant 0 : i32
    %c0_i32_516 = arith.constant 0 : i32
    %532 = tpu.memref_slice %arg2[%149, %c0_i32_516] : memref<2048x128xf32, #tpu.memory_space<any>> -> memref<1x128xf32, #tpu.memory_space<any>>
    %c21_i32_517 = arith.constant 21 : i32
    %c0_i32_518 = arith.constant 0 : i32
    %533 = tpu.memref_slice %arg4[%c21_i32_517, %c0_i32_518] : memref<64x128xf32, #tpu.memory_space<vmem>> -> memref<1x128xf32, #tpu.memory_space<vmem>>
    %534 = tpu.memref_slice %arg5[%c0_i32_515] : memref<1x!tpu.dma_semaphore, #tpu.memory_space<semaphore_mem>> -> memref<1x!tpu.dma_semaphore, #tpu.memory_space<semaphore_mem>>
    %535 = tpu.memref_squeeze %534 : memref<1x!tpu.dma_semaphore, #tpu.memory_space<semaphore_mem>> -> memref<!tpu.dma_semaphore, #tpu.memory_space<semaphore_mem>>
    tpu.wait_dma2 semaphore(%535 : memref<!tpu.dma_semaphore, #tpu.memory_space<semaphore_mem>>) src(%532 : memref<1x128xf32, #tpu.memory_space<any>>) dst(%533 : memref<1x128xf32, #tpu.memory_space<vmem>>)
    %c0_i32_519 = arith.constant 0 : i32
    %c0_i32_520 = arith.constant 0 : i32
    %536 = tpu.memref_slice %arg2[%156, %c0_i32_520] : memref<2048x128xf32, #tpu.memory_space<any>> -> memref<1x128xf32, #tpu.memory_space<any>>
    %c22_i32_521 = arith.constant 22 : i32
    %c0_i32_522 = arith.constant 0 : i32
    %537 = tpu.memref_slice %arg4[%c22_i32_521, %c0_i32_522] : memref<64x128xf32, #tpu.memory_space<vmem>> -> memref<1x128xf32, #tpu.memory_space<vmem>>
    %538 = tpu.memref_slice %arg5[%c0_i32_519] : memref<1x!tpu.dma_semaphore, #tpu.memory_space<semaphore_mem>> -> memref<1x!tpu.dma_semaphore, #tpu.memory_space<semaphore_mem>>
    %539 = tpu.memref_squeeze %538 : memref<1x!tpu.dma_semaphore, #tpu.memory_space<semaphore_mem>> -> memref<!tpu.dma_semaphore, #tpu.memory_space<semaphore_mem>>
    tpu.wait_dma2 semaphore(%539 : memref<!tpu.dma_semaphore, #tpu.memory_space<semaphore_mem>>) src(%536 : memref<1x128xf32, #tpu.memory_space<any>>) dst(%537 : memref<1x128xf32, #tpu.memory_space<vmem>>)
    %c0_i32_523 = arith.constant 0 : i32
    %c0_i32_524 = arith.constant 0 : i32
    %540 = tpu.memref_slice %arg2[%163, %c0_i32_524] : memref<2048x128xf32, #tpu.memory_space<any>> -> memref<1x128xf32, #tpu.memory_space<any>>
    %c23_i32_525 = arith.constant 23 : i32
    %c0_i32_526 = arith.constant 0 : i32
    %541 = tpu.memref_slice %arg4[%c23_i32_525, %c0_i32_526] : memref<64x128xf32, #tpu.memory_space<vmem>> -> memref<1x128xf32, #tpu.memory_space<vmem>>
    %542 = tpu.memref_slice %arg5[%c0_i32_523] : memref<1x!tpu.dma_semaphore, #tpu.memory_space<semaphore_mem>> -> memref<1x!tpu.dma_semaphore, #tpu.memory_space<semaphore_mem>>
    %543 = tpu.memref_squeeze %542 : memref<1x!tpu.dma_semaphore, #tpu.memory_space<semaphore_mem>> -> memref<!tpu.dma_semaphore, #tpu.memory_space<semaphore_mem>>
    tpu.wait_dma2 semaphore(%543 : memref<!tpu.dma_semaphore, #tpu.memory_space<semaphore_mem>>) src(%540 : memref<1x128xf32, #tpu.memory_space<any>>) dst(%541 : memref<1x128xf32, #tpu.memory_space<vmem>>)
    %c0_i32_527 = arith.constant 0 : i32
    %c0_i32_528 = arith.constant 0 : i32
    %544 = tpu.memref_slice %arg2[%170, %c0_i32_528] : memref<2048x128xf32, #tpu.memory_space<any>> -> memref<1x128xf32, #tpu.memory_space<any>>
    %c24_i32_529 = arith.constant 24 : i32
    %c0_i32_530 = arith.constant 0 : i32
    %545 = tpu.memref_slice %arg4[%c24_i32_529, %c0_i32_530] : memref<64x128xf32, #tpu.memory_space<vmem>> -> memref<1x128xf32, #tpu.memory_space<vmem>>
    %546 = tpu.memref_slice %arg5[%c0_i32_527] : memref<1x!tpu.dma_semaphore, #tpu.memory_space<semaphore_mem>> -> memref<1x!tpu.dma_semaphore, #tpu.memory_space<semaphore_mem>>
    %547 = tpu.memref_squeeze %546 : memref<1x!tpu.dma_semaphore, #tpu.memory_space<semaphore_mem>> -> memref<!tpu.dma_semaphore, #tpu.memory_space<semaphore_mem>>
    tpu.wait_dma2 semaphore(%547 : memref<!tpu.dma_semaphore, #tpu.memory_space<semaphore_mem>>) src(%544 : memref<1x128xf32, #tpu.memory_space<any>>) dst(%545 : memref<1x128xf32, #tpu.memory_space<vmem>>)
    %c0_i32_531 = arith.constant 0 : i32
    %c0_i32_532 = arith.constant 0 : i32
    %548 = tpu.memref_slice %arg2[%177, %c0_i32_532] : memref<2048x128xf32, #tpu.memory_space<any>> -> memref<1x128xf32, #tpu.memory_space<any>>
    %c25_i32_533 = arith.constant 25 : i32
    %c0_i32_534 = arith.constant 0 : i32
    %549 = tpu.memref_slice %arg4[%c25_i32_533, %c0_i32_534] : memref<64x128xf32, #tpu.memory_space<vmem>> -> memref<1x128xf32, #tpu.memory_space<vmem>>
    %550 = tpu.memref_slice %arg5[%c0_i32_531] : memref<1x!tpu.dma_semaphore, #tpu.memory_space<semaphore_mem>> -> memref<1x!tpu.dma_semaphore, #tpu.memory_space<semaphore_mem>>
    %551 = tpu.memref_squeeze %550 : memref<1x!tpu.dma_semaphore, #tpu.memory_space<semaphore_mem>> -> memref<!tpu.dma_semaphore, #tpu.memory_space<semaphore_mem>>
    tpu.wait_dma2 semaphore(%551 : memref<!tpu.dma_semaphore, #tpu.memory_space<semaphore_mem>>) src(%548 : memref<1x128xf32, #tpu.memory_space<any>>) dst(%549 : memref<1x128xf32, #tpu.memory_space<vmem>>)
    %c0_i32_535 = arith.constant 0 : i32
    %c0_i32_536 = arith.constant 0 : i32
    %552 = tpu.memref_slice %arg2[%184, %c0_i32_536] : memref<2048x128xf32, #tpu.memory_space<any>> -> memref<1x128xf32, #tpu.memory_space<any>>
    %c26_i32_537 = arith.constant 26 : i32
    %c0_i32_538 = arith.constant 0 : i32
    %553 = tpu.memref_slice %arg4[%c26_i32_537, %c0_i32_538] : memref<64x128xf32, #tpu.memory_space<vmem>> -> memref<1x128xf32, #tpu.memory_space<vmem>>
    %554 = tpu.memref_slice %arg5[%c0_i32_535] : memref<1x!tpu.dma_semaphore, #tpu.memory_space<semaphore_mem>> -> memref<1x!tpu.dma_semaphore, #tpu.memory_space<semaphore_mem>>
    %555 = tpu.memref_squeeze %554 : memref<1x!tpu.dma_semaphore, #tpu.memory_space<semaphore_mem>> -> memref<!tpu.dma_semaphore, #tpu.memory_space<semaphore_mem>>
    tpu.wait_dma2 semaphore(%555 : memref<!tpu.dma_semaphore, #tpu.memory_space<semaphore_mem>>) src(%552 : memref<1x128xf32, #tpu.memory_space<any>>) dst(%553 : memref<1x128xf32, #tpu.memory_space<vmem>>)
    %c0_i32_539 = arith.constant 0 : i32
    %c0_i32_540 = arith.constant 0 : i32
    %556 = tpu.memref_slice %arg2[%191, %c0_i32_540] : memref<2048x128xf32, #tpu.memory_space<any>> -> memref<1x128xf32, #tpu.memory_space<any>>
    %c27_i32_541 = arith.constant 27 : i32
    %c0_i32_542 = arith.constant 0 : i32
    %557 = tpu.memref_slice %arg4[%c27_i32_541, %c0_i32_542] : memref<64x128xf32, #tpu.memory_space<vmem>> -> memref<1x128xf32, #tpu.memory_space<vmem>>
    %558 = tpu.memref_slice %arg5[%c0_i32_539] : memref<1x!tpu.dma_semaphore, #tpu.memory_space<semaphore_mem>> -> memref<1x!tpu.dma_semaphore, #tpu.memory_space<semaphore_mem>>
    %559 = tpu.memref_squeeze %558 : memref<1x!tpu.dma_semaphore, #tpu.memory_space<semaphore_mem>> -> memref<!tpu.dma_semaphore, #tpu.memory_space<semaphore_mem>>
    tpu.wait_dma2 semaphore(%559 : memref<!tpu.dma_semaphore, #tpu.memory_space<semaphore_mem>>) src(%556 : memref<1x128xf32, #tpu.memory_space<any>>) dst(%557 : memref<1x128xf32, #tpu.memory_space<vmem>>)
    %c0_i32_543 = arith.constant 0 : i32
    %c0_i32_544 = arith.constant 0 : i32
    %560 = tpu.memref_slice %arg2[%198, %c0_i32_544] : memref<2048x128xf32, #tpu.memory_space<any>> -> memref<1x128xf32, #tpu.memory_space<any>>
    %c28_i32_545 = arith.constant 28 : i32
    %c0_i32_546 = arith.constant 0 : i32
    %561 = tpu.memref_slice %arg4[%c28_i32_545, %c0_i32_546] : memref<64x128xf32, #tpu.memory_space<vmem>> -> memref<1x128xf32, #tpu.memory_space<vmem>>
    %562 = tpu.memref_slice %arg5[%c0_i32_543] : memref<1x!tpu.dma_semaphore, #tpu.memory_space<semaphore_mem>> -> memref<1x!tpu.dma_semaphore, #tpu.memory_space<semaphore_mem>>
    %563 = tpu.memref_squeeze %562 : memref<1x!tpu.dma_semaphore, #tpu.memory_space<semaphore_mem>> -> memref<!tpu.dma_semaphore, #tpu.memory_space<semaphore_mem>>
    tpu.wait_dma2 semaphore(%563 : memref<!tpu.dma_semaphore, #tpu.memory_space<semaphore_mem>>) src(%560 : memref<1x128xf32, #tpu.memory_space<any>>) dst(%561 : memref<1x128xf32, #tpu.memory_space<vmem>>)
    %c0_i32_547 = arith.constant 0 : i32
    %c0_i32_548 = arith.constant 0 : i32
    %564 = tpu.memref_slice %arg2[%205, %c0_i32_548] : memref<2048x128xf32, #tpu.memory_space<any>> -> memref<1x128xf32, #tpu.memory_space<any>>
    %c29_i32_549 = arith.constant 29 : i32
    %c0_i32_550 = arith.constant 0 : i32
    %565 = tpu.memref_slice %arg4[%c29_i32_549, %c0_i32_550] : memref<64x128xf32, #tpu.memory_space<vmem>> -> memref<1x128xf32, #tpu.memory_space<vmem>>
    %566 = tpu.memref_slice %arg5[%c0_i32_547] : memref<1x!tpu.dma_semaphore, #tpu.memory_space<semaphore_mem>> -> memref<1x!tpu.dma_semaphore, #tpu.memory_space<semaphore_mem>>
    %567 = tpu.memref_squeeze %566 : memref<1x!tpu.dma_semaphore, #tpu.memory_space<semaphore_mem>> -> memref<!tpu.dma_semaphore, #tpu.memory_space<semaphore_mem>>
    tpu.wait_dma2 semaphore(%567 : memref<!tpu.dma_semaphore, #tpu.memory_space<semaphore_mem>>) src(%564 : memref<1x128xf32, #tpu.memory_space<any>>) dst(%565 : memref<1x128xf32, #tpu.memory_space<vmem>>)
    %c0_i32_551 = arith.constant 0 : i32
    %c0_i32_552 = arith.constant 0 : i32
    %568 = tpu.memref_slice %arg2[%212, %c0_i32_552] : memref<2048x128xf32, #tpu.memory_space<any>> -> memref<1x128xf32, #tpu.memory_space<any>>
    %c30_i32_553 = arith.constant 30 : i32
    %c0_i32_554 = arith.constant 0 : i32
    %569 = tpu.memref_slice %arg4[%c30_i32_553, %c0_i32_554] : memref<64x128xf32, #tpu.memory_space<vmem>> -> memref<1x128xf32, #tpu.memory_space<vmem>>
    %570 = tpu.memref_slice %arg5[%c0_i32_551] : memref<1x!tpu.dma_semaphore, #tpu.memory_space<semaphore_mem>> -> memref<1x!tpu.dma_semaphore, #tpu.memory_space<semaphore_mem>>
    %571 = tpu.memref_squeeze %570 : memref<1x!tpu.dma_semaphore, #tpu.memory_space<semaphore_mem>> -> memref<!tpu.dma_semaphore, #tpu.memory_space<semaphore_mem>>
    tpu.wait_dma2 semaphore(%571 : memref<!tpu.dma_semaphore, #tpu.memory_space<semaphore_mem>>) src(%568 : memref<1x128xf32, #tpu.memory_space<any>>) dst(%569 : memref<1x128xf32, #tpu.memory_space<vmem>>)
    %c0_i32_555 = arith.constant 0 : i32
    %c0_i32_556 = arith.constant 0 : i32
    %572 = tpu.memref_slice %arg2[%219, %c0_i32_556] : memref<2048x128xf32, #tpu.memory_space<any>> -> memref<1x128xf32, #tpu.memory_space<any>>
    %c31_i32_557 = arith.constant 31 : i32
    %c0_i32_558 = arith.constant 0 : i32
    %573 = tpu.memref_slice %arg4[%c31_i32_557, %c0_i32_558] : memref<64x128xf32, #tpu.memory_space<vmem>> -> memref<1x128xf32, #tpu.memory_space<vmem>>
    %574 = tpu.memref_slice %arg5[%c0_i32_555] : memref<1x!tpu.dma_semaphore, #tpu.memory_space<semaphore_mem>> -> memref<1x!tpu.dma_semaphore, #tpu.memory_space<semaphore_mem>>
    %575 = tpu.memref_squeeze %574 : memref<1x!tpu.dma_semaphore, #tpu.memory_space<semaphore_mem>> -> memref<!tpu.dma_semaphore, #tpu.memory_space<semaphore_mem>>
    tpu.wait_dma2 semaphore(%575 : memref<!tpu.dma_semaphore, #tpu.memory_space<semaphore_mem>>) src(%572 : memref<1x128xf32, #tpu.memory_space<any>>) dst(%573 : memref<1x128xf32, #tpu.memory_space<vmem>>)
    %c0_i32_559 = arith.constant 0 : i32
    %c0_i32_560 = arith.constant 0 : i32
    %576 = tpu.memref_slice %arg2[%226, %c0_i32_560] : memref<2048x128xf32, #tpu.memory_space<any>> -> memref<1x128xf32, #tpu.memory_space<any>>
    %c32_i32_561 = arith.constant 32 : i32
    %c0_i32_562 = arith.constant 0 : i32
    %577 = tpu.memref_slice %arg4[%c32_i32_561, %c0_i32_562] : memref<64x128xf32, #tpu.memory_space<vmem>> -> memref<1x128xf32, #tpu.memory_space<vmem>>
    %578 = tpu.memref_slice %arg5[%c0_i32_559] : memref<1x!tpu.dma_semaphore, #tpu.memory_space<semaphore_mem>> -> memref<1x!tpu.dma_semaphore, #tpu.memory_space<semaphore_mem>>
    %579 = tpu.memref_squeeze %578 : memref<1x!tpu.dma_semaphore, #tpu.memory_space<semaphore_mem>> -> memref<!tpu.dma_semaphore, #tpu.memory_space<semaphore_mem>>
    tpu.wait_dma2 semaphore(%579 : memref<!tpu.dma_semaphore, #tpu.memory_space<semaphore_mem>>) src(%576 : memref<1x128xf32, #tpu.memory_space<any>>) dst(%577 : memref<1x128xf32, #tpu.memory_space<vmem>>)
    %c0_i32_563 = arith.constant 0 : i32
    %c0_i32_564 = arith.constant 0 : i32
    %580 = tpu.memref_slice %arg2[%233, %c0_i32_564] : memref<2048x128xf32, #tpu.memory_space<any>> -> memref<1x128xf32, #tpu.memory_space<any>>
    %c33_i32_565 = arith.constant 33 : i32
    %c0_i32_566 = arith.constant 0 : i32
    %581 = tpu.memref_slice %arg4[%c33_i32_565, %c0_i32_566] : memref<64x128xf32, #tpu.memory_space<vmem>> -> memref<1x128xf32, #tpu.memory_space<vmem>>
    %582 = tpu.memref_slice %arg5[%c0_i32_563] : memref<1x!tpu.dma_semaphore, #tpu.memory_space<semaphore_mem>> -> memref<1x!tpu.dma_semaphore, #tpu.memory_space<semaphore_mem>>
    %583 = tpu.memref_squeeze %582 : memref<1x!tpu.dma_semaphore, #tpu.memory_space<semaphore_mem>> -> memref<!tpu.dma_semaphore, #tpu.memory_space<semaphore_mem>>
    tpu.wait_dma2 semaphore(%583 : memref<!tpu.dma_semaphore, #tpu.memory_space<semaphore_mem>>) src(%580 : memref<1x128xf32, #tpu.memory_space<any>>) dst(%581 : memref<1x128xf32, #tpu.memory_space<vmem>>)
    %c0_i32_567 = arith.constant 0 : i32
    %c0_i32_568 = arith.constant 0 : i32
    %584 = tpu.memref_slice %arg2[%240, %c0_i32_568] : memref<2048x128xf32, #tpu.memory_space<any>> -> memref<1x128xf32, #tpu.memory_space<any>>
    %c34_i32_569 = arith.constant 34 : i32
    %c0_i32_570 = arith.constant 0 : i32
    %585 = tpu.memref_slice %arg4[%c34_i32_569, %c0_i32_570] : memref<64x128xf32, #tpu.memory_space<vmem>> -> memref<1x128xf32, #tpu.memory_space<vmem>>
    %586 = tpu.memref_slice %arg5[%c0_i32_567] : memref<1x!tpu.dma_semaphore, #tpu.memory_space<semaphore_mem>> -> memref<1x!tpu.dma_semaphore, #tpu.memory_space<semaphore_mem>>
    %587 = tpu.memref_squeeze %586 : memref<1x!tpu.dma_semaphore, #tpu.memory_space<semaphore_mem>> -> memref<!tpu.dma_semaphore, #tpu.memory_space<semaphore_mem>>
    tpu.wait_dma2 semaphore(%587 : memref<!tpu.dma_semaphore, #tpu.memory_space<semaphore_mem>>) src(%584 : memref<1x128xf32, #tpu.memory_space<any>>) dst(%585 : memref<1x128xf32, #tpu.memory_space<vmem>>)
    %c0_i32_571 = arith.constant 0 : i32
    %c0_i32_572 = arith.constant 0 : i32
    %588 = tpu.memref_slice %arg2[%247, %c0_i32_572] : memref<2048x128xf32, #tpu.memory_space<any>> -> memref<1x128xf32, #tpu.memory_space<any>>
    %c35_i32_573 = arith.constant 35 : i32
    %c0_i32_574 = arith.constant 0 : i32
    %589 = tpu.memref_slice %arg4[%c35_i32_573, %c0_i32_574] : memref<64x128xf32, #tpu.memory_space<vmem>> -> memref<1x128xf32, #tpu.memory_space<vmem>>
    %590 = tpu.memref_slice %arg5[%c0_i32_571] : memref<1x!tpu.dma_semaphore, #tpu.memory_space<semaphore_mem>> -> memref<1x!tpu.dma_semaphore, #tpu.memory_space<semaphore_mem>>
    %591 = tpu.memref_squeeze %590 : memref<1x!tpu.dma_semaphore, #tpu.memory_space<semaphore_mem>> -> memref<!tpu.dma_semaphore, #tpu.memory_space<semaphore_mem>>
    tpu.wait_dma2 semaphore(%591 : memref<!tpu.dma_semaphore, #tpu.memory_space<semaphore_mem>>) src(%588 : memref<1x128xf32, #tpu.memory_space<any>>) dst(%589 : memref<1x128xf32, #tpu.memory_space<vmem>>)
    %c0_i32_575 = arith.constant 0 : i32
    %c0_i32_576 = arith.constant 0 : i32
    %592 = tpu.memref_slice %arg2[%254, %c0_i32_576] : memref<2048x128xf32, #tpu.memory_space<any>> -> memref<1x128xf32, #tpu.memory_space<any>>
    %c36_i32_577 = arith.constant 36 : i32
    %c0_i32_578 = arith.constant 0 : i32
    %593 = tpu.memref_slice %arg4[%c36_i32_577, %c0_i32_578] : memref<64x128xf32, #tpu.memory_space<vmem>> -> memref<1x128xf32, #tpu.memory_space<vmem>>
    %594 = tpu.memref_slice %arg5[%c0_i32_575] : memref<1x!tpu.dma_semaphore, #tpu.memory_space<semaphore_mem>> -> memref<1x!tpu.dma_semaphore, #tpu.memory_space<semaphore_mem>>
    %595 = tpu.memref_squeeze %594 : memref<1x!tpu.dma_semaphore, #tpu.memory_space<semaphore_mem>> -> memref<!tpu.dma_semaphore, #tpu.memory_space<semaphore_mem>>
    tpu.wait_dma2 semaphore(%595 : memref<!tpu.dma_semaphore, #tpu.memory_space<semaphore_mem>>) src(%592 : memref<1x128xf32, #tpu.memory_space<any>>) dst(%593 : memref<1x128xf32, #tpu.memory_space<vmem>>)
    %c0_i32_579 = arith.constant 0 : i32
    %c0_i32_580 = arith.constant 0 : i32
    %596 = tpu.memref_slice %arg2[%261, %c0_i32_580] : memref<2048x128xf32, #tpu.memory_space<any>> -> memref<1x128xf32, #tpu.memory_space<any>>
    %c37_i32_581 = arith.constant 37 : i32
    %c0_i32_582 = arith.constant 0 : i32
    %597 = tpu.memref_slice %arg4[%c37_i32_581, %c0_i32_582] : memref<64x128xf32, #tpu.memory_space<vmem>> -> memref<1x128xf32, #tpu.memory_space<vmem>>
    %598 = tpu.memref_slice %arg5[%c0_i32_579] : memref<1x!tpu.dma_semaphore, #tpu.memory_space<semaphore_mem>> -> memref<1x!tpu.dma_semaphore, #tpu.memory_space<semaphore_mem>>
    %599 = tpu.memref_squeeze %598 : memref<1x!tpu.dma_semaphore, #tpu.memory_space<semaphore_mem>> -> memref<!tpu.dma_semaphore, #tpu.memory_space<semaphore_mem>>
    tpu.wait_dma2 semaphore(%599 : memref<!tpu.dma_semaphore, #tpu.memory_space<semaphore_mem>>) src(%596 : memref<1x128xf32, #tpu.memory_space<any>>) dst(%597 : memref<1x128xf32, #tpu.memory_space<vmem>>)
    %c0_i32_583 = arith.constant 0 : i32
    %c0_i32_584 = arith.constant 0 : i32
    %600 = tpu.memref_slice %arg2[%268, %c0_i32_584] : memref<2048x128xf32, #tpu.memory_space<any>> -> memref<1x128xf32, #tpu.memory_space<any>>
    %c38_i32_585 = arith.constant 38 : i32
    %c0_i32_586 = arith.constant 0 : i32
    %601 = tpu.memref_slice %arg4[%c38_i32_585, %c0_i32_586] : memref<64x128xf32, #tpu.memory_space<vmem>> -> memref<1x128xf32, #tpu.memory_space<vmem>>
    %602 = tpu.memref_slice %arg5[%c0_i32_583] : memref<1x!tpu.dma_semaphore, #tpu.memory_space<semaphore_mem>> -> memref<1x!tpu.dma_semaphore, #tpu.memory_space<semaphore_mem>>
    %603 = tpu.memref_squeeze %602 : memref<1x!tpu.dma_semaphore, #tpu.memory_space<semaphore_mem>> -> memref<!tpu.dma_semaphore, #tpu.memory_space<semaphore_mem>>
    tpu.wait_dma2 semaphore(%603 : memref<!tpu.dma_semaphore, #tpu.memory_space<semaphore_mem>>) src(%600 : memref<1x128xf32, #tpu.memory_space<any>>) dst(%601 : memref<1x128xf32, #tpu.memory_space<vmem>>)
    %c0_i32_587 = arith.constant 0 : i32
    %c0_i32_588 = arith.constant 0 : i32
    %604 = tpu.memref_slice %arg2[%275, %c0_i32_588] : memref<2048x128xf32, #tpu.memory_space<any>> -> memref<1x128xf32, #tpu.memory_space<any>>
    %c39_i32_589 = arith.constant 39 : i32
    %c0_i32_590 = arith.constant 0 : i32
    %605 = tpu.memref_slice %arg4[%c39_i32_589, %c0_i32_590] : memref<64x128xf32, #tpu.memory_space<vmem>> -> memref<1x128xf32, #tpu.memory_space<vmem>>
    %606 = tpu.memref_slice %arg5[%c0_i32_587] : memref<1x!tpu.dma_semaphore, #tpu.memory_space<semaphore_mem>> -> memref<1x!tpu.dma_semaphore, #tpu.memory_space<semaphore_mem>>
    %607 = tpu.memref_squeeze %606 : memref<1x!tpu.dma_semaphore, #tpu.memory_space<semaphore_mem>> -> memref<!tpu.dma_semaphore, #tpu.memory_space<semaphore_mem>>
    tpu.wait_dma2 semaphore(%607 : memref<!tpu.dma_semaphore, #tpu.memory_space<semaphore_mem>>) src(%604 : memref<1x128xf32, #tpu.memory_space<any>>) dst(%605 : memref<1x128xf32, #tpu.memory_space<vmem>>)
    %c0_i32_591 = arith.constant 0 : i32
    %c0_i32_592 = arith.constant 0 : i32
    %608 = tpu.memref_slice %arg2[%282, %c0_i32_592] : memref<2048x128xf32, #tpu.memory_space<any>> -> memref<1x128xf32, #tpu.memory_space<any>>
    %c40_i32_593 = arith.constant 40 : i32
    %c0_i32_594 = arith.constant 0 : i32
    %609 = tpu.memref_slice %arg4[%c40_i32_593, %c0_i32_594] : memref<64x128xf32, #tpu.memory_space<vmem>> -> memref<1x128xf32, #tpu.memory_space<vmem>>
    %610 = tpu.memref_slice %arg5[%c0_i32_591] : memref<1x!tpu.dma_semaphore, #tpu.memory_space<semaphore_mem>> -> memref<1x!tpu.dma_semaphore, #tpu.memory_space<semaphore_mem>>
    %611 = tpu.memref_squeeze %610 : memref<1x!tpu.dma_semaphore, #tpu.memory_space<semaphore_mem>> -> memref<!tpu.dma_semaphore, #tpu.memory_space<semaphore_mem>>
    tpu.wait_dma2 semaphore(%611 : memref<!tpu.dma_semaphore, #tpu.memory_space<semaphore_mem>>) src(%608 : memref<1x128xf32, #tpu.memory_space<any>>) dst(%609 : memref<1x128xf32, #tpu.memory_space<vmem>>)
    %c0_i32_595 = arith.constant 0 : i32
    %c0_i32_596 = arith.constant 0 : i32
    %612 = tpu.memref_slice %arg2[%289, %c0_i32_596] : memref<2048x128xf32, #tpu.memory_space<any>> -> memref<1x128xf32, #tpu.memory_space<any>>
    %c41_i32_597 = arith.constant 41 : i32
    %c0_i32_598 = arith.constant 0 : i32
    %613 = tpu.memref_slice %arg4[%c41_i32_597, %c0_i32_598] : memref<64x128xf32, #tpu.memory_space<vmem>> -> memref<1x128xf32, #tpu.memory_space<vmem>>
    %614 = tpu.memref_slice %arg5[%c0_i32_595] : memref<1x!tpu.dma_semaphore, #tpu.memory_space<semaphore_mem>> -> memref<1x!tpu.dma_semaphore, #tpu.memory_space<semaphore_mem>>
    %615 = tpu.memref_squeeze %614 : memref<1x!tpu.dma_semaphore, #tpu.memory_space<semaphore_mem>> -> memref<!tpu.dma_semaphore, #tpu.memory_space<semaphore_mem>>
    tpu.wait_dma2 semaphore(%615 : memref<!tpu.dma_semaphore, #tpu.memory_space<semaphore_mem>>) src(%612 : memref<1x128xf32, #tpu.memory_space<any>>) dst(%613 : memref<1x128xf32, #tpu.memory_space<vmem>>)
    %c0_i32_599 = arith.constant 0 : i32
    %c0_i32_600 = arith.constant 0 : i32
    %616 = tpu.memref_slice %arg2[%296, %c0_i32_600] : memref<2048x128xf32, #tpu.memory_space<any>> -> memref<1x128xf32, #tpu.memory_space<any>>
    %c42_i32_601 = arith.constant 42 : i32
    %c0_i32_602 = arith.constant 0 : i32
    %617 = tpu.memref_slice %arg4[%c42_i32_601, %c0_i32_602] : memref<64x128xf32, #tpu.memory_space<vmem>> -> memref<1x128xf32, #tpu.memory_space<vmem>>
    %618 = tpu.memref_slice %arg5[%c0_i32_599] : memref<1x!tpu.dma_semaphore, #tpu.memory_space<semaphore_mem>> -> memref<1x!tpu.dma_semaphore, #tpu.memory_space<semaphore_mem>>
    %619 = tpu.memref_squeeze %618 : memref<1x!tpu.dma_semaphore, #tpu.memory_space<semaphore_mem>> -> memref<!tpu.dma_semaphore, #tpu.memory_space<semaphore_mem>>
    tpu.wait_dma2 semaphore(%619 : memref<!tpu.dma_semaphore, #tpu.memory_space<semaphore_mem>>) src(%616 : memref<1x128xf32, #tpu.memory_space<any>>) dst(%617 : memref<1x128xf32, #tpu.memory_space<vmem>>)
    %c0_i32_603 = arith.constant 0 : i32
    %c0_i32_604 = arith.constant 0 : i32
    %620 = tpu.memref_slice %arg2[%303, %c0_i32_604] : memref<2048x128xf32, #tpu.memory_space<any>> -> memref<1x128xf32, #tpu.memory_space<any>>
    %c43_i32_605 = arith.constant 43 : i32
    %c0_i32_606 = arith.constant 0 : i32
    %621 = tpu.memref_slice %arg4[%c43_i32_605, %c0_i32_606] : memref<64x128xf32, #tpu.memory_space<vmem>> -> memref<1x128xf32, #tpu.memory_space<vmem>>
    %622 = tpu.memref_slice %arg5[%c0_i32_603] : memref<1x!tpu.dma_semaphore, #tpu.memory_space<semaphore_mem>> -> memref<1x!tpu.dma_semaphore, #tpu.memory_space<semaphore_mem>>
    %623 = tpu.memref_squeeze %622 : memref<1x!tpu.dma_semaphore, #tpu.memory_space<semaphore_mem>> -> memref<!tpu.dma_semaphore, #tpu.memory_space<semaphore_mem>>
    tpu.wait_dma2 semaphore(%623 : memref<!tpu.dma_semaphore, #tpu.memory_space<semaphore_mem>>) src(%620 : memref<1x128xf32, #tpu.memory_space<any>>) dst(%621 : memref<1x128xf32, #tpu.memory_space<vmem>>)
    %c0_i32_607 = arith.constant 0 : i32
    %c0_i32_608 = arith.constant 0 : i32
    %624 = tpu.memref_slice %arg2[%310, %c0_i32_608] : memref<2048x128xf32, #tpu.memory_space<any>> -> memref<1x128xf32, #tpu.memory_space<any>>
    %c44_i32_609 = arith.constant 44 : i32
    %c0_i32_610 = arith.constant 0 : i32
    %625 = tpu.memref_slice %arg4[%c44_i32_609, %c0_i32_610] : memref<64x128xf32, #tpu.memory_space<vmem>> -> memref<1x128xf32, #tpu.memory_space<vmem>>
    %626 = tpu.memref_slice %arg5[%c0_i32_607] : memref<1x!tpu.dma_semaphore, #tpu.memory_space<semaphore_mem>> -> memref<1x!tpu.dma_semaphore, #tpu.memory_space<semaphore_mem>>
    %627 = tpu.memref_squeeze %626 : memref<1x!tpu.dma_semaphore, #tpu.memory_space<semaphore_mem>> -> memref<!tpu.dma_semaphore, #tpu.memory_space<semaphore_mem>>
    tpu.wait_dma2 semaphore(%627 : memref<!tpu.dma_semaphore, #tpu.memory_space<semaphore_mem>>) src(%624 : memref<1x128xf32, #tpu.memory_space<any>>) dst(%625 : memref<1x128xf32, #tpu.memory_space<vmem>>)
    %c0_i32_611 = arith.constant 0 : i32
    %c0_i32_612 = arith.constant 0 : i32
    %628 = tpu.memref_slice %arg2[%317, %c0_i32_612] : memref<2048x128xf32, #tpu.memory_space<any>> -> memref<1x128xf32, #tpu.memory_space<any>>
    %c45_i32_613 = arith.constant 45 : i32
    %c0_i32_614 = arith.constant 0 : i32
    %629 = tpu.memref_slice %arg4[%c45_i32_613, %c0_i32_614] : memref<64x128xf32, #tpu.memory_space<vmem>> -> memref<1x128xf32, #tpu.memory_space<vmem>>
    %630 = tpu.memref_slice %arg5[%c0_i32_611] : memref<1x!tpu.dma_semaphore, #tpu.memory_space<semaphore_mem>> -> memref<1x!tpu.dma_semaphore, #tpu.memory_space<semaphore_mem>>
    %631 = tpu.memref_squeeze %630 : memref<1x!tpu.dma_semaphore, #tpu.memory_space<semaphore_mem>> -> memref<!tpu.dma_semaphore, #tpu.memory_space<semaphore_mem>>
    tpu.wait_dma2 semaphore(%631 : memref<!tpu.dma_semaphore, #tpu.memory_space<semaphore_mem>>) src(%628 : memref<1x128xf32, #tpu.memory_space<any>>) dst(%629 : memref<1x128xf32, #tpu.memory_space<vmem>>)
    %c0_i32_615 = arith.constant 0 : i32
    %c0_i32_616 = arith.constant 0 : i32
    %632 = tpu.memref_slice %arg2[%324, %c0_i32_616] : memref<2048x128xf32, #tpu.memory_space<any>> -> memref<1x128xf32, #tpu.memory_space<any>>
    %c46_i32_617 = arith.constant 46 : i32
    %c0_i32_618 = arith.constant 0 : i32
    %633 = tpu.memref_slice %arg4[%c46_i32_617, %c0_i32_618] : memref<64x128xf32, #tpu.memory_space<vmem>> -> memref<1x128xf32, #tpu.memory_space<vmem>>
    %634 = tpu.memref_slice %arg5[%c0_i32_615] : memref<1x!tpu.dma_semaphore, #tpu.memory_space<semaphore_mem>> -> memref<1x!tpu.dma_semaphore, #tpu.memory_space<semaphore_mem>>
    %635 = tpu.memref_squeeze %634 : memref<1x!tpu.dma_semaphore, #tpu.memory_space<semaphore_mem>> -> memref<!tpu.dma_semaphore, #tpu.memory_space<semaphore_mem>>
    tpu.wait_dma2 semaphore(%635 : memref<!tpu.dma_semaphore, #tpu.memory_space<semaphore_mem>>) src(%632 : memref<1x128xf32, #tpu.memory_space<any>>) dst(%633 : memref<1x128xf32, #tpu.memory_space<vmem>>)
    %c0_i32_619 = arith.constant 0 : i32
    %c0_i32_620 = arith.constant 0 : i32
    %636 = tpu.memref_slice %arg2[%331, %c0_i32_620] : memref<2048x128xf32, #tpu.memory_space<any>> -> memref<1x128xf32, #tpu.memory_space<any>>
    %c47_i32_621 = arith.constant 47 : i32
    %c0_i32_622 = arith.constant 0 : i32
    %637 = tpu.memref_slice %arg4[%c47_i32_621, %c0_i32_622] : memref<64x128xf32, #tpu.memory_space<vmem>> -> memref<1x128xf32, #tpu.memory_space<vmem>>
    %638 = tpu.memref_slice %arg5[%c0_i32_619] : memref<1x!tpu.dma_semaphore, #tpu.memory_space<semaphore_mem>> -> memref<1x!tpu.dma_semaphore, #tpu.memory_space<semaphore_mem>>
    %639 = tpu.memref_squeeze %638 : memref<1x!tpu.dma_semaphore, #tpu.memory_space<semaphore_mem>> -> memref<!tpu.dma_semaphore, #tpu.memory_space<semaphore_mem>>
    tpu.wait_dma2 semaphore(%639 : memref<!tpu.dma_semaphore, #tpu.memory_space<semaphore_mem>>) src(%636 : memref<1x128xf32, #tpu.memory_space<any>>) dst(%637 : memref<1x128xf32, #tpu.memory_space<vmem>>)
    %c0_i32_623 = arith.constant 0 : i32
    %c0_i32_624 = arith.constant 0 : i32
    %640 = tpu.memref_slice %arg2[%338, %c0_i32_624] : memref<2048x128xf32, #tpu.memory_space<any>> -> memref<1x128xf32, #tpu.memory_space<any>>
    %c48_i32_625 = arith.constant 48 : i32
    %c0_i32_626 = arith.constant 0 : i32
    %641 = tpu.memref_slice %arg4[%c48_i32_625, %c0_i32_626] : memref<64x128xf32, #tpu.memory_space<vmem>> -> memref<1x128xf32, #tpu.memory_space<vmem>>
    %642 = tpu.memref_slice %arg5[%c0_i32_623] : memref<1x!tpu.dma_semaphore, #tpu.memory_space<semaphore_mem>> -> memref<1x!tpu.dma_semaphore, #tpu.memory_space<semaphore_mem>>
    %643 = tpu.memref_squeeze %642 : memref<1x!tpu.dma_semaphore, #tpu.memory_space<semaphore_mem>> -> memref<!tpu.dma_semaphore, #tpu.memory_space<semaphore_mem>>
    tpu.wait_dma2 semaphore(%643 : memref<!tpu.dma_semaphore, #tpu.memory_space<semaphore_mem>>) src(%640 : memref<1x128xf32, #tpu.memory_space<any>>) dst(%641 : memref<1x128xf32, #tpu.memory_space<vmem>>)
    %c0_i32_627 = arith.constant 0 : i32
    %c0_i32_628 = arith.constant 0 : i32
    %644 = tpu.memref_slice %arg2[%345, %c0_i32_628] : memref<2048x128xf32, #tpu.memory_space<any>> -> memref<1x128xf32, #tpu.memory_space<any>>
    %c49_i32_629 = arith.constant 49 : i32
    %c0_i32_630 = arith.constant 0 : i32
    %645 = tpu.memref_slice %arg4[%c49_i32_629, %c0_i32_630] : memref<64x128xf32, #tpu.memory_space<vmem>> -> memref<1x128xf32, #tpu.memory_space<vmem>>
    %646 = tpu.memref_slice %arg5[%c0_i32_627] : memref<1x!tpu.dma_semaphore, #tpu.memory_space<semaphore_mem>> -> memref<1x!tpu.dma_semaphore, #tpu.memory_space<semaphore_mem>>
    %647 = tpu.memref_squeeze %646 : memref<1x!tpu.dma_semaphore, #tpu.memory_space<semaphore_mem>> -> memref<!tpu.dma_semaphore, #tpu.memory_space<semaphore_mem>>
    tpu.wait_dma2 semaphore(%647 : memref<!tpu.dma_semaphore, #tpu.memory_space<semaphore_mem>>) src(%644 : memref<1x128xf32, #tpu.memory_space<any>>) dst(%645 : memref<1x128xf32, #tpu.memory_space<vmem>>)
    %c0_i32_631 = arith.constant 0 : i32
    %c0_i32_632 = arith.constant 0 : i32
    %648 = tpu.memref_slice %arg2[%352, %c0_i32_632] : memref<2048x128xf32, #tpu.memory_space<any>> -> memref<1x128xf32, #tpu.memory_space<any>>
    %c50_i32_633 = arith.constant 50 : i32
    %c0_i32_634 = arith.constant 0 : i32
    %649 = tpu.memref_slice %arg4[%c50_i32_633, %c0_i32_634] : memref<64x128xf32, #tpu.memory_space<vmem>> -> memref<1x128xf32, #tpu.memory_space<vmem>>
    %650 = tpu.memref_slice %arg5[%c0_i32_631] : memref<1x!tpu.dma_semaphore, #tpu.memory_space<semaphore_mem>> -> memref<1x!tpu.dma_semaphore, #tpu.memory_space<semaphore_mem>>
    %651 = tpu.memref_squeeze %650 : memref<1x!tpu.dma_semaphore, #tpu.memory_space<semaphore_mem>> -> memref<!tpu.dma_semaphore, #tpu.memory_space<semaphore_mem>>
    tpu.wait_dma2 semaphore(%651 : memref<!tpu.dma_semaphore, #tpu.memory_space<semaphore_mem>>) src(%648 : memref<1x128xf32, #tpu.memory_space<any>>) dst(%649 : memref<1x128xf32, #tpu.memory_space<vmem>>)
    %c0_i32_635 = arith.constant 0 : i32
    %c0_i32_636 = arith.constant 0 : i32
    %652 = tpu.memref_slice %arg2[%359, %c0_i32_636] : memref<2048x128xf32, #tpu.memory_space<any>> -> memref<1x128xf32, #tpu.memory_space<any>>
    %c51_i32_637 = arith.constant 51 : i32
    %c0_i32_638 = arith.constant 0 : i32
    %653 = tpu.memref_slice %arg4[%c51_i32_637, %c0_i32_638] : memref<64x128xf32, #tpu.memory_space<vmem>> -> memref<1x128xf32, #tpu.memory_space<vmem>>
    %654 = tpu.memref_slice %arg5[%c0_i32_635] : memref<1x!tpu.dma_semaphore, #tpu.memory_space<semaphore_mem>> -> memref<1x!tpu.dma_semaphore, #tpu.memory_space<semaphore_mem>>
    %655 = tpu.memref_squeeze %654 : memref<1x!tpu.dma_semaphore, #tpu.memory_space<semaphore_mem>> -> memref<!tpu.dma_semaphore, #tpu.memory_space<semaphore_mem>>
    tpu.wait_dma2 semaphore(%655 : memref<!tpu.dma_semaphore, #tpu.memory_space<semaphore_mem>>) src(%652 : memref<1x128xf32, #tpu.memory_space<any>>) dst(%653 : memref<1x128xf32, #tpu.memory_space<vmem>>)
    %c0_i32_639 = arith.constant 0 : i32
    %c0_i32_640 = arith.constant 0 : i32
    %656 = tpu.memref_slice %arg2[%366, %c0_i32_640] : memref<2048x128xf32, #tpu.memory_space<any>> -> memref<1x128xf32, #tpu.memory_space<any>>
    %c52_i32_641 = arith.constant 52 : i32
    %c0_i32_642 = arith.constant 0 : i32
    %657 = tpu.memref_slice %arg4[%c52_i32_641, %c0_i32_642] : memref<64x128xf32, #tpu.memory_space<vmem>> -> memref<1x128xf32, #tpu.memory_space<vmem>>
    %658 = tpu.memref_slice %arg5[%c0_i32_639] : memref<1x!tpu.dma_semaphore, #tpu.memory_space<semaphore_mem>> -> memref<1x!tpu.dma_semaphore, #tpu.memory_space<semaphore_mem>>
    %659 = tpu.memref_squeeze %658 : memref<1x!tpu.dma_semaphore, #tpu.memory_space<semaphore_mem>> -> memref<!tpu.dma_semaphore, #tpu.memory_space<semaphore_mem>>
    tpu.wait_dma2 semaphore(%659 : memref<!tpu.dma_semaphore, #tpu.memory_space<semaphore_mem>>) src(%656 : memref<1x128xf32, #tpu.memory_space<any>>) dst(%657 : memref<1x128xf32, #tpu.memory_space<vmem>>)
    %c0_i32_643 = arith.constant 0 : i32
    %c0_i32_644 = arith.constant 0 : i32
    %660 = tpu.memref_slice %arg2[%373, %c0_i32_644] : memref<2048x128xf32, #tpu.memory_space<any>> -> memref<1x128xf32, #tpu.memory_space<any>>
    %c53_i32_645 = arith.constant 53 : i32
    %c0_i32_646 = arith.constant 0 : i32
    %661 = tpu.memref_slice %arg4[%c53_i32_645, %c0_i32_646] : memref<64x128xf32, #tpu.memory_space<vmem>> -> memref<1x128xf32, #tpu.memory_space<vmem>>
    %662 = tpu.memref_slice %arg5[%c0_i32_643] : memref<1x!tpu.dma_semaphore, #tpu.memory_space<semaphore_mem>> -> memref<1x!tpu.dma_semaphore, #tpu.memory_space<semaphore_mem>>
    %663 = tpu.memref_squeeze %662 : memref<1x!tpu.dma_semaphore, #tpu.memory_space<semaphore_mem>> -> memref<!tpu.dma_semaphore, #tpu.memory_space<semaphore_mem>>
    tpu.wait_dma2 semaphore(%663 : memref<!tpu.dma_semaphore, #tpu.memory_space<semaphore_mem>>) src(%660 : memref<1x128xf32, #tpu.memory_space<any>>) dst(%661 : memref<1x128xf32, #tpu.memory_space<vmem>>)
    %c0_i32_647 = arith.constant 0 : i32
    %c0_i32_648 = arith.constant 0 : i32
    %664 = tpu.memref_slice %arg2[%380, %c0_i32_648] : memref<2048x128xf32, #tpu.memory_space<any>> -> memref<1x128xf32, #tpu.memory_space<any>>
    %c54_i32_649 = arith.constant 54 : i32
    %c0_i32_650 = arith.constant 0 : i32
    %665 = tpu.memref_slice %arg4[%c54_i32_649, %c0_i32_650] : memref<64x128xf32, #tpu.memory_space<vmem>> -> memref<1x128xf32, #tpu.memory_space<vmem>>
    %666 = tpu.memref_slice %arg5[%c0_i32_647] : memref<1x!tpu.dma_semaphore, #tpu.memory_space<semaphore_mem>> -> memref<1x!tpu.dma_semaphore, #tpu.memory_space<semaphore_mem>>
    %667 = tpu.memref_squeeze %666 : memref<1x!tpu.dma_semaphore, #tpu.memory_space<semaphore_mem>> -> memref<!tpu.dma_semaphore, #tpu.memory_space<semaphore_mem>>
    tpu.wait_dma2 semaphore(%667 : memref<!tpu.dma_semaphore, #tpu.memory_space<semaphore_mem>>) src(%664 : memref<1x128xf32, #tpu.memory_space<any>>) dst(%665 : memref<1x128xf32, #tpu.memory_space<vmem>>)
    %c0_i32_651 = arith.constant 0 : i32
    %c0_i32_652 = arith.constant 0 : i32
    %668 = tpu.memref_slice %arg2[%387, %c0_i32_652] : memref<2048x128xf32, #tpu.memory_space<any>> -> memref<1x128xf32, #tpu.memory_space<any>>
    %c55_i32_653 = arith.constant 55 : i32
    %c0_i32_654 = arith.constant 0 : i32
    %669 = tpu.memref_slice %arg4[%c55_i32_653, %c0_i32_654] : memref<64x128xf32, #tpu.memory_space<vmem>> -> memref<1x128xf32, #tpu.memory_space<vmem>>
    %670 = tpu.memref_slice %arg5[%c0_i32_651] : memref<1x!tpu.dma_semaphore, #tpu.memory_space<semaphore_mem>> -> memref<1x!tpu.dma_semaphore, #tpu.memory_space<semaphore_mem>>
    %671 = tpu.memref_squeeze %670 : memref<1x!tpu.dma_semaphore, #tpu.memory_space<semaphore_mem>> -> memref<!tpu.dma_semaphore, #tpu.memory_space<semaphore_mem>>
    tpu.wait_dma2 semaphore(%671 : memref<!tpu.dma_semaphore, #tpu.memory_space<semaphore_mem>>) src(%668 : memref<1x128xf32, #tpu.memory_space<any>>) dst(%669 : memref<1x128xf32, #tpu.memory_space<vmem>>)
    %c0_i32_655 = arith.constant 0 : i32
    %c0_i32_656 = arith.constant 0 : i32
    %672 = tpu.memref_slice %arg2[%394, %c0_i32_656] : memref<2048x128xf32, #tpu.memory_space<any>> -> memref<1x128xf32, #tpu.memory_space<any>>
    %c56_i32_657 = arith.constant 56 : i32
    %c0_i32_658 = arith.constant 0 : i32
    %673 = tpu.memref_slice %arg4[%c56_i32_657, %c0_i32_658] : memref<64x128xf32, #tpu.memory_space<vmem>> -> memref<1x128xf32, #tpu.memory_space<vmem>>
    %674 = tpu.memref_slice %arg5[%c0_i32_655] : memref<1x!tpu.dma_semaphore, #tpu.memory_space<semaphore_mem>> -> memref<1x!tpu.dma_semaphore, #tpu.memory_space<semaphore_mem>>
    %675 = tpu.memref_squeeze %674 : memref<1x!tpu.dma_semaphore, #tpu.memory_space<semaphore_mem>> -> memref<!tpu.dma_semaphore, #tpu.memory_space<semaphore_mem>>
    tpu.wait_dma2 semaphore(%675 : memref<!tpu.dma_semaphore, #tpu.memory_space<semaphore_mem>>) src(%672 : memref<1x128xf32, #tpu.memory_space<any>>) dst(%673 : memref<1x128xf32, #tpu.memory_space<vmem>>)
    %c0_i32_659 = arith.constant 0 : i32
    %c0_i32_660 = arith.constant 0 : i32
    %676 = tpu.memref_slice %arg2[%401, %c0_i32_660] : memref<2048x128xf32, #tpu.memory_space<any>> -> memref<1x128xf32, #tpu.memory_space<any>>
    %c57_i32_661 = arith.constant 57 : i32
    %c0_i32_662 = arith.constant 0 : i32
    %677 = tpu.memref_slice %arg4[%c57_i32_661, %c0_i32_662] : memref<64x128xf32, #tpu.memory_space<vmem>> -> memref<1x128xf32, #tpu.memory_space<vmem>>
    %678 = tpu.memref_slice %arg5[%c0_i32_659] : memref<1x!tpu.dma_semaphore, #tpu.memory_space<semaphore_mem>> -> memref<1x!tpu.dma_semaphore, #tpu.memory_space<semaphore_mem>>
    %679 = tpu.memref_squeeze %678 : memref<1x!tpu.dma_semaphore, #tpu.memory_space<semaphore_mem>> -> memref<!tpu.dma_semaphore, #tpu.memory_space<semaphore_mem>>
    tpu.wait_dma2 semaphore(%679 : memref<!tpu.dma_semaphore, #tpu.memory_space<semaphore_mem>>) src(%676 : memref<1x128xf32, #tpu.memory_space<any>>) dst(%677 : memref<1x128xf32, #tpu.memory_space<vmem>>)
    %c0_i32_663 = arith.constant 0 : i32
    %c0_i32_664 = arith.constant 0 : i32
    %680 = tpu.memref_slice %arg2[%408, %c0_i32_664] : memref<2048x128xf32, #tpu.memory_space<any>> -> memref<1x128xf32, #tpu.memory_space<any>>
    %c58_i32_665 = arith.constant 58 : i32
    %c0_i32_666 = arith.constant 0 : i32
    %681 = tpu.memref_slice %arg4[%c58_i32_665, %c0_i32_666] : memref<64x128xf32, #tpu.memory_space<vmem>> -> memref<1x128xf32, #tpu.memory_space<vmem>>
    %682 = tpu.memref_slice %arg5[%c0_i32_663] : memref<1x!tpu.dma_semaphore, #tpu.memory_space<semaphore_mem>> -> memref<1x!tpu.dma_semaphore, #tpu.memory_space<semaphore_mem>>
    %683 = tpu.memref_squeeze %682 : memref<1x!tpu.dma_semaphore, #tpu.memory_space<semaphore_mem>> -> memref<!tpu.dma_semaphore, #tpu.memory_space<semaphore_mem>>
    tpu.wait_dma2 semaphore(%683 : memref<!tpu.dma_semaphore, #tpu.memory_space<semaphore_mem>>) src(%680 : memref<1x128xf32, #tpu.memory_space<any>>) dst(%681 : memref<1x128xf32, #tpu.memory_space<vmem>>)
    %c0_i32_667 = arith.constant 0 : i32
    %c0_i32_668 = arith.constant 0 : i32
    %684 = tpu.memref_slice %arg2[%415, %c0_i32_668] : memref<2048x128xf32, #tpu.memory_space<any>> -> memref<1x128xf32, #tpu.memory_space<any>>
    %c59_i32_669 = arith.constant 59 : i32
    %c0_i32_670 = arith.constant 0 : i32
    %685 = tpu.memref_slice %arg4[%c59_i32_669, %c0_i32_670] : memref<64x128xf32, #tpu.memory_space<vmem>> -> memref<1x128xf32, #tpu.memory_space<vmem>>
    %686 = tpu.memref_slice %arg5[%c0_i32_667] : memref<1x!tpu.dma_semaphore, #tpu.memory_space<semaphore_mem>> -> memref<1x!tpu.dma_semaphore, #tpu.memory_space<semaphore_mem>>
    %687 = tpu.memref_squeeze %686 : memref<1x!tpu.dma_semaphore, #tpu.memory_space<semaphore_mem>> -> memref<!tpu.dma_semaphore, #tpu.memory_space<semaphore_mem>>
    tpu.wait_dma2 semaphore(%687 : memref<!tpu.dma_semaphore, #tpu.memory_space<semaphore_mem>>) src(%684 : memref<1x128xf32, #tpu.memory_space<any>>) dst(%685 : memref<1x128xf32, #tpu.memory_space<vmem>>)
    %c0_i32_671 = arith.constant 0 : i32
    %c0_i32_672 = arith.constant 0 : i32
    %688 = tpu.memref_slice %arg2[%422, %c0_i32_672] : memref<2048x128xf32, #tpu.memory_space<any>> -> memref<1x128xf32, #tpu.memory_space<any>>
    %c60_i32_673 = arith.constant 60 : i32
    %c0_i32_674 = arith.constant 0 : i32
    %689 = tpu.memref_slice %arg4[%c60_i32_673, %c0_i32_674] : memref<64x128xf32, #tpu.memory_space<vmem>> -> memref<1x128xf32, #tpu.memory_space<vmem>>
    %690 = tpu.memref_slice %arg5[%c0_i32_671] : memref<1x!tpu.dma_semaphore, #tpu.memory_space<semaphore_mem>> -> memref<1x!tpu.dma_semaphore, #tpu.memory_space<semaphore_mem>>
    %691 = tpu.memref_squeeze %690 : memref<1x!tpu.dma_semaphore, #tpu.memory_space<semaphore_mem>> -> memref<!tpu.dma_semaphore, #tpu.memory_space<semaphore_mem>>
    tpu.wait_dma2 semaphore(%691 : memref<!tpu.dma_semaphore, #tpu.memory_space<semaphore_mem>>) src(%688 : memref<1x128xf32, #tpu.memory_space<any>>) dst(%689 : memref<1x128xf32, #tpu.memory_space<vmem>>)
    %c0_i32_675 = arith.constant 0 : i32
    %c0_i32_676 = arith.constant 0 : i32
    %692 = tpu.memref_slice %arg2[%429, %c0_i32_676] : memref<2048x128xf32, #tpu.memory_space<any>> -> memref<1x128xf32, #tpu.memory_space<any>>
    %c61_i32_677 = arith.constant 61 : i32
    %c0_i32_678 = arith.constant 0 : i32
    %693 = tpu.memref_slice %arg4[%c61_i32_677, %c0_i32_678] : memref<64x128xf32, #tpu.memory_space<vmem>> -> memref<1x128xf32, #tpu.memory_space<vmem>>
    %694 = tpu.memref_slice %arg5[%c0_i32_675] : memref<1x!tpu.dma_semaphore, #tpu.memory_space<semaphore_mem>> -> memref<1x!tpu.dma_semaphore, #tpu.memory_space<semaphore_mem>>
    %695 = tpu.memref_squeeze %694 : memref<1x!tpu.dma_semaphore, #tpu.memory_space<semaphore_mem>> -> memref<!tpu.dma_semaphore, #tpu.memory_space<semaphore_mem>>
    tpu.wait_dma2 semaphore(%695 : memref<!tpu.dma_semaphore, #tpu.memory_space<semaphore_mem>>) src(%692 : memref<1x128xf32, #tpu.memory_space<any>>) dst(%693 : memref<1x128xf32, #tpu.memory_space<vmem>>)
    %c0_i32_679 = arith.constant 0 : i32
    %c0_i32_680 = arith.constant 0 : i32
    %696 = tpu.memref_slice %arg2[%436, %c0_i32_680] : memref<2048x128xf32, #tpu.memory_space<any>> -> memref<1x128xf32, #tpu.memory_space<any>>
    %c62_i32_681 = arith.constant 62 : i32
    %c0_i32_682 = arith.constant 0 : i32
    %697 = tpu.memref_slice %arg4[%c62_i32_681, %c0_i32_682] : memref<64x128xf32, #tpu.memory_space<vmem>> -> memref<1x128xf32, #tpu.memory_space<vmem>>
    %698 = tpu.memref_slice %arg5[%c0_i32_679] : memref<1x!tpu.dma_semaphore, #tpu.memory_space<semaphore_mem>> -> memref<1x!tpu.dma_semaphore, #tpu.memory_space<semaphore_mem>>
    %699 = tpu.memref_squeeze %698 : memref<1x!tpu.dma_semaphore, #tpu.memory_space<semaphore_mem>> -> memref<!tpu.dma_semaphore, #tpu.memory_space<semaphore_mem>>
    tpu.wait_dma2 semaphore(%699 : memref<!tpu.dma_semaphore, #tpu.memory_space<semaphore_mem>>) src(%696 : memref<1x128xf32, #tpu.memory_space<any>>) dst(%697 : memref<1x128xf32, #tpu.memory_space<vmem>>)
    %c0_i32_683 = arith.constant 0 : i32
    %c0_i32_684 = arith.constant 0 : i32
    %700 = tpu.memref_slice %arg2[%443, %c0_i32_684] : memref<2048x128xf32, #tpu.memory_space<any>> -> memref<1x128xf32, #tpu.memory_space<any>>
    %c63_i32_685 = arith.constant 63 : i32
    %c0_i32_686 = arith.constant 0 : i32
    %701 = tpu.memref_slice %arg4[%c63_i32_685, %c0_i32_686] : memref<64x128xf32, #tpu.memory_space<vmem>> -> memref<1x128xf32, #tpu.memory_space<vmem>>
    %702 = tpu.memref_slice %arg5[%c0_i32_683] : memref<1x!tpu.dma_semaphore, #tpu.memory_space<semaphore_mem>> -> memref<1x!tpu.dma_semaphore, #tpu.memory_space<semaphore_mem>>
    %703 = tpu.memref_squeeze %702 : memref<1x!tpu.dma_semaphore, #tpu.memory_space<semaphore_mem>> -> memref<!tpu.dma_semaphore, #tpu.memory_space<semaphore_mem>>
    tpu.wait_dma2 semaphore(%703 : memref<!tpu.dma_semaphore, #tpu.memory_space<semaphore_mem>>) src(%700 : memref<1x128xf32, #tpu.memory_space<any>>) dst(%701 : memref<1x128xf32, #tpu.memory_space<vmem>>)
    %c0_687 = arith.constant 0 : index
    %c0_688 = arith.constant 0 : index
    %704 = vector.load %arg4[%c0_687, %c0_688] : memref<64x128xf32, #tpu.memory_space<vmem>>, vector<16x128xf32>
    %c16 = arith.constant 16 : index
    %c0_689 = arith.constant 0 : index
    %705 = vector.load %arg4[%c16, %c0_689] : memref<64x128xf32, #tpu.memory_space<vmem>>, vector<16x128xf32>
    %706 = arith.addf %704, %705 : vector<16x128xf32>
    %c32 = arith.constant 32 : index
    %c0_690 = arith.constant 0 : index
    %707 = vector.load %arg4[%c32, %c0_690] : memref<64x128xf32, #tpu.memory_space<vmem>>, vector<16x128xf32>
    %708 = arith.addf %706, %707 : vector<16x128xf32>
    %c48 = arith.constant 48 : index
    %c0_691 = arith.constant 0 : index
    %709 = vector.load %arg4[%c48, %c0_691] : memref<64x128xf32, #tpu.memory_space<vmem>>, vector<16x128xf32>
    %710 = arith.addf %708, %709 : vector<16x128xf32>
    %cst = arith.constant 2.500000e-01 : f32
    %711 = vector.broadcast %cst : f32 to vector<16x128xf32>
    %712 = arith.mulf %710, %711 : vector<16x128xf32>
    %c0_692 = arith.constant 0 : index
    %c0_693 = arith.constant 0 : index
    %713 = vector.load %arg3[%c0_692, %c0_693] : memref<16x128xf32, #tpu.memory_space<vmem>>, vector<16x128xf32>
    tpu.vector_store %arg3[%c0_692, %c0_693], %712 {strides = array<i32>} : memref<16x128xf32, #tpu.memory_space<vmem>>, vector<16x128xf32>,
    return
  }
  func.func @transform_1(%arg0: i32, %arg1: memref<16x4xi32, #tpu.memory_space<smem>>) -> (i32, i32) {
    %c0_i32 = arith.constant 0 : i32
    %c0_i32_0 = arith.constant 0 : i32
    %c0_i32_1 = arith.constant 0 : i32
    return %c0_i32, %c0_i32_0 : i32, i32
  }
}

</mosaic_0001>

<bundles_post_ra>
// kernel: tpu_custom_call.1
= control target key start
LH: loop header
LB: loop body
LE: loop exit
PB: predicated region body
PF: predicated region fallthrough
CT: control target
= control target key end

     0   :  { %s5047_s0 = inlined_call_operand.vmem [shape: s32[16,4], index: 0, kind: input, shape index: {}]   ;;  %s5048_s1 = inlined_call_operand.hbm [shape: f32[2048,128], index: 1, kind: input, shape index: {}]   ;;  %s5049_s2 = inlined_call_operand.hbm [shape: f32[16,128], index: 2, kind: output, shape index: {}]  }
   0x1   :  { %s7_s11 = sshll.u32 %s5047_s0, 4  ;;  %s8_s11 = int_to_ptr.vmem [resolvable:$true] %s7_s11 }
   0x2   :  { %s2170_s12 = scalar_lea.vmem %s8_s11, 256  ;;  %p2175_p1 = scmp.lt.s32.totalorder %s8_s11, %s8_s11 }
   0x3   :  { %p2171_p0 = scmp.ne.s32.totalorder %s8_s11, %s2170_s12  ;;  %p2176_p2 = scmp.lt.s32.totalorder %s2170_s12, %s2170_s12 }
   0x5   :  { %p2177_p3 = por %p2176_p2, %p2175_p1 }
   0x7   :  { %p2178_p4 = pnand %p2177_p3, %p2171_p0 }
   0x9   :  { %2181 = shalt.err (!%p2178_p4)  }
   0xa   :  { %s3616_s13 = smov [#allocation5]  }
   0xb   :  { %10 = dma.vmem_to_smem %s8_s11, 256, %s3616_s13, [#allocation4] }
   0xc   :  { %3610 = dma.done.wait [#allocation4], 256 }
   0xd   :  { %3611 = vsyncadd [#allocation4], 4294967040 }
   0xe   :  { %12 = sfence }
   0xf   :  { %13 = vsyncpa [#allocation7], 0  ;;  %s14_s14 = sld [smem:[#allocation5]]  ;;  %s3617_s15 = smov [#allocation2]  }
  0x10   :  { %s28_s16 = sshll.u32 %s3617_s15, 4  ;;  %s1532_s17 = sld [smem:[#allocation5 + $0x80]]  ;;  %s3702_s16 = int_to_ptr.vmem [resolvable:$true] %s28_s16 }
  0x11   :  { %s3618_s0 = smov [#allocation2 + $0x1]   ;;  %s3704_s19 = sld [smem:[#allocation5 + $0x100]] }
  0x12   :  { %s47_s18 = sshll.u32 %s3618_s0, 4  ;;  %s3619_s20 = smov [#allocation2 + $0x2]   ;;  %s3706_s18 = int_to_ptr.vmem [resolvable:$true] %s47_s18 }
  0x13   :  { %s3708_s21 = sshll.u32 %s3619_s20, 4  ;;  %s3710_s22 = sld [smem:[#allocation5 + $0x180]]  ;;  %s67_s21 = int_to_ptr.vmem [resolvable:$true] %s3708_s21 }
  0x14   :  { %s3719_s3 = scalar_lea.hbm %s5048_s1, 32768 }
  0x15   :  { %p15_p5 = scmp.gt.s32.totalorder %s14_s14, 0  ;;  %p1526_p6 = scmp.lt.s32.totalorder %s14_s14, 2047 }
  0x16   :  { %p33_p7 = scmp.gt.s32.totalorder %s1532_s17, 0  ;;  %p1533_p8 = scmp.lt.s32.totalorder %s1532_s17, 2047 }
  0x17   :  { %s5051_s14 = smov (!%p15_p5, %s14_s14), 0  ;;  %p52_p9 = scmp.gt.s32.totalorder %s3704_s19, 0 }
  0x18   :  { %s5053_s17 = smov (!%p33_p7, %s1532_s17), 0  ;;  %s5055_s14 = smov (!%p1526_p6, %s5051_s14), 2047 }
  0x19   :  { %s5057_s17 = smov (!%p1533_p8, %s5053_s17), 2047  ;;  %s1531_s23 = sshll.u32 %s5055_s14, 4 }
  0x1a   :  { %s20_s26 = scalar_lea.hbm %s5048_s1, %s1531_s23  ;;  %s1538_s27 = sshll.u32 %s5057_s17, 4 }
  0x1b   :  { %s2182_s28 = scalar_lea.hbm %s20_s26, 16  ;;  %p2185_p11 = scmp.lt.s32.totalorder %s20_s26, %s5048_s1 }
  0x1c   :  { %p2183_p10 = scmp.ne.s32.totalorder %s20_s26, %s2182_s28  ;;  %p2186_p12 = scmp.lt.s32.totalorder %s3719_s3, %s2182_s28 }
  0x1e   :  { %p2187_p13 = por %p2186_p12, %p2185_p11 }
  0x20   :  { %p2188_p0 = pnand %p2187_p13, %p2183_p10 }
  0x22   :  { %2191 = shalt.err (!%p2188_p0)  }
  0x23   :  { %s2192_s6 = scalar_lea.vmem %s3702_s16, 16  ;;  %s3728_s7 = scalar_lea.vmem %s3702_s16, 1024 }
  0x24   :  { %p2193_p1 = scmp.ne.s32.totalorder %s3702_s16, %s2192_s6  ;;  %p2197_p2 = scmp.lt.s32.totalorder %s3702_s16, %s3702_s16 }
  0x25   :  { %p2198_p3 = scmp.lt.s32.totalorder %s3728_s7, %s2192_s6 }
  0x27   :  { %p2199_p4 = por %p2198_p3, %p2197_p2 }
  0x29   :  { %p2200_p5 = pnand %p2199_p4, %p2193_p1 }
  0x2b   :  { %2203 = shalt.err (!%p2200_p5)  }
  0x2c   :  { %31 = dma.hbm_to_vmem [thread:$0]  %s20_s26, 16, %s3702_s16, [#allocation3] }
  0x2d   :  { %s38_s10 = scalar_lea.hbm %s5048_s1, %s1538_s27  ;;  %p1540_p6 = scmp.lt.s32.totalorder %s3704_s19, 2047 }
  0x2e   :  { %s2204_s11 = scalar_lea.hbm %s38_s10, 16  ;;  %p2207_p8 = scmp.lt.s32.totalorder %s38_s10, %s5048_s1 }
  0x2f   :  { %p2205_p7 = scmp.ne.s32.totalorder %s38_s10, %s2204_s11  ;;  %p2208_p10 = scmp.lt.s32.totalorder %s3719_s3, %s2204_s11 }
  0x31   :  { %p2209_p11 = por %p2208_p10, %p2207_p8 }
  0x33   :  { %p2210_p12 = pnand %p2209_p11, %p2205_p7 }
  0x35   :  { %2213 = shalt.err (!%p2210_p12)  }
  0x36   :  { %s2214_s14 = scalar_lea.vmem %s3706_s18, 16  ;;  %p2219_p0 = scmp.lt.s32.totalorder %s3706_s18, %s3702_s16 }
  0x37   :  { %p2215_p13 = scmp.ne.s32.totalorder %s3706_s18, %s2214_s14  ;;  %p2220_p1 = scmp.lt.s32.totalorder %s3728_s7, %s2214_s14 }
  0x39   :  { %p2221_p2 = por %p2220_p1, %p2219_p0 }
  0x3b   :  { %p2222_p3 = pnand %p2221_p2, %p2215_p13 }
  0x3d   :  { %2225 = shalt.err (!%p2222_p3)  }
  0x3e   :  { %50 = dma.hbm_to_vmem [thread:$0]  %s38_s10, 16, %s3706_s18, [#allocation3] }
  0x3f   :  { %s53_s15 = scalar_select %p52_p9, %s3704_s19, 0 }
  0x40   :  { %p71_p4 = scmp.gt.s32.totalorder %s3710_s22, 0  ;;  %p1547_p5 = scmp.lt.s32.totalorder %s3710_s22, 2047 }
  0x41   :  { %s5059_s15 = smov (!%p1540_p6, %s53_s15), 2047 }
  0x42   :  { %s72_s17 = scalar_select %p71_p4, %s3710_s22, 0 }
  0x43   :  { %s1545_s0 = sshll.u32 %s5059_s15, 4 }
  0x44   :  { %s57_s24 = scalar_lea.hbm %s5048_s1, %s1545_s0 }
  0x45   :  { %s2226_s25 = scalar_lea.hbm %s57_s24, 16  ;;  %p2229_p8 = scmp.lt.s32.totalorder %s57_s24, %s5048_s1 }
  0x46   :  { %p2227_p7 = scmp.ne.s32.totalorder %s57_s24, %s2226_s25  ;;  %p2230_p10 = scmp.lt.s32.totalorder %s3719_s3, %s2226_s25 }
  0x48   :  { %p2231_p11 = por %p2230_p10, %p2229_p8 }
  0x4a   :  { %p2232_p9 = pnand %p2231_p11, %p2227_p7 }
  0x4c   :  { %2235 = shalt.err (!%p2232_p9)  }
  0x4d   :  { %s2236_s18 = scalar_lea.vmem %s67_s21, 16  ;;  %p2241_p12 = scmp.lt.s32.totalorder %s67_s21, %s3702_s16 }
  0x4e   :  { %p2237_p6 = scmp.ne.s32.totalorder %s67_s21, %s2236_s18  ;;  %p2242_p13 = scmp.lt.s32.totalorder %s3728_s7, %s2236_s18 }
  0x50   :  { %p2243_p0 = por %p2242_p13, %p2241_p12 }
  0x52   :  { %p2244_p1 = pnand %p2243_p0, %p2237_p6 }
  0x54   :  { %2247 = shalt.err (!%p2244_p1)  }
  0x55   :  { %69 = dma.hbm_to_vmem [thread:$0]  %s57_s24, 16, %s67_s21, [#allocation3] }
  0x56   :  { %s5061_s17 = smov (!%p1547_p5, %s72_s17), 2047  ;;  %s3620_s19 = smov [#allocation2 + $0x3]  }
  0x57   :  { %s85_s28 = sshll.u32 %s3620_s19, 4  ;;  %s3768_s29 = sld [smem:[#allocation5 + $0x200]]  ;;  %s86_s28 = int_to_ptr.vmem [resolvable:$true] %s85_s28 }
  0x58   :  { %s1552_s30 = sshll.u32 %s5061_s17, 4 }
  0x59   :  { %s76_s6 = scalar_lea.hbm %s5048_s1, %s1552_s30 }
  0x5a   :  { %s2248_s8 = scalar_lea.hbm %s76_s6, 16  ;;  %p2251_p3 = scmp.lt.s32.totalorder %s76_s6, %s5048_s1 }
  0x5b   :  { %p2249_p2 = scmp.ne.s32.totalorder %s76_s6, %s2248_s8  ;;  %p2252_p4 = scmp.lt.s32.totalorder %s3719_s3, %s2248_s8 }
  0x5d   :  { %p2253_p7 = por %p2252_p4, %p2251_p3 }
  0x5f   :  { %p2254_p8 = pnand %p2253_p7, %p2249_p2 }
  0x61   :  { %2257 = shalt.err (!%p2254_p8)  }
  0x62   :  { %s2258_s21 = scalar_lea.vmem %s86_s28, 16  ;;  %p2263_p10 = scmp.lt.s32.totalorder %s86_s28, %s3702_s16 }
  0x63   :  { %p2259_p5 = scmp.ne.s32.totalorder %s86_s28, %s2258_s21  ;;  %p2264_p11 = scmp.lt.s32.totalorder %s3728_s7, %s2258_s21 }
  0x65   :  { %p2265_p9 = por %p2264_p11, %p2263_p10 }
  0x67   :  { %p2266_p6 = pnand %p2265_p9, %p2259_p5 }
  0x69   :  { %2269 = shalt.err (!%p2266_p6)  }
  0x6a   :  { %88 = dma.hbm_to_vmem [thread:$0]  %s76_s6, 16, %s86_s28, [#allocation3] }
  0x6b   :  { %s3621_s22 = smov [#allocation2 + $0x4]   ;;  %s3779_s12 = sld [smem:[#allocation5 + $0x280]] }
  0x6c   :  { %s104_s11 = sshll.u32 %s3621_s22, 4  ;;  %p90_p12 = scmp.gt.s32.totalorder %s3768_s29, 0  ;;  %s3781_s11 = int_to_ptr.vmem [resolvable:$true] %s104_s11 }
  0x6d   :  { %p1554_p13 = scmp.lt.s32.totalorder %s3768_s29, 2047  ;;  %s3622_s13 = smov [#allocation2 + $0x5]  }
  0x6e   :  { %s123_s14 = sshll.u32 %s3622_s13, 4  ;;  %s3785_s15 = sld [smem:[#allocation5 + $0x300]]  ;;  %s3788_s14 = int_to_ptr.vmem [resolvable:$true] %s123_s14 }
  0x6f   :  { %s5063_s29 = smov (!%p90_p12, %s3768_s29), 0  ;;  %s3623_s0 = smov [#allocation2 + $0x6]  }
  0x70   :  { %s5065_s29 = smov (!%p1554_p13, %s5063_s29), 2047  ;;  %s142_s20 = sshll.u32 %s3623_s0, 4  ;;  %s3815_s20 = int_to_ptr.vmem [resolvable:$true] %s142_s20 }
  0x71   :  { %p109_p0 = scmp.gt.s32.totalorder %s3779_s12, 0  ;;  %p1561_p1 = scmp.lt.s32.totalorder %s3779_s12, 2047 }
  0x72   :  { %s1559_s17 = sshll.u32 %s5065_s29, 4 }
  0x73   :  { %s95_s25 = scalar_lea.hbm %s5048_s1, %s1559_s17 }
  0x74   :  { %p128_p2 = scmp.gt.s32.totalorder %s3785_s15, 0  ;;  %s2270_s26 = scalar_lea.hbm %s95_s25, 16 }
  0x75   :  { %p2271_p3 = scmp.ne.s32.totalorder %s95_s25, %s2270_s26  ;;  %p2273_p4 = scmp.lt.s32.totalorder %s95_s25, %s5048_s1 }
  0x76   :  { %p2274_p7 = scmp.lt.s32.totalorder %s3719_s3, %s2270_s26 }
  0x78   :  { %p2275_p8 = por %p2274_p7, %p2273_p4 }
  0x7a   :  { %p2276_p5 = pnand %p2275_p8, %p2271_p3 }
  0x7c   :  { %2279 = shalt.err (!%p2276_p5)  }
  0x7d   :  { %s2280_s19 = scalar_lea.vmem %s3781_s11, 16  ;;  %p2285_p11 = scmp.lt.s32.totalorder %s3781_s11, %s3702_s16 }
  0x7e   :  { %p2281_p10 = scmp.ne.s32.totalorder %s3781_s11, %s2280_s19  ;;  %p2286_p9 = scmp.lt.s32.totalorder %s3728_s7, %s2280_s19 }
  0x80   :  { %p2287_p6 = por %p2286_p9, %p2285_p11 }
  0x82   :  { %p2288_p12 = pnand %p2287_p6, %p2281_p10 }
  0x84   :  { %2291 = shalt.err (!%p2288_p12)  }
  0x85   :  { %107 = dma.hbm_to_vmem [thread:$0]  %s95_s25, 16, %s3781_s11, [#allocation3] }
  0x86   :  { %s110_s28 = scalar_select %p109_p0, %s3779_s12, 0 }
  0x87   :  { %s129_s29 = scalar_select %p128_p2, %s3785_s15, 0 }
  0x88   :  { %s5067_s28 = smov (!%p1561_p1, %s110_s28), 2047  ;;  %p1568_p13 = scmp.lt.s32.totalorder %s3785_s15, 2047 }
  0x89   :  { %s1566_s30 = sshll.u32 %s5067_s28, 4  ;;  %s3817_s4 = sld [smem:[#allocation5 + $0x380]] }
  0x8a   :  { %s114_s8 = scalar_lea.hbm %s5048_s1, %s1566_s30 }
  0x8b   :  { %s2292_s9 = scalar_lea.hbm %s114_s8, 16  ;;  %p2295_p0 = scmp.lt.s32.totalorder %s114_s8, %s5048_s1 }
  0x8c   :  { %p2293_p3 = scmp.ne.s32.totalorder %s114_s8, %s2292_s9  ;;  %p2296_p4 = scmp.lt.s32.totalorder %s3719_s3, %s2292_s9 }
  0x8e   :  { %p2297_p2 = por %p2296_p4, %p2295_p0 }
  0x90   :  { %p2298_p7 = pnand %p2297_p2, %p2293_p3 }
  0x92   :  { %2301 = shalt.err (!%p2298_p7)  }
  0x93   :  { %s2302_s22 = scalar_lea.vmem %s3788_s14, 16  ;;  %p2307_p8 = scmp.lt.s32.totalorder %s3788_s14, %s3702_s16 }
  0x94   :  { %p2303_p1 = scmp.ne.s32.totalorder %s3788_s14, %s2302_s22  ;;  %p2308_p5 = scmp.lt.s32.totalorder %s3728_s7, %s2302_s22 }
  0x96   :  { %p2309_p10 = por %p2308_p5, %p2307_p8 }
  0x98   :  { %p2310_p11 = pnand %p2309_p10, %p2303_p1 }
  0x9a   :  { %2313 = shalt.err (!%p2310_p11)  }
  0x9b   :  { %126 = dma.hbm_to_vmem [thread:$0]  %s114_s8, 16, %s3788_s14, [#allocation3] }
  0x9c   :  { %s5069_s29 = smov (!%p1568_p13, %s129_s29), 2047  ;;  %s3624_s11 = smov [#allocation2 + $0x7]  }
  0x9d   :  { %s161_s12 = sshll.u32 %s3624_s11, 4  ;;  %s3834_s13 = sld [smem:[#allocation5 + $0x400]]  ;;  %s3836_s12 = int_to_ptr.vmem [resolvable:$true] %s161_s12 }
  0x9e   :  { %s1573_s17 = sshll.u32 %s5069_s29, 4  ;;  %p147_p9 = scmp.gt.s32.totalorder %s3817_s4, 0 }
  0x9f   :  { %s133_s24 = scalar_lea.hbm %s5048_s1, %s1573_s17 }
  0xa0   :  { %s2314_s25 = scalar_lea.hbm %s133_s24, 16  ;;  %p2317_p12 = scmp.lt.s32.totalorder %s133_s24, %s5048_s1 }
  0xa1   :  { %p2315_p6 = scmp.ne.s32.totalorder %s133_s24, %s2314_s25  ;;  %p2318_p3 = scmp.lt.s32.totalorder %s3719_s3, %s2314_s25 }
  0xa3   :  { %p2319_p13 = por %p2318_p3, %p2317_p12 }
  0xa5   :  { %p2320_p0 = pnand %p2319_p13, %p2315_p6 }
  0xa7   :  { %2323 = shalt.err (!%p2320_p0)  }
  0xa8   :  { %s2324_s14 = scalar_lea.vmem %s3815_s20, 16  ;;  %p2329_p2 = scmp.lt.s32.totalorder %s3815_s20, %s3702_s16 }
  0xa9   :  { %p2325_p4 = scmp.ne.s32.totalorder %s3815_s20, %s2324_s14  ;;  %p2330_p7 = scmp.lt.s32.totalorder %s3728_s7, %s2324_s14 }
  0xab   :  { %p2331_p1 = por %p2330_p7, %p2329_p2 }
  0xad   :  { %p2332_p8 = pnand %p2331_p1, %p2325_p4 }
  0xaf   :  { %2335 = shalt.err (!%p2332_p8)  }
  0xb0   :  { %145 = dma.hbm_to_vmem [thread:$0]  %s133_s24, 16, %s3815_s20, [#allocation3] }
  0xb1   :  { %s148_s15 = scalar_select %p147_p9, %s3817_s4, 0 }
  0xb2   :  { %p1575_p5 = scmp.lt.s32.totalorder %s3817_s4, 2047  ;;  %p166_p10 = scmp.gt.s32.totalorder %s3834_s13, 0 }
  0xb3   :  { %p1582_p11 = scmp.lt.s32.totalorder %s3834_s13, 2047  ;;  %s3625_s28 = smov [#allocation2 + $0x8]  }
  0xb4   :  { %s5071_s15 = smov (!%p1575_p5, %s148_s15), 2047  ;;  %s180_s29 = sshll.u32 %s3625_s28, 4  ;;  %s3862_s29 = int_to_ptr.vmem [resolvable:$true] %s180_s29 }
  0xb5   :  { %s167_s18 = scalar_select %p166_p10, %s3834_s13, 0 }
  0xb6   :  { %s1580_s19 = sshll.u32 %s5071_s15, 4 }
  0xb7   :  { %s152_s6 = scalar_lea.hbm %s5048_s1, %s1580_s19 }
  0xb8   :  { %s2336_s8 = scalar_lea.hbm %s152_s6, 16  ;;  %p2339_p9 = scmp.lt.s32.totalorder %s152_s6, %s5048_s1 }
  0xb9   :  { %p2337_p6 = scmp.ne.s32.totalorder %s152_s6, %s2336_s8  ;;  %p2340_p12 = scmp.lt.s32.totalorder %s3719_s3, %s2336_s8 }
  0xbb   :  { %p2341_p3 = por %p2340_p12, %p2339_p9 }
  0xbd   :  { %p2342_p13 = pnand %p2341_p3, %p2337_p6 }
  0xbf   :  { %2345 = shalt.err (!%p2342_p13)  }
  0xc0   :  { %s2346_s4 = scalar_lea.vmem %s3836_s12, 16  ;;  %p2351_p4 = scmp.lt.s32.totalorder %s3836_s12, %s3702_s16 }
  0xc1   :  { %p2347_p0 = scmp.ne.s32.totalorder %s3836_s12, %s2346_s4  ;;  %p2352_p2 = scmp.lt.s32.totalorder %s3728_s7, %s2346_s4 }
  0xc3   :  { %p2353_p7 = por %p2352_p2, %p2351_p4 }
  0xc5   :  { %p2354_p1 = pnand %p2353_p7, %p2347_p0 }
  0xc7   :  { %2357 = shalt.err (!%p2354_p1)  }
  0xc8   :  { %164 = dma.hbm_to_vmem [thread:$0]  %s152_s6, 16, %s3836_s12, [#allocation3] }
  0xc9   :  { %s5073_s18 = smov (!%p1582_p11, %s167_s18), 2047  ;;  %s3876_s10 = sld [smem:[#allocation5 + $0x480]] }
  0xca   :  { %s1587_s21 = sshll.u32 %s5073_s18, 4  ;;  %s3626_s22 = smov [#allocation2 + $0x9]  }
  0xcb   :  { %s199_s11 = sshll.u32 %s3626_s22, 4  ;;  %s171_s23 = scalar_lea.hbm %s5048_s1, %s1587_s21  ;;  %s3881_s11 = int_to_ptr.vmem [resolvable:$true] %s199_s11 }
  0xcc   :  { %s2358_s24 = scalar_lea.hbm %s171_s23, 16  ;;  %p2361_p5 = scmp.lt.s32.totalorder %s171_s23, %s5048_s1 }
  0xcd   :  { %p2359_p8 = scmp.ne.s32.totalorder %s171_s23, %s2358_s24  ;;  %p2362_p10 = scmp.lt.s32.totalorder %s3719_s3, %s2358_s24 }
  0xcf   :  { %p2363_p6 = por %p2362_p10, %p2361_p5 }
  0xd1   :  { %p2364_p11 = pnand %p2363_p6, %p2359_p8 }
  0xd3   :  { %2367 = shalt.err (!%p2364_p11)  }
  0xd4   :  { %s2368_s12 = scalar_lea.vmem %s3862_s29, 16  ;;  %p2373_p12 = scmp.lt.s32.totalorder %s3862_s29, %s3702_s16 }
  0xd5   :  { %p2369_p9 = scmp.ne.s32.totalorder %s3862_s29, %s2368_s12  ;;  %p2374_p3 = scmp.lt.s32.totalorder %s3728_s7, %s2368_s12 }
  0xd7   :  { %p2375_p13 = por %p2374_p3, %p2373_p12 }
  0xd9   :  { %p2376_p0 = pnand %p2375_p13, %p2369_p9 }
  0xdb   :  { %2379 = shalt.err (!%p2376_p0)  }
  0xdc   :  { %183 = dma.hbm_to_vmem [thread:$0]  %s171_s23, 16, %s3862_s29, [#allocation3] }
  0xdd   :  { %s3893_s13 = sld [smem:[#allocation5 + $0x500]]  ;;  %s3627_s27 = smov [#allocation2 + $0xa]  }
  0xde   :  { %s218_s14 = sshll.u32 %s3627_s27, 4  ;;  %s3895_s15 = sld [smem:[#allocation5 + $0x580]]  ;;  %s3899_s14 = int_to_ptr.vmem [resolvable:$true] %s218_s14 }
  0xdf   :  { %p185_p4 = scmp.gt.s32.totalorder %s3876_s10, 0  ;;  %p1589_p2 = scmp.lt.s32.totalorder %s3876_s10, 2047 }
  0xe0   :  { %s3628_s18 = smov [#allocation2 + $0xb]   ;;  %s3902_s28 = sld [smem:[#allocation5 + $0x600]] }
  0xe1   :  { %s5075_s10 = smov (!%p185_p4, %s3876_s10), 0  ;;  %s237_s19 = sshll.u32 %s3628_s18, 4  ;;  %s3931_s19 = int_to_ptr.vmem [resolvable:$true] %s237_s19 }
  0xe2   :  { %s5077_s10 = smov (!%p1589_p2, %s5075_s10), 2047 }
  0xe3   :  { %p204_p7 = scmp.gt.s32.totalorder %s3893_s13, 0  ;;  %p1596_p1 = scmp.lt.s32.totalorder %s3893_s13, 2047 }
  0xe4   :  { %s1594_s29 = sshll.u32 %s5077_s10, 4  ;;  %p223_p8 = scmp.gt.s32.totalorder %s3895_s15, 0 }
  0xe5   :  { %s190_s6 = scalar_lea.hbm %s5048_s1, %s1594_s29  ;;  %p1603_p5 = scmp.lt.s32.totalorder %s3895_s15, 2047 }
  0xe6   :  { %s2380_s8 = scalar_lea.hbm %s190_s6, 16  ;;  %p2383_p6 = scmp.lt.s32.totalorder %s190_s6, %s5048_s1 }
  0xe7   :  { %p2381_p10 = scmp.ne.s32.totalorder %s190_s6, %s2380_s8  ;;  %p2384_p11 = scmp.lt.s32.totalorder %s3719_s3, %s2380_s8 }
  0xe9   :  { %p2385_p9 = por %p2384_p11, %p2383_p6 }
  0xeb   :  { %p2386_p12 = pnand %p2385_p9, %p2381_p10 }
  0xed   :  { %2389 = shalt.err (!%p2386_p12)  }
  0xee   :  { %s2390_s4 = scalar_lea.vmem %s3881_s11, 16  ;;  %p2395_p13 = scmp.lt.s32.totalorder %s3881_s11, %s3702_s16 }
  0xef   :  { %p2391_p3 = scmp.ne.s32.totalorder %s3881_s11, %s2390_s4  ;;  %p2396_p0 = scmp.lt.s32.totalorder %s3728_s7, %s2390_s4 }
  0xf1   :  { %p2397_p4 = por %p2396_p0, %p2395_p13 }
  0xf3   :  { %p2398_p2 = pnand %p2397_p4, %p2391_p3 }
  0xf5   :  { %2401 = shalt.err (!%p2398_p2)  }
  0xf6   :  { %202 = dma.hbm_to_vmem [thread:$0]  %s190_s6, 16, %s3881_s11, [#allocation3] }
  0xf7   :  { %s205_s10 = scalar_select %p204_p7, %s3893_s13, 0 }
  0xf8   :  { %s224_s21 = scalar_select %p223_p8, %s3895_s15, 0 }
  0xf9   :  { %s5079_s10 = smov (!%p1596_p1, %s205_s10), 2047 }
  0xfa   :  { %s5081_s21 = smov (!%p1603_p5, %s224_s21), 2047  ;;  %s1601_s22 = sshll.u32 %s5079_s10, 4 }
  0xfb   :  { %s209_s23 = scalar_lea.hbm %s5048_s1, %s1601_s22  ;;  %s1608_s24 = sshll.u32 %s5081_s21, 4 }
  0xfc   :  { %s2402_s25 = scalar_lea.hbm %s209_s23, 16  ;;  %p2405_p7 = scmp.lt.s32.totalorder %s209_s23, %s5048_s1 }
  0xfd   :  { %p2403_p10 = scmp.ne.s32.totalorder %s209_s23, %s2402_s25  ;;  %p2406_p6 = scmp.lt.s32.totalorder %s3719_s3, %s2402_s25 }
  0xff   :  { %p2407_p8 = por %p2406_p6, %p2405_p7 }
 0x101   :  { %p2408_p11 = pnand %p2407_p8, %p2403_p10 }
 0x103   :  { %2411 = shalt.err (!%p2408_p11)  }
 0x104   :  { %s2412_s12 = scalar_lea.vmem %s3899_s14, 16  ;;  %p2417_p5 = scmp.lt.s32.totalorder %s3899_s14, %s3702_s16 }
 0x105   :  { %p2413_p1 = scmp.ne.s32.totalorder %s3899_s14, %s2412_s12  ;;  %p2418_p9 = scmp.lt.s32.totalorder %s3728_s7, %s2412_s12 }
 0x107   :  { %p2419_p12 = por %p2418_p9, %p2417_p5 }
 0x109   :  { %p2420_p3 = pnand %p2419_p12, %p2413_p1 }
 0x10b   :  { %2423 = shalt.err (!%p2420_p3)  }
 0x10c   :  { %221 = dma.hbm_to_vmem [thread:$0]  %s209_s23, 16, %s3899_s14, [#allocation3] }
 0x10d   :  { %s228_s15 = scalar_lea.hbm %s5048_s1, %s1608_s24  ;;  %p242_p13 = scmp.gt.s32.totalorder %s3902_s28, 0 }
 0x10e   :  { %s2424_s18 = scalar_lea.hbm %s228_s15, 16  ;;  %p2427_p4 = scmp.lt.s32.totalorder %s228_s15, %s5048_s1 }
 0x10f   :  { %p2425_p0 = scmp.ne.s32.totalorder %s228_s15, %s2424_s18  ;;  %p2428_p2 = scmp.lt.s32.totalorder %s3719_s3, %s2424_s18 }
 0x111   :  { %p2429_p10 = por %p2428_p2, %p2427_p4 }
 0x113   :  { %p2430_p7 = pnand %p2429_p10, %p2425_p0 }
 0x115   :  { %2433 = shalt.err (!%p2430_p7)  }
 0x116   :  { %s2434_s14 = scalar_lea.vmem %s3931_s19, 16  ;;  %p2439_p8 = scmp.lt.s32.totalorder %s3931_s19, %s3702_s16 }
 0x117   :  { %p2435_p6 = scmp.ne.s32.totalorder %s3931_s19, %s2434_s14  ;;  %p2440_p11 = scmp.lt.s32.totalorder %s3728_s7, %s2434_s14 }
 0x119   :  { %p2441_p1 = por %p2440_p11, %p2439_p8 }
 0x11b   :  { %p2442_p5 = pnand %p2441_p1, %p2435_p6 }
 0x11d   :  { %2445 = shalt.err (!%p2442_p5)  }
 0x11e   :  { %240 = dma.hbm_to_vmem [thread:$0]  %s228_s15, 16, %s3931_s19, [#allocation3] }
 0x11f   :  { %s243_s5 = scalar_select %p242_p13, %s3902_s28, 0 }
 0x120   :  { %p1610_p9 = scmp.lt.s32.totalorder %s3902_s28, 2047  ;;  %s3629_s6 = smov [#allocation2 + $0xc]  }
 0x121   :  { %s256_s8 = sshll.u32 %s3629_s6, 4  ;;  %s3964_s9 = sld [smem:[#allocation5 + $0x680]]  ;;  %s257_s8 = int_to_ptr.vmem [resolvable:$true] %s256_s8 }
 0x122   :  { %s5083_s5 = smov (!%p1610_p9, %s243_s5), 2047  ;;  %s3630_s4 = smov [#allocation2 + $0xd]  }
 0x123   :  { %s1615_s20 = sshll.u32 %s5083_s5, 4  ;;  %s275_s10 = sshll.u32 %s3630_s4, 4  ;;  %s3969_s10 = int_to_ptr.vmem [resolvable:$true] %s275_s10 }
 0x124   :  { %s247_s17 = scalar_lea.hbm %s5048_s1, %s1615_s20 }
 0x125   :  { %s2446_s19 = scalar_lea.hbm %s247_s17, 16  ;;  %p2449_p3 = scmp.lt.s32.totalorder %s247_s17, %s5048_s1 }
 0x126   :  { %p2447_p12 = scmp.ne.s32.totalorder %s247_s17, %s2446_s19  ;;  %p2450_p13 = scmp.lt.s32.totalorder %s3719_s3, %s2446_s19 }
 0x128   :  { %p2451_p0 = por %p2450_p13, %p2449_p3 }
 0x12a   :  { %p2452_p4 = pnand %p2451_p0, %p2447_p12 }
 0x12c   :  { %2455 = shalt.err (!%p2452_p4)  }
 0x12d   :  { %s2456_s28 = scalar_lea.vmem %s257_s8, 16  ;;  %p2461_p10 = scmp.lt.s32.totalorder %s257_s8, %s3702_s16 }
 0x12e   :  { %p2457_p2 = scmp.ne.s32.totalorder %s257_s8, %s2456_s28  ;;  %p2462_p7 = scmp.lt.s32.totalorder %s3728_s7, %s2456_s28 }
 0x130   :  { %p2463_p6 = por %p2462_p7, %p2461_p10 }
 0x132   :  { %p2464_p8 = pnand %p2463_p6, %p2457_p2 }
 0x134   :  { %2467 = shalt.err (!%p2464_p8)  }
 0x135   :  { %259 = dma.hbm_to_vmem [thread:$0]  %s247_s17, 16, %s257_s8, [#allocation3] }
 0x136   :  { %p261_p11 = scmp.gt.s32.totalorder %s3964_s9, 0  ;;  %p1617_p1 = scmp.lt.s32.totalorder %s3964_s9, 2047 }
 0x137   :  { %s3979_s24 = sld [smem:[#allocation5 + $0x700]]  ;;  %s3631_s25 = smov [#allocation2 + $0xe]  }
 0x138   :  { %s5085_s9 = smov (!%p261_p11, %s3964_s9), 0  ;;  %s294_s26 = sshll.u32 %s3631_s25, 4  ;;  %s3984_s26 = int_to_ptr.vmem [resolvable:$true] %s294_s26 }
 0x139   :  { %s3982_s11 = sld [smem:[#allocation5 + $0x780]]  ;;  %s5087_s9 = smov (!%p1617_p1, %s5085_s9), 2047 }
 0x13a   :  { %s1622_s12 = sshll.u32 %s5087_s9, 4  ;;  %s3632_s13 = smov [#allocation2 + $0xf]  }
 0x13b   :  { %s313_s27 = sshll.u32 %s3632_s13, 4  ;;  %s266_s29 = scalar_lea.hbm %s5048_s1, %s1622_s12  ;;  %s4006_s27 = int_to_ptr.vmem [resolvable:$true] %s313_s27 }
 0x13c   :  { %s2468_s30 = scalar_lea.hbm %s266_s29, 16  ;;  %p2471_p12 = scmp.lt.s32.totalorder %s266_s29, %s5048_s1 }
 0x13d   :  { %p280_p5 = scmp.gt.s32.totalorder %s3979_s24, 0  ;;  %p2469_p9 = scmp.ne.s32.totalorder %s266_s29, %s2468_s30 }
 0x13e   :  { %p2472_p3 = scmp.lt.s32.totalorder %s3719_s3, %s2468_s30 }
 0x140   :  { %p2473_p13 = por %p2472_p3, %p2471_p12 }
 0x142   :  { %p2474_p0 = pnand %p2473_p13, %p2469_p9 }
 0x144   :  { %2477 = shalt.err (!%p2474_p0)  }
 0x145   :  { %s2478_s6 = scalar_lea.vmem %s3969_s10, 16  ;;  %p2483_p2 = scmp.lt.s32.totalorder %s3969_s10, %s3702_s16 }
 0x146   :  { %p2479_p4 = scmp.ne.s32.totalorder %s3969_s10, %s2478_s6  ;;  %p2484_p10 = scmp.lt.s32.totalorder %s3728_s7, %s2478_s6 }
 0x148   :  { %p2485_p7 = por %p2484_p10, %p2483_p2 }
 0x14a   :  { %p2486_p6 = pnand %p2485_p7, %p2479_p4 }
 0x14c   :  { %2489 = shalt.err (!%p2486_p6)  }
 0x14d   :  { %278 = dma.hbm_to_vmem [thread:$0]  %s266_s29, 16, %s3969_s10, [#allocation3] }
 0x14e   :  { %s281_s8 = scalar_select %p280_p5, %s3979_s24, 0 }
 0x14f   :  { %p1624_p8 = scmp.lt.s32.totalorder %s3979_s24, 2047  ;;  %p299_p11 = scmp.gt.s32.totalorder %s3982_s11, 0 }
 0x150   :  { %p1631_p1 = scmp.lt.s32.totalorder %s3982_s11, 2047  ;;  %s4009_s4 = sld [smem:[#allocation5 + $0x1]] }
 0x151   :  { %s5089_s8 = smov (!%p1624_p8, %s281_s8), 2047 }
 0x152   :  { %s300_s9 = scalar_select %p299_p11, %s3982_s11, 0 }
 0x153   :  { %s1629_s20 = sshll.u32 %s5089_s8, 4 }
 0x154   :  { %s285_s17 = scalar_lea.hbm %s5048_s1, %s1629_s20 }
 0x155   :  { %s2490_s19 = scalar_lea.hbm %s285_s17, 16  ;;  %p2493_p5 = scmp.lt.s32.totalorder %s285_s17, %s5048_s1 }
 0x156   :  { %p2491_p9 = scmp.ne.s32.totalorder %s285_s17, %s2490_s19  ;;  %p2494_p12 = scmp.lt.s32.totalorder %s3719_s3, %s2490_s19 }
 0x158   :  { %p2495_p3 = por %p2494_p12, %p2493_p5 }
 0x15a   :  { %p2496_p13 = pnand %p2495_p3, %p2491_p9 }
 0x15c   :  { %2499 = shalt.err (!%p2496_p13)  }
 0x15d   :  { %s2500_s23 = scalar_lea.vmem %s3984_s26, 16  ;;  %p2505_p4 = scmp.lt.s32.totalorder %s3984_s26, %s3702_s16 }
 0x15e   :  { %p2501_p0 = scmp.ne.s32.totalorder %s3984_s26, %s2500_s23  ;;  %p2506_p2 = scmp.lt.s32.totalorder %s3728_s7, %s2500_s23 }
 0x160   :  { %p2507_p10 = por %p2506_p2, %p2505_p4 }
 0x162   :  { %p2508_p7 = pnand %p2507_p10, %p2501_p0 }
 0x164   :  { %2511 = shalt.err (!%p2508_p7)  }
 0x165   :  { %297 = dma.hbm_to_vmem [thread:$0]  %s285_s17, 16, %s3984_s26, [#allocation3] }
 0x166   :  { %s5091_s9 = smov (!%p1631_p1, %s300_s9), 2047  ;;  %s3633_s28 = smov [#allocation2 + $0x10]  }
 0x167   :  { %s332_s24 = sshll.u32 %s3633_s28, 4  ;;  %s4026_s25 = sld [smem:[#allocation5 + $0x81]]  ;;  %s4028_s24 = int_to_ptr.vmem [resolvable:$true] %s332_s24 }
 0x168   :  { %s1636_s12 = sshll.u32 %s5091_s9, 4  ;;  %p318_p6 = scmp.gt.s32.totalorder %s4009_s4, 0 }
 0x169   :  { %s304_s18 = scalar_lea.hbm %s5048_s1, %s1636_s12 }
 0x16a   :  { %s2512_s29 = scalar_lea.hbm %s304_s18, 16  ;;  %p2515_p11 = scmp.lt.s32.totalorder %s304_s18, %s5048_s1 }
 0x16b   :  { %p2513_p8 = scmp.ne.s32.totalorder %s304_s18, %s2512_s29  ;;  %p2516_p9 = scmp.lt.s32.totalorder %s3719_s3, %s2512_s29 }
 0x16d   :  { %p2517_p1 = por %p2516_p9, %p2515_p11 }
 0x16f   :  { %p2518_p5 = pnand %p2517_p1, %p2513_p8 }
 0x171   :  { %2521 = shalt.err (!%p2518_p5)  }
 0x172   :  { %s2522_s26 = scalar_lea.vmem %s4006_s27, 16  ;;  %p2527_p3 = scmp.lt.s32.totalorder %s4006_s27, %s3702_s16 }
 0x173   :  { %p2523_p12 = scmp.ne.s32.totalorder %s4006_s27, %s2522_s26  ;;  %p2528_p13 = scmp.lt.s32.totalorder %s3728_s7, %s2522_s26 }
 0x175   :  { %p2529_p0 = por %p2528_p13, %p2527_p3 }
 0x177   :  { %p2530_p4 = pnand %p2529_p0, %p2523_p12 }
 0x179   :  { %2533 = shalt.err (!%p2530_p4)  }
 0x17a   :  { %316 = dma.hbm_to_vmem [thread:$0]  %s304_s18, 16, %s4006_s27, [#allocation3] }
 0x17b   :  { %s319_s11 = scalar_select %p318_p6, %s4009_s4, 0 }
 0x17c   :  { %p1638_p2 = scmp.lt.s32.totalorder %s4009_s4, 2047  ;;  %p337_p10 = scmp.gt.s32.totalorder %s4026_s25, 0 }
 0x17d   :  { %p1645_p7 = scmp.lt.s32.totalorder %s4026_s25, 2047  ;;  %s3634_s8 = smov [#allocation2 + $0x11]  }
 0x17e   :  { %s5093_s11 = smov (!%p1638_p2, %s319_s11), 2047  ;;  %s351_s9 = sshll.u32 %s3634_s8, 4  ;;  %s4054_s9 = int_to_ptr.vmem [resolvable:$true] %s351_s9 }
 0x17f   :  { %s338_s5 = scalar_select %p337_p10, %s4026_s25, 0 }
 0x180   :  { %s1643_s6 = sshll.u32 %s5093_s11, 4 }
 0x181   :  { %s323_s22 = scalar_lea.hbm %s5048_s1, %s1643_s6 }
 0x182   :  { %s2534_s17 = scalar_lea.hbm %s323_s22, 16  ;;  %p2537_p6 = scmp.lt.s32.totalorder %s323_s22, %s5048_s1 }
 0x183   :  { %p2535_p8 = scmp.ne.s32.totalorder %s323_s22, %s2534_s17  ;;  %p2538_p11 = scmp.lt.s32.totalorder %s3719_s3, %s2534_s17 }
 0x185   :  { %p2539_p9 = por %p2538_p11, %p2537_p6 }
 0x187   :  { %p2540_p1 = pnand %p2539_p9, %p2535_p8 }
 0x189   :  { %2543 = shalt.err (!%p2540_p1)  }
 0x18a   :  { %s2544_s4 = scalar_lea.vmem %s4028_s24, 16  ;;  %p2549_p12 = scmp.lt.s32.totalorder %s4028_s24, %s3702_s16 }
 0x18b   :  { %p2545_p5 = scmp.ne.s32.totalorder %s4028_s24, %s2544_s4  ;;  %p2550_p3 = scmp.lt.s32.totalorder %s3728_s7, %s2544_s4 }
 0x18d   :  { %p2551_p13 = por %p2550_p3, %p2549_p12 }
 0x18f   :  { %p2552_p0 = pnand %p2551_p13, %p2545_p5 }
 0x191   :  { %2555 = shalt.err (!%p2552_p0)  }
 0x192   :  { %335 = dma.hbm_to_vmem [thread:$0]  %s323_s22, 16, %s4028_s24, [#allocation3] }
 0x193   :  { %s5095_s5 = smov (!%p1645_p7, %s338_s5), 2047  ;;  %s4068_s0 = sld [smem:[#allocation5 + $0x101]] }
 0x194   :  { %s1650_s10 = sshll.u32 %s5095_s5, 4  ;;  %s3635_s23 = smov [#allocation2 + $0x12]  }
 0x195   :  { %s370_s28 = sshll.u32 %s3635_s23, 4  ;;  %s342_s15 = scalar_lea.hbm %s5048_s1, %s1650_s10  ;;  %s4073_s28 = int_to_ptr.vmem [resolvable:$true] %s370_s28 }
 0x196   :  { %s2556_s18 = scalar_lea.hbm %s342_s15, 16  ;;  %p2559_p2 = scmp.lt.s32.totalorder %s342_s15, %s5048_s1 }
 0x197   :  { %p2557_p4 = scmp.ne.s32.totalorder %s342_s15, %s2556_s18  ;;  %p2560_p10 = scmp.lt.s32.totalorder %s3719_s3, %s2556_s18 }
 0x199   :  { %p2561_p8 = por %p2560_p10, %p2559_p2 }
 0x19b   :  { %p2562_p7 = pnand %p2561_p8, %p2557_p4 }
 0x19d   :  { %2565 = shalt.err (!%p2562_p7)  }
 0x19e   :  { %s2566_s24 = scalar_lea.vmem %s4054_s9, 16  ;;  %p2571_p11 = scmp.lt.s32.totalorder %s4054_s9, %s3702_s16 }
 0x19f   :  { %p2567_p6 = scmp.ne.s32.totalorder %s4054_s9, %s2566_s24  ;;  %p2572_p9 = scmp.lt.s32.totalorder %s3728_s7, %s2566_s24 }
 0x1a1   :  { %p2573_p1 = por %p2572_p9, %p2571_p11 }
 0x1a3   :  { %p2574_p5 = pnand %p2573_p1, %p2567_p6 }
 0x1a5   :  { %2577 = shalt.err (!%p2574_p5)  }
 0x1a6   :  { %354 = dma.hbm_to_vmem [thread:$0]  %s342_s15, 16, %s4054_s9, [#allocation3] }
 0x1a7   :  { %s4085_s25 = sld [smem:[#allocation5 + $0x181]]  ;;  %s3636_s14 = smov [#allocation2 + $0x13]  }
 0x1a8   :  { %s389_s26 = sshll.u32 %s3636_s14, 4  ;;  %s4087_s11 = sld [smem:[#allocation5 + $0x201]]  ;;  %s4091_s26 = int_to_ptr.vmem [resolvable:$true] %s389_s26 }
 0x1a9   :  { %p356_p12 = scmp.gt.s32.totalorder %s4068_s0, 0  ;;  %p1652_p3 = scmp.lt.s32.totalorder %s4068_s0, 2047 }
 0x1aa   :  { %s3637_s5 = smov [#allocation2 + $0x14]   ;;  %s4094_s8 = sld [smem:[#allocation5 + $0x281]] }
 0x1ab   :  { %s5097_s0 = smov (!%p356_p12, %s4068_s0), 0  ;;  %s408_s6 = sshll.u32 %s3637_s5, 4  ;;  %s4123_s6 = int_to_ptr.vmem [resolvable:$true] %s408_s6 }
 0x1ac   :  { %s5099_s0 = smov (!%p1652_p3, %s5097_s0), 2047 }
 0x1ad   :  { %p375_p13 = scmp.gt.s32.totalorder %s4085_s25, 0  ;;  %p1659_p0 = scmp.lt.s32.totalorder %s4085_s25, 2047 }
 0x1ae   :  { %s1657_s9 = sshll.u32 %s5099_s0, 4  ;;  %p394_p4 = scmp.gt.s32.totalorder %s4087_s11, 0 }
 0x1af   :  { %s361_s22 = scalar_lea.hbm %s5048_s1, %s1657_s9  ;;  %p1666_p2 = scmp.lt.s32.totalorder %s4087_s11, 2047 }
 0x1b0   :  { %s2578_s17 = scalar_lea.hbm %s361_s22, 16  ;;  %p2581_p8 = scmp.lt.s32.totalorder %s361_s22, %s5048_s1 }
 0x1b1   :  { %p2579_p10 = scmp.ne.s32.totalorder %s361_s22, %s2578_s17  ;;  %p2582_p7 = scmp.lt.s32.totalorder %s3719_s3, %s2578_s17 }
 0x1b3   :  { %p2583_p6 = por %p2582_p7, %p2581_p8 }
 0x1b5   :  { %p2584_p11 = pnand %p2583_p6, %p2579_p10 }
 0x1b7   :  { %2587 = shalt.err (!%p2584_p11)  }
 0x1b8   :  { %s2588_s4 = scalar_lea.vmem %s4073_s28, 16  ;;  %p2593_p1 = scmp.lt.s32.totalorder %s4073_s28, %s3702_s16 }
 0x1b9   :  { %p2589_p9 = scmp.ne.s32.totalorder %s4073_s28, %s2588_s4  ;;  %p2594_p5 = scmp.lt.s32.totalorder %s3728_s7, %s2588_s4 }
 0x1bb   :  { %p2595_p12 = por %p2594_p5, %p2593_p1 }
 0x1bd   :  { %p2596_p3 = pnand %p2595_p12, %p2589_p9 }
 0x1bf   :  { %2599 = shalt.err (!%p2596_p3)  }
 0x1c0   :  { %373 = dma.hbm_to_vmem [thread:$0]  %s361_s22, 16, %s4073_s28, [#allocation3] }
 0x1c1   :  { %s376_s0 = scalar_select %p375_p13, %s4085_s25, 0 }
 0x1c2   :  { %s395_s10 = scalar_select %p394_p4, %s4087_s11, 0 }
 0x1c3   :  { %s5101_s0 = smov (!%p1659_p0, %s376_s0), 2047 }
 0x1c4   :  { %s5103_s10 = smov (!%p1666_p2, %s395_s10), 2047  ;;  %s1664_s23 = sshll.u32 %s5101_s0, 4 }
 0x1c5   :  { %s380_s15 = scalar_lea.hbm %s5048_s1, %s1664_s23  ;;  %s1671_s18 = sshll.u32 %s5103_s10, 4 }
 0x1c6   :  { %s2600_s29 = scalar_lea.hbm %s380_s15, 16  ;;  %p2603_p13 = scmp.lt.s32.totalorder %s380_s15, %s5048_s1 }
 0x1c7   :  { %p2601_p10 = scmp.ne.s32.totalorder %s380_s15, %s2600_s29  ;;  %p2604_p8 = scmp.lt.s32.totalorder %s3719_s3, %s2600_s29 }
 0x1c9   :  { %p2605_p4 = por %p2604_p8, %p2603_p13 }
 0x1cb   :  { %p2606_p7 = pnand %p2605_p4, %p2601_p10 }
 0x1cd   :  { %2609 = shalt.err (!%p2606_p7)  }
 0x1ce   :  { %s2610_s24 = scalar_lea.vmem %s4091_s26, 16  ;;  %p2615_p2 = scmp.lt.s32.totalorder %s4091_s26, %s3702_s16 }
 0x1cf   :  { %p2611_p0 = scmp.ne.s32.totalorder %s4091_s26, %s2610_s24  ;;  %p2616_p6 = scmp.lt.s32.totalorder %s3728_s7, %s2610_s24 }
 0x1d1   :  { %p2617_p11 = por %p2616_p6, %p2615_p2 }
 0x1d3   :  { %p2618_p9 = pnand %p2617_p11, %p2611_p0 }
 0x1d5   :  { %2621 = shalt.err (!%p2618_p9)  }
 0x1d6   :  { %392 = dma.hbm_to_vmem [thread:$0]  %s380_s15, 16, %s4091_s26, [#allocation3] }
 0x1d7   :  { %s399_s11 = scalar_lea.hbm %s5048_s1, %s1671_s18  ;;  %p413_p1 = scmp.gt.s32.totalorder %s4094_s8, 0 }
 0x1d8   :  { %s2622_s5 = scalar_lea.hbm %s399_s11, 16  ;;  %p2625_p12 = scmp.lt.s32.totalorder %s399_s11, %s5048_s1 }
 0x1d9   :  { %p2623_p5 = scmp.ne.s32.totalorder %s399_s11, %s2622_s5  ;;  %p2626_p3 = scmp.lt.s32.totalorder %s3719_s3, %s2622_s5 }
 0x1db   :  { %p2627_p10 = por %p2626_p3, %p2625_p12 }
 0x1dd   :  { %p2628_p13 = pnand %p2627_p10, %p2623_p5 }
 0x1df   :  { %2631 = shalt.err (!%p2628_p13)  }
 0x1e0   :  { %s2632_s26 = scalar_lea.vmem %s4123_s6, 16  ;;  %p2637_p4 = scmp.lt.s32.totalorder %s4123_s6, %s3702_s16 }
 0x1e1   :  { %p2633_p8 = scmp.ne.s32.totalorder %s4123_s6, %s2632_s26  ;;  %p2638_p7 = scmp.lt.s32.totalorder %s3728_s7, %s2632_s26 }
 0x1e3   :  { %p2639_p0 = por %p2638_p7, %p2637_p4 }
 0x1e5   :  { %p2640_p2 = pnand %p2639_p0, %p2633_p8 }
 0x1e7   :  { %2643 = shalt.err (!%p2640_p2)  }
 0x1e8   :  { %411 = dma.hbm_to_vmem [thread:$0]  %s399_s11, 16, %s4123_s6, [#allocation3] }
 0x1e9   :  { %s414_s21 = scalar_select %p413_p1, %s4094_s8, 0 }
 0x1ea   :  { %p1673_p6 = scmp.lt.s32.totalorder %s4094_s8, 2047  ;;  %s3638_s22 = smov [#allocation2 + $0x15]  }
 0x1eb   :  { %s427_s17 = sshll.u32 %s3638_s22, 4  ;;  %s4156_s19 = sld [smem:[#allocation5 + $0x301]]  ;;  %s428_s17 = int_to_ptr.vmem [resolvable:$true] %s427_s17 }
 0x1ec   :  { %s5105_s21 = smov (!%p1673_p6, %s414_s21), 2047  ;;  %s3639_s4 = smov [#allocation2 + $0x16]  }
 0x1ed   :  { %s1678_s27 = sshll.u32 %s5105_s21, 4  ;;  %s446_s0 = sshll.u32 %s3639_s4, 4  ;;  %s4161_s0 = int_to_ptr.vmem [resolvable:$true] %s446_s0 }
 0x1ee   :  { %s418_s12 = scalar_lea.hbm %s5048_s1, %s1678_s27 }
 0x1ef   :  { %s2644_s6 = scalar_lea.hbm %s418_s12, 16  ;;  %p2647_p9 = scmp.lt.s32.totalorder %s418_s12, %s5048_s1 }
 0x1f0   :  { %p2645_p11 = scmp.ne.s32.totalorder %s418_s12, %s2644_s6  ;;  %p2648_p1 = scmp.lt.s32.totalorder %s3719_s3, %s2644_s6 }
 0x1f2   :  { %p2649_p5 = por %p2648_p1, %p2647_p9 }
 0x1f4   :  { %p2650_p12 = pnand %p2649_p5, %p2645_p11 }
 0x1f6   :  { %2653 = shalt.err (!%p2650_p12)  }
 0x1f7   :  { %s2654_s8 = scalar_lea.vmem %s428_s17, 16  ;;  %p2659_p10 = scmp.lt.s32.totalorder %s428_s17, %s3702_s16 }
 0x1f8   :  { %p2655_p3 = scmp.ne.s32.totalorder %s428_s17, %s2654_s8  ;;  %p2660_p13 = scmp.lt.s32.totalorder %s3728_s7, %s2654_s8 }
 0x1fa   :  { %p2661_p8 = por %p2660_p13, %p2659_p10 }
 0x1fc   :  { %p2662_p4 = pnand %p2661_p8, %p2655_p3 }
 0x1fe   :  { %2665 = shalt.err (!%p2662_p4)  }
 0x1ff   :  { %430 = dma.hbm_to_vmem [thread:$0]  %s418_s12, 16, %s428_s17, [#allocation3] }
 0x200   :  { %p432_p7 = scmp.gt.s32.totalorder %s4156_s19, 0  ;;  %p1680_p0 = scmp.lt.s32.totalorder %s4156_s19, 2047 }
 0x201   :  { %s4171_s18 = sld [smem:[#allocation5 + $0x381]]  ;;  %s3640_s29 = smov [#allocation2 + $0x17]  }
 0x202   :  { %s5107_s19 = smov (!%p432_p7, %s4156_s19), 0  ;;  %s465_s30 = sshll.u32 %s3640_s29, 4  ;;  %s4176_s30 = int_to_ptr.vmem [resolvable:$true] %s465_s30 }
 0x203   :  { %s4174_s28 = sld [smem:[#allocation5 + $0x401]]  ;;  %s5109_s19 = smov (!%p1680_p0, %s5107_s19), 2047 }
 0x204   :  { %s1685_s24 = sshll.u32 %s5109_s19, 4  ;;  %s3641_s25 = smov [#allocation2 + $0x18]  }
 0x205   :  { %s484_s14 = sshll.u32 %s3641_s25, 4  ;;  %s437_s9 = scalar_lea.hbm %s5048_s1, %s1685_s24  ;;  %s4198_s14 = int_to_ptr.vmem [resolvable:$true] %s484_s14 }
 0x206   :  { %s2666_s20 = scalar_lea.hbm %s437_s9, 16  ;;  %p2669_p11 = scmp.lt.s32.totalorder %s437_s9, %s5048_s1 }
 0x207   :  { %p451_p2 = scmp.gt.s32.totalorder %s4171_s18, 0  ;;  %p2667_p6 = scmp.ne.s32.totalorder %s437_s9, %s2666_s20 }
 0x208   :  { %p2670_p9 = scmp.lt.s32.totalorder %s3719_s3, %s2666_s20 }
 0x20a   :  { %p2671_p1 = por %p2670_p9, %p2669_p11 }
 0x20c   :  { %p2672_p5 = pnand %p2671_p1, %p2667_p6 }
 0x20e   :  { %2675 = shalt.err (!%p2672_p5)  }
 0x20f   :  { %s2676_s22 = scalar_lea.vmem %s4161_s0, 16  ;;  %p2681_p3 = scmp.lt.s32.totalorder %s4161_s0, %s3702_s16 }
 0x210   :  { %p2677_p12 = scmp.ne.s32.totalorder %s4161_s0, %s2676_s22  ;;  %p2682_p10 = scmp.lt.s32.totalorder %s3728_s7, %s2676_s22 }
 0x212   :  { %p2683_p13 = por %p2682_p10, %p2681_p3 }
 0x214   :  { %p2684_p8 = pnand %p2683_p13, %p2677_p12 }
 0x216   :  { %2687 = shalt.err (!%p2684_p8)  }
 0x217   :  { %449 = dma.hbm_to_vmem [thread:$0]  %s437_s9, 16, %s4161_s0, [#allocation3] }
 0x218   :  { %s452_s17 = scalar_select %p451_p2, %s4171_s18, 0 }
 0x219   :  { %p1687_p4 = scmp.lt.s32.totalorder %s4171_s18, 2047  ;;  %p470_p7 = scmp.gt.s32.totalorder %s4174_s28, 0 }
 0x21a   :  { %p1694_p0 = scmp.lt.s32.totalorder %s4174_s28, 2047  ;;  %s4201_s4 = sld [smem:[#allocation5 + $0x481]] }
 0x21b   :  { %s5111_s17 = smov (!%p1687_p4, %s452_s17), 2047 }
 0x21c   :  { %s471_s19 = scalar_select %p470_p7, %s4174_s28, 0 }
 0x21d   :  { %s1692_s27 = sshll.u32 %s5111_s17, 4 }
 0x21e   :  { %s456_s12 = scalar_lea.hbm %s5048_s1, %s1692_s27 }
 0x21f   :  { %s2688_s6 = scalar_lea.hbm %s456_s12, 16  ;;  %p2691_p2 = scmp.lt.s32.totalorder %s456_s12, %s5048_s1 }
 0x220   :  { %p2689_p6 = scmp.ne.s32.totalorder %s456_s12, %s2688_s6  ;;  %p2692_p11 = scmp.lt.s32.totalorder %s3719_s3, %s2688_s6 }
 0x222   :  { %p2693_p9 = por %p2692_p11, %p2691_p2 }
 0x224   :  { %p2694_p1 = pnand %p2693_p9, %p2689_p6 }
 0x226   :  { %2697 = shalt.err (!%p2694_p1)  }
 0x227   :  { %s2698_s15 = scalar_lea.vmem %s4176_s30, 16  ;;  %p2703_p12 = scmp.lt.s32.totalorder %s4176_s30, %s3702_s16 }
 0x228   :  { %p2699_p5 = scmp.ne.s32.totalorder %s4176_s30, %s2698_s15  ;;  %p2704_p3 = scmp.lt.s32.totalorder %s3728_s7, %s2698_s15 }
 0x22a   :  { %p2705_p10 = por %p2704_p3, %p2703_p12 }
 0x22c   :  { %p2706_p13 = pnand %p2705_p10, %p2699_p5 }
 0x22e   :  { %2709 = shalt.err (!%p2706_p13)  }
 0x22f   :  { %468 = dma.hbm_to_vmem [thread:$0]  %s456_s12, 16, %s4176_s30, [#allocation3] }
 0x230   :  { %s5113_s19 = smov (!%p1694_p0, %s471_s19), 2047  ;;  %s3642_s8 = smov [#allocation2 + $0x19]  }
 0x231   :  { %s503_s18 = sshll.u32 %s3642_s8, 4  ;;  %s4218_s29 = sld [smem:[#allocation5 + $0x501]]  ;;  %s4220_s18 = int_to_ptr.vmem [resolvable:$true] %s503_s18 }
 0x232   :  { %s1699_s24 = sshll.u32 %s5113_s19, 4  ;;  %p489_p8 = scmp.gt.s32.totalorder %s4201_s4, 0 }
 0x233   :  { %s475_s5 = scalar_lea.hbm %s5048_s1, %s1699_s24 }
 0x234   :  { %s2710_s9 = scalar_lea.hbm %s475_s5, 16  ;;  %p2713_p7 = scmp.lt.s32.totalorder %s475_s5, %s5048_s1 }
 0x235   :  { %p2711_p4 = scmp.ne.s32.totalorder %s475_s5, %s2710_s9  ;;  %p2714_p6 = scmp.lt.s32.totalorder %s3719_s3, %s2710_s9 }
 0x237   :  { %p2715_p0 = por %p2714_p6, %p2713_p7 }
 0x239   :  { %p2716_p2 = pnand %p2715_p0, %p2711_p4 }
 0x23b   :  { %2719 = shalt.err (!%p2716_p2)  }
 0x23c   :  { %s2720_s30 = scalar_lea.vmem %s4198_s14, 16  ;;  %p2725_p9 = scmp.lt.s32.totalorder %s4198_s14, %s3702_s16 }
 0x23d   :  { %p2721_p11 = scmp.ne.s32.totalorder %s4198_s14, %s2720_s30  ;;  %p2726_p1 = scmp.lt.s32.totalorder %s3728_s7, %s2720_s30 }
 0x23f   :  { %p2727_p5 = por %p2726_p1, %p2725_p9 }
 0x241   :  { %p2728_p12 = pnand %p2727_p5, %p2721_p11 }
 0x243   :  { %2731 = shalt.err (!%p2728_p12)  }
 0x244   :  { %487 = dma.hbm_to_vmem [thread:$0]  %s475_s5, 16, %s4198_s14, [#allocation3] }
 0x245   :  { %s490_s28 = scalar_select %p489_p8, %s4201_s4, 0 }
 0x246   :  { %p1701_p3 = scmp.lt.s32.totalorder %s4201_s4, 2047  ;;  %p508_p10 = scmp.gt.s32.totalorder %s4218_s29, 0 }
 0x247   :  { %p1708_p13 = scmp.lt.s32.totalorder %s4218_s29, 2047  ;;  %s3643_s17 = smov [#allocation2 + $0x1a]  }
 0x248   :  { %s5115_s28 = smov (!%p1701_p3, %s490_s28), 2047  ;;  %s522_s19 = sshll.u32 %s3643_s17, 4  ;;  %s4246_s19 = int_to_ptr.vmem [resolvable:$true] %s522_s19 }
 0x249   :  { %s509_s21 = scalar_select %p508_p10, %s4218_s29, 0 }
 0x24a   :  { %s1706_s22 = sshll.u32 %s5115_s28, 4 }
 0x24b   :  { %s494_s23 = scalar_lea.hbm %s5048_s1, %s1706_s22 }
 0x24c   :  { %s2732_s12 = scalar_lea.hbm %s494_s23, 16  ;;  %p2735_p8 = scmp.lt.s32.totalorder %s494_s23, %s5048_s1 }
 0x24d   :  { %p2733_p4 = scmp.ne.s32.totalorder %s494_s23, %s2732_s12  ;;  %p2736_p7 = scmp.lt.s32.totalorder %s3719_s3, %s2732_s12 }
 0x24f   :  { %p2737_p6 = por %p2736_p7, %p2735_p8 }
 0x251   :  { %p2738_p0 = pnand %p2737_p6, %p2733_p4 }
 0x253   :  { %2741 = shalt.err (!%p2738_p0)  }
 0x254   :  { %s2742_s4 = scalar_lea.vmem %s4220_s18, 16  ;;  %p2747_p11 = scmp.lt.s32.totalorder %s4220_s18, %s3702_s16 }
 0x255   :  { %p2743_p2 = scmp.ne.s32.totalorder %s4220_s18, %s2742_s4  ;;  %p2748_p9 = scmp.lt.s32.totalorder %s3728_s7, %s2742_s4 }
 0x257   :  { %p2749_p1 = por %p2748_p9, %p2747_p11 }
 0x259   :  { %p2750_p5 = pnand %p2749_p1, %p2743_p2 }
 0x25b   :  { %2753 = shalt.err (!%p2750_p5)  }
 0x25c   :  { %506 = dma.hbm_to_vmem [thread:$0]  %s494_s23, 16, %s4220_s18, [#allocation3] }
 0x25d   :  { %s5117_s21 = smov (!%p1708_p13, %s509_s21), 2047  ;;  %s4260_s13 = sld [smem:[#allocation5 + $0x581]] }
 0x25e   :  { %s1713_s0 = sshll.u32 %s5117_s21, 4  ;;  %s3644_s15 = smov [#allocation2 + $0x1b]  }
 0x25f   :  { %s541_s8 = sshll.u32 %s3644_s15, 4  ;;  %s513_s11 = scalar_lea.hbm %s5048_s1, %s1713_s0  ;;  %s4265_s8 = int_to_ptr.vmem [resolvable:$true] %s541_s8 }
 0x260   :  { %s2754_s5 = scalar_lea.hbm %s513_s11, 16  ;;  %p2757_p3 = scmp.lt.s32.totalorder %s513_s11, %s5048_s1 }
 0x261   :  { %p2755_p12 = scmp.ne.s32.totalorder %s513_s11, %s2754_s5  ;;  %p2758_p10 = scmp.lt.s32.totalorder %s3719_s3, %s2754_s5 }
 0x263   :  { %p2759_p4 = por %p2758_p10, %p2757_p3 }
 0x265   :  { %p2760_p13 = pnand %p2759_p4, %p2755_p12 }
 0x267   :  { %2763 = shalt.err (!%p2760_p13)  }
 0x268   :  { %s2764_s18 = scalar_lea.vmem %s4246_s19, 16  ;;  %p2769_p7 = scmp.lt.s32.totalorder %s4246_s19, %s3702_s16 }
 0x269   :  { %p2765_p8 = scmp.ne.s32.totalorder %s4246_s19, %s2764_s18  ;;  %p2770_p6 = scmp.lt.s32.totalorder %s3728_s7, %s2764_s18 }
 0x26b   :  { %p2771_p0 = por %p2770_p6, %p2769_p7 }
 0x26d   :  { %p2772_p2 = pnand %p2771_p0, %p2765_p8 }
 0x26f   :  { %2775 = shalt.err (!%p2772_p2)  }
 0x270   :  { %525 = dma.hbm_to_vmem [thread:$0]  %s513_s11, 16, %s4246_s19, [#allocation3] }
 0x271   :  { %s4277_s29 = sld [smem:[#allocation5 + $0x601]]  ;;  %s3645_s26 = smov [#allocation2 + $0x1c]  }
 0x272   :  { %s560_s30 = sshll.u32 %s3645_s26, 4  ;;  %s4279_s28 = sld [smem:[#allocation5 + $0x681]]  ;;  %s4283_s30 = int_to_ptr.vmem [resolvable:$true] %s560_s30 }
 0x273   :  { %p527_p11 = scmp.gt.s32.totalorder %s4260_s13, 0  ;;  %p1715_p9 = scmp.lt.s32.totalorder %s4260_s13, 2047 }
 0x274   :  { %s3646_s21 = smov [#allocation2 + $0x1d]   ;;  %s4286_s17 = sld [smem:[#allocation5 + $0x701]] }
 0x275   :  { %s5119_s13 = smov (!%p527_p11, %s4260_s13), 0  ;;  %s579_s22 = sshll.u32 %s3646_s21, 4  ;;  %s4315_s22 = int_to_ptr.vmem [resolvable:$true] %s579_s22 }
 0x276   :  { %s5121_s13 = smov (!%p1715_p9, %s5119_s13), 2047 }
 0x277   :  { %p546_p1 = scmp.gt.s32.totalorder %s4277_s29, 0  ;;  %p1722_p5 = scmp.lt.s32.totalorder %s4277_s29, 2047 }
 0x278   :  { %s1720_s19 = sshll.u32 %s5121_s13, 4  ;;  %p565_p12 = scmp.gt.s32.totalorder %s4279_s28, 0 }
 0x279   :  { %s532_s23 = scalar_lea.hbm %s5048_s1, %s1720_s19  ;;  %p1729_p3 = scmp.lt.s32.totalorder %s4279_s28, 2047 }
 0x27a   :  { %s2776_s12 = scalar_lea.hbm %s532_s23, 16  ;;  %p2779_p4 = scmp.lt.s32.totalorder %s532_s23, %s5048_s1 }
 0x27b   :  { %p2777_p10 = scmp.ne.s32.totalorder %s532_s23, %s2776_s12  ;;  %p2780_p13 = scmp.lt.s32.totalorder %s3719_s3, %s2776_s12 }
 0x27d   :  { %p2781_p8 = por %p2780_p13, %p2779_p4 }
 0x27f   :  { %p2782_p7 = pnand %p2781_p8, %p2777_p10 }
 0x281   :  { %2785 = shalt.err (!%p2782_p7)  }
 0x282   :  { %s2786_s4 = scalar_lea.vmem %s4265_s8, 16  ;;  %p2791_p0 = scmp.lt.s32.totalorder %s4265_s8, %s3702_s16 }
 0x283   :  { %p2787_p6 = scmp.ne.s32.totalorder %s4265_s8, %s2786_s4  ;;  %p2792_p2 = scmp.lt.s32.totalorder %s3728_s7, %s2786_s4 }
 0x285   :  { %p2793_p11 = por %p2792_p2, %p2791_p0 }
 0x287   :  { %p2794_p9 = pnand %p2793_p11, %p2787_p6 }
 0x289   :  { %2797 = shalt.err (!%p2794_p9)  }
 0x28a   :  { %544 = dma.hbm_to_vmem [thread:$0]  %s532_s23, 16, %s4265_s8, [#allocation3] }
 0x28b   :  { %s547_s13 = scalar_select %p546_p1, %s4277_s29, 0 }
 0x28c   :  { %s566_s0 = scalar_select %p565_p12, %s4279_s28, 0 }
 0x28d   :  { %s5123_s13 = smov (!%p1722_p5, %s547_s13), 2047 }
 0x28e   :  { %s5125_s0 = smov (!%p1729_p3, %s566_s0), 2047  ;;  %s1727_s15 = sshll.u32 %s5123_s13, 4 }
 0x28f   :  { %s551_s11 = scalar_lea.hbm %s5048_s1, %s1727_s15  ;;  %s1734_s5 = sshll.u32 %s5125_s0, 4 }
 0x290   :  { %s2798_s9 = scalar_lea.hbm %s551_s11, 16  ;;  %p2801_p1 = scmp.lt.s32.totalorder %s551_s11, %s5048_s1 }
 0x291   :  { %p2799_p10 = scmp.ne.s32.totalorder %s551_s11, %s2798_s9  ;;  %p2802_p4 = scmp.lt.s32.totalorder %s3719_s3, %s2798_s9 }
 0x293   :  { %p2803_p12 = por %p2802_p4, %p2801_p1 }
 0x295   :  { %p2804_p13 = pnand %p2803_p12, %p2799_p10 }
 0x297   :  { %2807 = shalt.err (!%p2804_p13)  }
 0x298   :  { %s2808_s18 = scalar_lea.vmem %s4283_s30, 16  ;;  %p2813_p3 = scmp.lt.s32.totalorder %s4283_s30, %s3702_s16 }
 0x299   :  { %p2809_p5 = scmp.ne.s32.totalorder %s4283_s30, %s2808_s18  ;;  %p2814_p8 = scmp.lt.s32.totalorder %s3728_s7, %s2808_s18 }
 0x29b   :  { %p2815_p7 = por %p2814_p8, %p2813_p3 }
 0x29d   :  { %p2816_p6 = pnand %p2815_p7, %p2809_p5 }
 0x29f   :  { %2819 = shalt.err (!%p2816_p6)  }
 0x2a0   :  { %563 = dma.hbm_to_vmem [thread:$0]  %s551_s11, 16, %s4283_s30, [#allocation3] }
 0x2a1   :  { %s570_s28 = scalar_lea.hbm %s5048_s1, %s1734_s5  ;;  %p584_p0 = scmp.gt.s32.totalorder %s4286_s17, 0 }
 0x2a2   :  { %s2820_s21 = scalar_lea.hbm %s570_s28, 16  ;;  %p2823_p11 = scmp.lt.s32.totalorder %s570_s28, %s5048_s1 }
 0x2a3   :  { %p2821_p2 = scmp.ne.s32.totalorder %s570_s28, %s2820_s21  ;;  %p2824_p9 = scmp.lt.s32.totalorder %s3719_s3, %s2820_s21 }
 0x2a5   :  { %p2825_p10 = por %p2824_p9, %p2823_p11 }
 0x2a7   :  { %p2826_p1 = pnand %p2825_p10, %p2821_p2 }
 0x2a9   :  { %2829 = shalt.err (!%p2826_p1)  }
 0x2aa   :  { %s2830_s30 = scalar_lea.vmem %s4315_s22, 16  ;;  %p2835_p12 = scmp.lt.s32.totalorder %s4315_s22, %s3702_s16 }
 0x2ab   :  { %p2831_p4 = scmp.ne.s32.totalorder %s4315_s22, %s2830_s30  ;;  %p2836_p13 = scmp.lt.s32.totalorder %s3728_s7, %s2830_s30 }
 0x2ad   :  { %p2837_p5 = por %p2836_p13, %p2835_p12 }
 0x2af   :  { %p2838_p3 = pnand %p2837_p5, %p2831_p4 }
 0x2b1   :  { %2841 = shalt.err (!%p2838_p3)  }
 0x2b2   :  { %582 = dma.hbm_to_vmem [thread:$0]  %s570_s28, 16, %s4315_s22, [#allocation3] }
 0x2b3   :  { %s585_s10 = scalar_select %p584_p0, %s4286_s17, 0 }
 0x2b4   :  { %p1736_p8 = scmp.lt.s32.totalorder %s4286_s17, 2047  ;;  %s3647_s23 = smov [#allocation2 + $0x1e]  }
 0x2b5   :  { %s598_s12 = sshll.u32 %s3647_s23, 4  ;;  %s4348_s6 = sld [smem:[#allocation5 + $0x781]]  ;;  %s599_s12 = int_to_ptr.vmem [resolvable:$true] %s598_s12 }
 0x2b6   :  { %s5127_s10 = smov (!%p1736_p8, %s585_s10), 2047  ;;  %s3648_s4 = smov [#allocation2 + $0x1f]  }
 0x2b7   :  { %s1741_s14 = sshll.u32 %s5127_s10, 4  ;;  %s617_s13 = sshll.u32 %s3648_s4, 4  ;;  %s4353_s13 = int_to_ptr.vmem [resolvable:$true] %s617_s13 }
 0x2b8   :  { %s589_s24 = scalar_lea.hbm %s5048_s1, %s1741_s14 }
 0x2b9   :  { %s2842_s22 = scalar_lea.hbm %s589_s24, 16  ;;  %p2845_p6 = scmp.lt.s32.totalorder %s589_s24, %s5048_s1 }
 0x2ba   :  { %p2843_p7 = scmp.ne.s32.totalorder %s589_s24, %s2842_s22  ;;  %p2846_p0 = scmp.lt.s32.totalorder %s3719_s3, %s2842_s22 }
 0x2bc   :  { %p2847_p2 = por %p2846_p0, %p2845_p6 }
 0x2be   :  { %p2848_p11 = pnand %p2847_p2, %p2843_p7 }
 0x2c0   :  { %2851 = shalt.err (!%p2848_p11)  }
 0x2c1   :  { %s2852_s17 = scalar_lea.vmem %s599_s12, 16  ;;  %p2857_p10 = scmp.lt.s32.totalorder %s599_s12, %s3702_s16 }
 0x2c2   :  { %p2853_p9 = scmp.ne.s32.totalorder %s599_s12, %s2852_s17  ;;  %p2858_p1 = scmp.lt.s32.totalorder %s3728_s7, %s2852_s17 }
 0x2c4   :  { %p2859_p4 = por %p2858_p1, %p2857_p10 }
 0x2c6   :  { %p2860_p12 = pnand %p2859_p4, %p2853_p9 }
 0x2c8   :  { %2863 = shalt.err (!%p2860_p12)  }
 0x2c9   :  { %601 = dma.hbm_to_vmem [thread:$0]  %s589_s24, 16, %s599_s12, [#allocation3] }
 0x2ca   :  { %p603_p13 = scmp.gt.s32.totalorder %s4348_s6, 0  ;;  %p1743_p5 = scmp.lt.s32.totalorder %s4348_s6, 2047 }
 0x2cb   :  { %s4363_s5 = sld [smem:[#allocation5 + $0x2]]  ;;  %s3649_s9 = smov [#allocation2 + $0x20]  }
 0x2cc   :  { %s5129_s6 = smov (!%p603_p13, %s4348_s6), 0  ;;  %s636_s20 = sshll.u32 %s3649_s9, 4  ;;  %s4368_s20 = int_to_ptr.vmem [resolvable:$true] %s636_s20 }
 0x2cd   :  { %s4366_s8 = sld [smem:[#allocation5 + $0x82]]  ;;  %s5131_s6 = smov (!%p1743_p5, %s5129_s6), 2047 }
 0x2ce   :  { %s1748_s18 = sshll.u32 %s5131_s6, 4  ;;  %s3650_s29 = smov [#allocation2 + $0x21]  }
 0x2cf   :  { %s655_s26 = sshll.u32 %s3650_s29, 4  ;;  %s608_s19 = scalar_lea.hbm %s5048_s1, %s1748_s18  ;;  %s4390_s26 = int_to_ptr.vmem [resolvable:$true] %s655_s26 }
 0x2d0   :  { %s2864_s27 = scalar_lea.hbm %s608_s19, 16  ;;  %p2867_p7 = scmp.lt.s32.totalorder %s608_s19, %s5048_s1 }
 0x2d1   :  { %p622_p3 = scmp.gt.s32.totalorder %s4363_s5, 0  ;;  %p2865_p8 = scmp.ne.s32.totalorder %s608_s19, %s2864_s27 }
 0x2d2   :  { %p2868_p6 = scmp.lt.s32.totalorder %s3719_s3, %s2864_s27 }
 0x2d4   :  { %p2869_p0 = por %p2868_p6, %p2867_p7 }
 0x2d6   :  { %p2870_p2 = pnand %p2869_p0, %p2865_p8 }
 0x2d8   :  { %2873 = shalt.err (!%p2870_p2)  }
 0x2d9   :  { %s2874_s23 = scalar_lea.vmem %s4353_s13, 16  ;;  %p2879_p9 = scmp.lt.s32.totalorder %s4353_s13, %s3702_s16 }
 0x2da   :  { %p2875_p11 = scmp.ne.s32.totalorder %s4353_s13, %s2874_s23  ;;  %p2880_p10 = scmp.lt.s32.totalorder %s3728_s7, %s2874_s23 }
 0x2dc   :  { %p2881_p1 = por %p2880_p10, %p2879_p9 }
 0x2de   :  { %p2882_p4 = pnand %p2881_p1, %p2875_p11 }
 0x2e0   :  { %2885 = shalt.err (!%p2882_p4)  }
 0x2e1   :  { %620 = dma.hbm_to_vmem [thread:$0]  %s608_s19, 16, %s4353_s13, [#allocation3] }
 0x2e2   :  { %s623_s12 = scalar_select %p622_p3, %s4363_s5, 0 }
 0x2e3   :  { %p1750_p12 = scmp.lt.s32.totalorder %s4363_s5, 2047  ;;  %p641_p13 = scmp.gt.s32.totalorder %s4366_s8, 0 }
 0x2e4   :  { %p1757_p5 = scmp.lt.s32.totalorder %s4366_s8, 2047  ;;  %s4393_s4 = sld [smem:[#allocation5 + $0x102]] }
 0x2e5   :  { %s5133_s12 = smov (!%p1750_p12, %s623_s12), 2047 }
 0x2e6   :  { %s642_s6 = scalar_select %p641_p13, %s4366_s8, 0 }
 0x2e7   :  { %s1755_s14 = sshll.u32 %s5133_s12, 4 }
 0x2e8   :  { %s627_s24 = scalar_lea.hbm %s5048_s1, %s1755_s14 }
 0x2e9   :  { %s2886_s22 = scalar_lea.hbm %s627_s24, 16  ;;  %p2889_p3 = scmp.lt.s32.totalorder %s627_s24, %s5048_s1 }
 0x2ea   :  { %p2887_p8 = scmp.ne.s32.totalorder %s627_s24, %s2886_s22  ;;  %p2890_p7 = scmp.lt.s32.totalorder %s3719_s3, %s2886_s22 }
 0x2ec   :  { %p2891_p6 = por %p2890_p7, %p2889_p3 }
 0x2ee   :  { %p2892_p0 = pnand %p2891_p6, %p2887_p8 }
 0x2f0   :  { %2895 = shalt.err (!%p2892_p0)  }
 0x2f1   :  { %s2896_s11 = scalar_lea.vmem %s4368_s20, 16  ;;  %p2901_p11 = scmp.lt.s32.totalorder %s4368_s20, %s3702_s16 }
 0x2f2   :  { %p2897_p2 = scmp.ne.s32.totalorder %s4368_s20, %s2896_s11  ;;  %p2902_p9 = scmp.lt.s32.totalorder %s3728_s7, %s2896_s11 }
 0x2f4   :  { %p2903_p10 = por %p2902_p9, %p2901_p11 }
 0x2f6   :  { %p2904_p1 = pnand %p2903_p10, %p2897_p2 }
 0x2f8   :  { %2907 = shalt.err (!%p2904_p1)  }
 0x2f9   :  { %639 = dma.hbm_to_vmem [thread:$0]  %s627_s24, 16, %s4368_s20, [#allocation3] }
 0x2fa   :  { %s5135_s6 = smov (!%p1757_p5, %s642_s6), 2047  ;;  %s3651_s17 = smov [#allocation2 + $0x22]  }
 0x2fb   :  { %s674_s5 = sshll.u32 %s3651_s17, 4  ;;  %s4410_s9 = sld [smem:[#allocation5 + $0x182]]  ;;  %s4412_s5 = int_to_ptr.vmem [resolvable:$true] %s674_s5 }
 0x2fc   :  { %s1762_s18 = sshll.u32 %s5135_s6, 4  ;;  %p660_p4 = scmp.gt.s32.totalorder %s4393_s4, 0 }
 0x2fd   :  { %s646_s21 = scalar_lea.hbm %s5048_s1, %s1762_s18 }
 0x2fe   :  { %s2908_s19 = scalar_lea.hbm %s646_s21, 16  ;;  %p2911_p13 = scmp.lt.s32.totalorder %s646_s21, %s5048_s1 }
 0x2ff   :  { %p2909_p12 = scmp.ne.s32.totalorder %s646_s21, %s2908_s19  ;;  %p2912_p8 = scmp.lt.s32.totalorder %s3719_s3, %s2908_s19 }
 0x301   :  { %p2913_p5 = por %p2912_p8, %p2911_p13 }
 0x303   :  { %p2914_p3 = pnand %p2913_p5, %p2909_p12 }
 0x305   :  { %2917 = shalt.err (!%p2914_p3)  }
 0x306   :  { %s2918_s20 = scalar_lea.vmem %s4390_s26, 16  ;;  %p2923_p6 = scmp.lt.s32.totalorder %s4390_s26, %s3702_s16 }
 0x307   :  { %p2919_p7 = scmp.ne.s32.totalorder %s4390_s26, %s2918_s20  ;;  %p2924_p0 = scmp.lt.s32.totalorder %s3728_s7, %s2918_s20 }
 0x309   :  { %p2925_p2 = por %p2924_p0, %p2923_p6 }
 0x30b   :  { %p2926_p11 = pnand %p2925_p2, %p2919_p7 }
 0x30d   :  { %2929 = shalt.err (!%p2926_p11)  }
 0x30e   :  { %658 = dma.hbm_to_vmem [thread:$0]  %s646_s21, 16, %s4390_s26, [#allocation3] }
 0x30f   :  { %s661_s8 = scalar_select %p660_p4, %s4393_s4, 0 }
 0x310   :  { %p1764_p9 = scmp.lt.s32.totalorder %s4393_s4, 2047  ;;  %p679_p10 = scmp.gt.s32.totalorder %s4410_s9, 0 }
 0x311   :  { %p1771_p1 = scmp.lt.s32.totalorder %s4410_s9, 2047  ;;  %s3652_s12 = smov [#allocation2 + $0x23]  }
 0x312   :  { %s5137_s8 = smov (!%p1764_p9, %s661_s8), 2047  ;;  %s693_s6 = sshll.u32 %s3652_s12, 4  ;;  %s4438_s6 = int_to_ptr.vmem [resolvable:$true] %s693_s6 }
 0x313   :  { %s680_s10 = scalar_select %p679_p10, %s4410_s9, 0 }
 0x314   :  { %s1769_s23 = sshll.u32 %s5137_s8, 4 }
 0x315   :  { %s665_s15 = scalar_lea.hbm %s5048_s1, %s1769_s23 }
 0x316   :  { %s2930_s24 = scalar_lea.hbm %s665_s15, 16  ;;  %p2933_p4 = scmp.lt.s32.totalorder %s665_s15, %s5048_s1 }
 0x317   :  { %p2931_p12 = scmp.ne.s32.totalorder %s665_s15, %s2930_s24  ;;  %p2934_p13 = scmp.lt.s32.totalorder %s3719_s3, %s2930_s24 }
 0x319   :  { %p2935_p8 = por %p2934_p13, %p2933_p4 }
 0x31b   :  { %p2936_p5 = pnand %p2935_p8, %p2931_p12 }
 0x31d   :  { %2939 = shalt.err (!%p2936_p5)  }
 0x31e   :  { %s2940_s4 = scalar_lea.vmem %s4412_s5, 16  ;;  %p2945_p7 = scmp.lt.s32.totalorder %s4412_s5, %s3702_s16 }
 0x31f   :  { %p2941_p3 = scmp.ne.s32.totalorder %s4412_s5, %s2940_s4  ;;  %p2946_p6 = scmp.lt.s32.totalorder %s3728_s7, %s2940_s4 }
 0x321   :  { %p2947_p0 = por %p2946_p6, %p2945_p7 }
 0x323   :  { %p2948_p2 = pnand %p2947_p0, %p2941_p3 }
 0x325   :  { %2951 = shalt.err (!%p2948_p2)  }
 0x326   :  { %677 = dma.hbm_to_vmem [thread:$0]  %s665_s15, 16, %s4412_s5, [#allocation3] }
 0x327   :  { %s5139_s10 = smov (!%p1771_p1, %s680_s10), 2047  ;;  %s4452_s25 = sld [smem:[#allocation5 + $0x202]] }
 0x328   :  { %s1776_s13 = sshll.u32 %s5139_s10, 4  ;;  %s3653_s11 = smov [#allocation2 + $0x24]  }
 0x329   :  { %s712_s17 = sshll.u32 %s3653_s11, 4  ;;  %s684_s28 = scalar_lea.hbm %s5048_s1, %s1776_s13  ;;  %s4457_s17 = int_to_ptr.vmem [resolvable:$true] %s712_s17 }
 0x32a   :  { %s2952_s21 = scalar_lea.hbm %s684_s28, 16  ;;  %p2955_p9 = scmp.lt.s32.totalorder %s684_s28, %s5048_s1 }
 0x32b   :  { %p2953_p11 = scmp.ne.s32.totalorder %s684_s28, %s2952_s21  ;;  %p2956_p10 = scmp.lt.s32.totalorder %s3719_s3, %s2952_s21 }
 0x32d   :  { %p2957_p12 = por %p2956_p10, %p2955_p9 }
 0x32f   :  { %p2958_p1 = pnand %p2957_p12, %p2953_p11 }
 0x331   :  { %2961 = shalt.err (!%p2958_p1)  }
 0x332   :  { %s2962_s5 = scalar_lea.vmem %s4438_s6, 16  ;;  %p2967_p13 = scmp.lt.s32.totalorder %s4438_s6, %s3702_s16 }
 0x333   :  { %p2963_p4 = scmp.ne.s32.totalorder %s4438_s6, %s2962_s5  ;;  %p2968_p8 = scmp.lt.s32.totalorder %s3728_s7, %s2962_s5 }
 0x335   :  { %p2969_p5 = por %p2968_p8, %p2967_p13 }
 0x337   :  { %p2970_p3 = pnand %p2969_p5, %p2963_p4 }
 0x339   :  { %2973 = shalt.err (!%p2970_p3)  }
 0x33a   :  { %696 = dma.hbm_to_vmem [thread:$0]  %s684_s28, 16, %s4438_s6, [#allocation3] }
 0x33b   :  { %s4469_s9 = sld [smem:[#allocation5 + $0x282]]  ;;  %s3654_s30 = smov [#allocation2 + $0x25]  }
 0x33c   :  { %s731_s20 = sshll.u32 %s3654_s30, 4  ;;  %s4471_s8 = sld [smem:[#allocation5 + $0x302]]  ;;  %s4475_s20 = int_to_ptr.vmem [resolvable:$true] %s731_s20 }
 0x33d   :  { %p698_p7 = scmp.gt.s32.totalorder %s4452_s25, 0  ;;  %p1778_p6 = scmp.lt.s32.totalorder %s4452_s25, 2047 }
 0x33e   :  { %s3655_s10 = smov [#allocation2 + $0x26]   ;;  %s4478_s12 = sld [smem:[#allocation5 + $0x382]] }
 0x33f   :  { %s5141_s25 = smov (!%p698_p7, %s4452_s25), 0  ;;  %s750_s23 = sshll.u32 %s3655_s10, 4  ;;  %s4507_s23 = int_to_ptr.vmem [resolvable:$true] %s750_s23 }
 0x340   :  { %s5143_s25 = smov (!%p1778_p6, %s5141_s25), 2047 }
 0x341   :  { %p717_p0 = scmp.gt.s32.totalorder %s4469_s9, 0  ;;  %p1785_p2 = scmp.lt.s32.totalorder %s4469_s9, 2047 }
 0x342   :  { %s1783_s6 = sshll.u32 %s5143_s25, 4  ;;  %p736_p11 = scmp.gt.s32.totalorder %s4471_s8, 0 }
 0x343   :  { %s703_s15 = scalar_lea.hbm %s5048_s1, %s1783_s6  ;;  %p1792_p9 = scmp.lt.s32.totalorder %s4471_s8, 2047 }
 0x344   :  { %s2974_s24 = scalar_lea.hbm %s703_s15, 16  ;;  %p2977_p12 = scmp.lt.s32.totalorder %s703_s15, %s5048_s1 }
 0x345   :  { %p2975_p10 = scmp.ne.s32.totalorder %s703_s15, %s2974_s24  ;;  %p2978_p1 = scmp.lt.s32.totalorder %s3719_s3, %s2974_s24 }
 0x347   :  { %p2979_p4 = por %p2978_p1, %p2977_p12 }
 0x349   :  { %p2980_p13 = pnand %p2979_p4, %p2975_p10 }
 0x34b   :  { %2983 = shalt.err (!%p2980_p13)  }
 0x34c   :  { %s2984_s4 = scalar_lea.vmem %s4457_s17, 16  ;;  %p2989_p5 = scmp.lt.s32.totalorder %s4457_s17, %s3702_s16 }
 0x34d   :  { %p2985_p8 = scmp.ne.s32.totalorder %s4457_s17, %s2984_s4  ;;  %p2990_p3 = scmp.lt.s32.totalorder %s3728_s7, %s2984_s4 }
 0x34f   :  { %p2991_p7 = por %p2990_p3, %p2989_p5 }
 0x351   :  { %p2992_p6 = pnand %p2991_p7, %p2985_p8 }
 0x353   :  { %2995 = shalt.err (!%p2992_p6)  }
 0x354   :  { %715 = dma.hbm_to_vmem [thread:$0]  %s703_s15, 16, %s4457_s17, [#allocation3] }
 0x355   :  { %s718_s25 = scalar_select %p717_p0, %s4469_s9, 0 }
 0x356   :  { %s737_s13 = scalar_select %p736_p11, %s4471_s8, 0 }
 0x357   :  { %s5145_s25 = smov (!%p1785_p2, %s718_s25), 2047 }
 0x358   :  { %s5147_s13 = smov (!%p1792_p9, %s737_s13), 2047  ;;  %s1790_s11 = sshll.u32 %s5145_s25, 4 }
 0x359   :  { %s722_s28 = scalar_lea.hbm %s5048_s1, %s1790_s11  ;;  %s1797_s21 = sshll.u32 %s5147_s13, 4 }
 0x35a   :  { %s2996_s19 = scalar_lea.hbm %s722_s28, 16  ;;  %p2999_p0 = scmp.lt.s32.totalorder %s722_s28, %s5048_s1 }
 0x35b   :  { %p2997_p10 = scmp.ne.s32.totalorder %s722_s28, %s2996_s19  ;;  %p3000_p12 = scmp.lt.s32.totalorder %s3719_s3, %s2996_s19 }
 0x35d   :  { %p3001_p11 = por %p3000_p12, %p2999_p0 }
 0x35f   :  { %p3002_p1 = pnand %p3001_p11, %p2997_p10 }
 0x361   :  { %3005 = shalt.err (!%p3002_p1)  }
 0x362   :  { %s3006_s5 = scalar_lea.vmem %s4475_s20, 16  ;;  %p3011_p9 = scmp.lt.s32.totalorder %s4475_s20, %s3702_s16 }
 0x363   :  { %p3007_p2 = scmp.ne.s32.totalorder %s4475_s20, %s3006_s5  ;;  %p3012_p4 = scmp.lt.s32.totalorder %s3728_s7, %s3006_s5 }
 0x365   :  { %p3013_p13 = por %p3012_p4, %p3011_p9 }
 0x367   :  { %p3014_p8 = pnand %p3013_p13, %p3007_p2 }
 0x369   :  { %3017 = shalt.err (!%p3014_p8)  }
 0x36a   :  { %734 = dma.hbm_to_vmem [thread:$0]  %s722_s28, 16, %s4475_s20, [#allocation3] }
 0x36b   :  { %s741_s8 = scalar_lea.hbm %s5048_s1, %s1797_s21  ;;  %p755_p5 = scmp.gt.s32.totalorder %s4478_s12, 0 }
 0x36c   :  { %s3018_s10 = scalar_lea.hbm %s741_s8, 16  ;;  %p3021_p7 = scmp.lt.s32.totalorder %s741_s8, %s5048_s1 }
 0x36d   :  { %p3019_p3 = scmp.ne.s32.totalorder %s741_s8, %s3018_s10  ;;  %p3022_p6 = scmp.lt.s32.totalorder %s3719_s3, %s3018_s10 }
 0x36f   :  { %p3023_p10 = por %p3022_p6, %p3021_p7 }
 0x371   :  { %p3024_p0 = pnand %p3023_p10, %p3019_p3 }
 0x373   :  { %3027 = shalt.err (!%p3024_p0)  }
 0x374   :  { %s3028_s20 = scalar_lea.vmem %s4507_s23, 16  ;;  %p3033_p11 = scmp.lt.s32.totalorder %s4507_s23, %s3702_s16 }
 0x375   :  { %p3029_p12 = scmp.ne.s32.totalorder %s4507_s23, %s3028_s20  ;;  %p3034_p1 = scmp.lt.s32.totalorder %s3728_s7, %s3028_s20 }
 0x377   :  { %p3035_p2 = por %p3034_p1, %p3033_p11 }
 0x379   :  { %p3036_p9 = pnand %p3035_p2, %p3029_p12 }
 0x37b   :  { %3039 = shalt.err (!%p3036_p9)  }
 0x37c   :  { %753 = dma.hbm_to_vmem [thread:$0]  %s741_s8, 16, %s4507_s23, [#allocation3] }
 0x37d   :  { %s756_s0 = scalar_select %p755_p5, %s4478_s12, 0 }
 0x37e   :  { %p1799_p4 = scmp.lt.s32.totalorder %s4478_s12, 2047  ;;  %s3656_s15 = smov [#allocation2 + $0x27]  }
 0x37f   :  { %s769_s24 = sshll.u32 %s3656_s15, 4  ;;  %s4540_s22 = sld [smem:[#allocation5 + $0x402]]  ;;  %s770_s24 = int_to_ptr.vmem [resolvable:$true] %s769_s24 }
 0x380   :  { %s5149_s0 = smov (!%p1799_p4, %s756_s0), 2047  ;;  %s3657_s4 = smov [#allocation2 + $0x28]  }
 0x381   :  { %s1804_s26 = sshll.u32 %s5149_s0, 4  ;;  %s788_s25 = sshll.u32 %s3657_s4, 4  ;;  %s4545_s25 = int_to_ptr.vmem [resolvable:$true] %s788_s25 }
 0x382   :  { %s760_s18 = scalar_lea.hbm %s5048_s1, %s1804_s26 }
 0x383   :  { %s3040_s23 = scalar_lea.hbm %s760_s18, 16  ;;  %p3043_p8 = scmp.lt.s32.totalorder %s760_s18, %s5048_s1 }
 0x384   :  { %p3041_p13 = scmp.ne.s32.totalorder %s760_s18, %s3040_s23  ;;  %p3044_p5 = scmp.lt.s32.totalorder %s3719_s3, %s3040_s23 }
 0x386   :  { %p3045_p3 = por %p3044_p5, %p3043_p8 }
 0x388   :  { %p3046_p7 = pnand %p3045_p3, %p3041_p13 }
 0x38a   :  { %3049 = shalt.err (!%p3046_p7)  }
 0x38b   :  { %s3050_s12 = scalar_lea.vmem %s770_s24, 16  ;;  %p3055_p10 = scmp.lt.s32.totalorder %s770_s24, %s3702_s16 }
 0x38c   :  { %p3051_p6 = scmp.ne.s32.totalorder %s770_s24, %s3050_s12  ;;  %p3056_p0 = scmp.lt.s32.totalorder %s3728_s7, %s3050_s12 }
 0x38e   :  { %p3057_p12 = por %p3056_p0, %p3055_p10 }
 0x390   :  { %p3058_p11 = pnand %p3057_p12, %p3051_p6 }
 0x392   :  { %3061 = shalt.err (!%p3058_p11)  }
 0x393   :  { %772 = dma.hbm_to_vmem [thread:$0]  %s760_s18, 16, %s770_s24, [#allocation3] }
 0x394   :  { %p774_p1 = scmp.gt.s32.totalorder %s4540_s22, 0  ;;  %p1806_p2 = scmp.lt.s32.totalorder %s4540_s22, 2047 }
 0x395   :  { %s4555_s21 = sld [smem:[#allocation5 + $0x482]]  ;;  %s3658_s19 = smov [#allocation2 + $0x29]  }
 0x396   :  { %s5151_s22 = smov (!%p774_p1, %s4540_s22), 0  ;;  %s807_s27 = sshll.u32 %s3658_s19, 4  ;;  %s4560_s27 = int_to_ptr.vmem [resolvable:$true] %s807_s27 }
 0x397   :  { %s4558_s17 = sld [smem:[#allocation5 + $0x502]]  ;;  %s5153_s22 = smov (!%p1806_p2, %s5151_s22), 2047 }
 0x398   :  { %s1811_s5 = sshll.u32 %s5153_s22, 4  ;;  %s3659_s9 = smov [#allocation2 + $0x2a]  }
 0x399   :  { %s826_s30 = sshll.u32 %s3659_s9, 4  ;;  %s779_s6 = scalar_lea.hbm %s5048_s1, %s1811_s5  ;;  %s4582_s30 = int_to_ptr.vmem [resolvable:$true] %s826_s30 }
 0x39a   :  { %s3062_s14 = scalar_lea.hbm %s779_s6, 16  ;;  %p3065_p13 = scmp.lt.s32.totalorder %s779_s6, %s5048_s1 }
 0x39b   :  { %p793_p9 = scmp.gt.s32.totalorder %s4555_s21, 0  ;;  %p3063_p4 = scmp.ne.s32.totalorder %s779_s6, %s3062_s14 }
 0x39c   :  { %p3066_p8 = scmp.lt.s32.totalorder %s3719_s3, %s3062_s14 }
 0x39e   :  { %p3067_p5 = por %p3066_p8, %p3065_p13 }
 0x3a0   :  { %p3068_p3 = pnand %p3067_p5, %p3063_p4 }
 0x3a2   :  { %3071 = shalt.err (!%p3068_p3)  }
 0x3a3   :  { %s3072_s15 = scalar_lea.vmem %s4545_s25, 16  ;;  %p3077_p6 = scmp.lt.s32.totalorder %s4545_s25, %s3702_s16 }
 0x3a4   :  { %p3073_p7 = scmp.ne.s32.totalorder %s4545_s25, %s3072_s15  ;;  %p3078_p10 = scmp.lt.s32.totalorder %s3728_s7, %s3072_s15 }
 0x3a6   :  { %p3079_p0 = por %p3078_p10, %p3077_p6 }
 0x3a8   :  { %p3080_p12 = pnand %p3079_p0, %p3073_p7 }
 0x3aa   :  { %3083 = shalt.err (!%p3080_p12)  }
 0x3ab   :  { %791 = dma.hbm_to_vmem [thread:$0]  %s779_s6, 16, %s4545_s25, [#allocation3] }
 0x3ac   :  { %s794_s24 = scalar_select %p793_p9, %s4555_s21, 0 }
 0x3ad   :  { %p1813_p11 = scmp.lt.s32.totalorder %s4555_s21, 2047  ;;  %p812_p1 = scmp.gt.s32.totalorder %s4558_s17, 0 }
 0x3ae   :  { %p1820_p2 = scmp.lt.s32.totalorder %s4558_s17, 2047  ;;  %s4585_s4 = sld [smem:[#allocation5 + $0x582]] }
 0x3af   :  { %s5155_s24 = smov (!%p1813_p11, %s794_s24), 2047 }
 0x3b0   :  { %s813_s22 = scalar_select %p812_p1, %s4558_s17, 0 }
 0x3b1   :  { %s1818_s26 = sshll.u32 %s5155_s24, 4 }
 0x3b2   :  { %s798_s18 = scalar_lea.hbm %s5048_s1, %s1818_s26 }
 0x3b3   :  { %s3084_s23 = scalar_lea.hbm %s798_s18, 16  ;;  %p3087_p9 = scmp.lt.s32.totalorder %s798_s18, %s5048_s1 }
 0x3b4   :  { %p3085_p4 = scmp.ne.s32.totalorder %s798_s18, %s3084_s23  ;;  %p3088_p13 = scmp.lt.s32.totalorder %s3719_s3, %s3084_s23 }
 0x3b6   :  { %p3089_p8 = por %p3088_p13, %p3087_p9 }
 0x3b8   :  { %p3090_p5 = pnand %p3089_p8, %p3085_p4 }
 0x3ba   :  { %3093 = shalt.err (!%p3090_p5)  }
 0x3bb   :  { %s3094_s28 = scalar_lea.vmem %s4560_s27, 16  ;;  %p3099_p7 = scmp.lt.s32.totalorder %s4560_s27, %s3702_s16 }
 0x3bc   :  { %p3095_p3 = scmp.ne.s32.totalorder %s4560_s27, %s3094_s28  ;;  %p3100_p6 = scmp.lt.s32.totalorder %s3728_s7, %s3094_s28 }
 0x3be   :  { %p3101_p10 = por %p3100_p6, %p3099_p7 }
 0x3c0   :  { %p3102_p0 = pnand %p3101_p10, %p3095_p3 }
 0x3c2   :  { %3105 = shalt.err (!%p3102_p0)  }
 0x3c3   :  { %810 = dma.hbm_to_vmem [thread:$0]  %s798_s18, 16, %s4560_s27, [#allocation3] }
 0x3c4   :  { %s5157_s22 = smov (!%p1820_p2, %s813_s22), 2047  ;;  %s3660_s12 = smov [#allocation2 + $0x2b]  }
 0x3c5   :  { %s845_s21 = sshll.u32 %s3660_s12, 4  ;;  %s4602_s19 = sld [smem:[#allocation5 + $0x602]]  ;;  %s4604_s21 = int_to_ptr.vmem [resolvable:$true] %s845_s21 }
 0x3c6   :  { %s1825_s5 = sshll.u32 %s5157_s22, 4  ;;  %p831_p12 = scmp.gt.s32.totalorder %s4585_s4, 0 }
 0x3c7   :  { %s817_s10 = scalar_lea.hbm %s5048_s1, %s1825_s5 }
 0x3c8   :  { %s3106_s6 = scalar_lea.hbm %s817_s10, 16  ;;  %p3109_p1 = scmp.lt.s32.totalorder %s817_s10, %s5048_s1 }
 0x3c9   :  { %p3107_p11 = scmp.ne.s32.totalorder %s817_s10, %s3106_s6  ;;  %p3110_p4 = scmp.lt.s32.totalorder %s3719_s3, %s3106_s6 }
 0x3cb   :  { %p3111_p2 = por %p3110_p4, %p3109_p1 }
 0x3cd   :  { %p3112_p9 = pnand %p3111_p2, %p3107_p11 }
 0x3cf   :  { %3115 = shalt.err (!%p3112_p9)  }
 0x3d0   :  { %s3116_s27 = scalar_lea.vmem %s4582_s30, 16  ;;  %p3121_p8 = scmp.lt.s32.totalorder %s4582_s30, %s3702_s16 }
 0x3d1   :  { %p3117_p13 = scmp.ne.s32.totalorder %s4582_s30, %s3116_s27  ;;  %p3122_p5 = scmp.lt.s32.totalorder %s3728_s7, %s3116_s27 }
 0x3d3   :  { %p3123_p3 = por %p3122_p5, %p3121_p8 }
 0x3d5   :  { %p3124_p7 = pnand %p3123_p3, %p3117_p13 }
 0x3d7   :  { %3127 = shalt.err (!%p3124_p7)  }
 0x3d8   :  { %829 = dma.hbm_to_vmem [thread:$0]  %s817_s10, 16, %s4582_s30, [#allocation3] }
 0x3d9   :  { %s832_s17 = scalar_select %p831_p12, %s4585_s4, 0 }
 0x3da   :  { %p1827_p6 = scmp.lt.s32.totalorder %s4585_s4, 2047  ;;  %p850_p10 = scmp.gt.s32.totalorder %s4602_s19, 0 }
 0x3db   :  { %p1834_p0 = scmp.lt.s32.totalorder %s4602_s19, 2047  ;;  %s3661_s24 = smov [#allocation2 + $0x2c]  }
 0x3dc   :  { %s5159_s17 = smov (!%p1827_p6, %s832_s17), 2047  ;;  %s864_s22 = sshll.u32 %s3661_s24, 4  ;;  %s4630_s22 = int_to_ptr.vmem [resolvable:$true] %s864_s22 }
 0x3dd   :  { %s851_s0 = scalar_select %p850_p10, %s4602_s19, 0 }
 0x3de   :  { %s1832_s15 = sshll.u32 %s5159_s17, 4 }
 0x3df   :  { %s836_s11 = scalar_lea.hbm %s5048_s1, %s1832_s15 }
 0x3e0   :  { %s3128_s18 = scalar_lea.hbm %s836_s11, 16  ;;  %p3131_p12 = scmp.lt.s32.totalorder %s836_s11, %s5048_s1 }
 0x3e1   :  { %p3129_p11 = scmp.ne.s32.totalorder %s836_s11, %s3128_s18  ;;  %p3132_p1 = scmp.lt.s32.totalorder %s3719_s3, %s3128_s18 }
 0x3e3   :  { %p3133_p4 = por %p3132_p1, %p3131_p12 }
 0x3e5   :  { %p3134_p2 = pnand %p3133_p4, %p3129_p11 }
 0x3e7   :  { %3137 = shalt.err (!%p3134_p2)  }
 0x3e8   :  { %s3138_s4 = scalar_lea.vmem %s4604_s21, 16  ;;  %p3143_p13 = scmp.lt.s32.totalorder %s4604_s21, %s3702_s16 }
 0x3e9   :  { %p3139_p9 = scmp.ne.s32.totalorder %s4604_s21, %s3138_s4  ;;  %p3144_p8 = scmp.lt.s32.totalorder %s3728_s7, %s3138_s4 }
 0x3eb   :  { %p3145_p5 = por %p3144_p8, %p3143_p13 }
 0x3ed   :  { %p3146_p3 = pnand %p3145_p5, %p3139_p9 }
 0x3ef   :  { %3149 = shalt.err (!%p3146_p3)  }
 0x3f0   :  { %848 = dma.hbm_to_vmem [thread:$0]  %s836_s11, 16, %s4604_s21, [#allocation3] }
 0x3f1   :  { %s5161_s0 = smov (!%p1834_p0, %s851_s0), 2047  ;;  %s4644_s29 = sld [smem:[#allocation5 + $0x682]] }
 0x3f2   :  { %s1839_s25 = sshll.u32 %s5161_s0, 4  ;;  %s3662_s28 = smov [#allocation2 + $0x2d]  }
 0x3f3   :  { %s883_s12 = sshll.u32 %s3662_s28, 4  ;;  %s855_s8 = scalar_lea.hbm %s5048_s1, %s1839_s25  ;;  %s4649_s12 = int_to_ptr.vmem [resolvable:$true] %s883_s12 }
 0x3f4   :  { %s3150_s10 = scalar_lea.hbm %s855_s8, 16  ;;  %p3153_p6 = scmp.lt.s32.totalorder %s855_s8, %s5048_s1 }
 0x3f5   :  { %p3151_p7 = scmp.ne.s32.totalorder %s855_s8, %s3150_s10  ;;  %p3154_p10 = scmp.lt.s32.totalorder %s3719_s3, %s3150_s10 }
 0x3f7   :  { %p3155_p11 = por %p3154_p10, %p3153_p6 }
 0x3f9   :  { %p3156_p0 = pnand %p3155_p11, %p3151_p7 }
 0x3fb   :  { %3159 = shalt.err (!%p3156_p0)  }
 0x3fc   :  { %s3160_s21 = scalar_lea.vmem %s4630_s22, 16  ;;  %p3165_p1 = scmp.lt.s32.totalorder %s4630_s22, %s3702_s16 }
 0x3fd   :  { %p3161_p12 = scmp.ne.s32.totalorder %s4630_s22, %s3160_s21  ;;  %p3166_p4 = scmp.lt.s32.totalorder %s3728_s7, %s3160_s21 }
 0x3ff   :  { %p3167_p2 = por %p3166_p4, %p3165_p1 }
 0x401   :  { %p3168_p9 = pnand %p3167_p2, %p3161_p12 }
 0x403   :  { %3171 = shalt.err (!%p3168_p9)  }
 0x404   :  { %867 = dma.hbm_to_vmem [thread:$0]  %s855_s8, 16, %s4630_s22, [#allocation3] }
 0x405   :  { %s4661_s19 = sld [smem:[#allocation5 + $0x702]]  ;;  %s3663_s20 = smov [#allocation2 + $0x2e]  }
 0x406   :  { %s902_s27 = sshll.u32 %s3663_s20, 4  ;;  %s4663_s17 = sld [smem:[#allocation5 + $0x782]]  ;;  %s4667_s27 = int_to_ptr.vmem [resolvable:$true] %s902_s27 }
 0x407   :  { %p869_p13 = scmp.gt.s32.totalorder %s4644_s29, 0  ;;  %p1841_p8 = scmp.lt.s32.totalorder %s4644_s29, 2047 }
 0x408   :  { %s3664_s0 = smov [#allocation2 + $0x2f]   ;;  %s4670_s24 = sld [smem:[#allocation5 + $0x3]] }
 0x409   :  { %s5163_s29 = smov (!%p869_p13, %s4644_s29), 0  ;;  %s921_s15 = sshll.u32 %s3664_s0, 4  ;;  %s4699_s15 = int_to_ptr.vmem [resolvable:$true] %s921_s15 }
 0x40a   :  { %s5165_s29 = smov (!%p1841_p8, %s5163_s29), 2047 }
 0x40b   :  { %p888_p5 = scmp.gt.s32.totalorder %s4661_s19, 0  ;;  %p1848_p3 = scmp.lt.s32.totalorder %s4661_s19, 2047 }
 0x40c   :  { %s1846_s22 = sshll.u32 %s5165_s29, 4  ;;  %p907_p7 = scmp.gt.s32.totalorder %s4663_s17, 0 }
 0x40d   :  { %s874_s11 = scalar_lea.hbm %s5048_s1, %s1846_s22  ;;  %p1855_p6 = scmp.lt.s32.totalorder %s4663_s17, 2047 }
 0x40e   :  { %s3172_s18 = scalar_lea.hbm %s874_s11, 16  ;;  %p3175_p11 = scmp.lt.s32.totalorder %s874_s11, %s5048_s1 }
 0x40f   :  { %p3173_p10 = scmp.ne.s32.totalorder %s874_s11, %s3172_s18  ;;  %p3176_p0 = scmp.lt.s32.totalorder %s3719_s3, %s3172_s18 }
 0x411   :  { %p3177_p12 = por %p3176_p0, %p3175_p11 }
 0x413   :  { %p3178_p1 = pnand %p3177_p12, %p3173_p10 }
 0x415   :  { %3181 = shalt.err (!%p3178_p1)  }
 0x416   :  { %s3182_s4 = scalar_lea.vmem %s4649_s12, 16  ;;  %p3187_p2 = scmp.lt.s32.totalorder %s4649_s12, %s3702_s16 }
 0x417   :  { %p3183_p4 = scmp.ne.s32.totalorder %s4649_s12, %s3182_s4  ;;  %p3188_p9 = scmp.lt.s32.totalorder %s3728_s7, %s3182_s4 }
 0x419   :  { %p3189_p13 = por %p3188_p9, %p3187_p2 }
 0x41b   :  { %p3190_p8 = pnand %p3189_p13, %p3183_p4 }
 0x41d   :  { %3193 = shalt.err (!%p3190_p8)  }
 0x41e   :  { %886 = dma.hbm_to_vmem [thread:$0]  %s874_s11, 16, %s4649_s12, [#allocation3] }
 0x41f   :  { %s889_s29 = scalar_select %p888_p5, %s4661_s19, 0 }
 0x420   :  { %s908_s25 = scalar_select %p907_p7, %s4663_s17, 0 }
 0x421   :  { %s5167_s29 = smov (!%p1848_p3, %s889_s29), 2047 }
 0x422   :  { %s5169_s25 = smov (!%p1855_p6, %s908_s25), 2047  ;;  %s1853_s28 = sshll.u32 %s5167_s29, 4 }
 0x423   :  { %s893_s8 = scalar_lea.hbm %s5048_s1, %s1853_s28  ;;  %s1860_s10 = sshll.u32 %s5169_s25, 4 }
 0x424   :  { %s3194_s6 = scalar_lea.hbm %s893_s8, 16  ;;  %p3197_p5 = scmp.lt.s32.totalorder %s893_s8, %s5048_s1 }
 0x425   :  { %p3195_p10 = scmp.ne.s32.totalorder %s893_s8, %s3194_s6  ;;  %p3198_p11 = scmp.lt.s32.totalorder %s3719_s3, %s3194_s6 }
 0x427   :  { %p3199_p7 = por %p3198_p11, %p3197_p5 }
 0x429   :  { %p3200_p0 = pnand %p3199_p7, %p3195_p10 }
 0x42b   :  { %3203 = shalt.err (!%p3200_p0)  }
 0x42c   :  { %s3204_s21 = scalar_lea.vmem %s4667_s27, 16  ;;  %p3209_p6 = scmp.lt.s32.totalorder %s4667_s27, %s3702_s16 }
 0x42d   :  { %p3205_p3 = scmp.ne.s32.totalorder %s4667_s27, %s3204_s21  ;;  %p3210_p12 = scmp.lt.s32.totalorder %s3728_s7, %s3204_s21 }
 0x42f   :  { %p3211_p1 = por %p3210_p12, %p3209_p6 }
 0x431   :  { %p3212_p4 = pnand %p3211_p1, %p3205_p3 }
 0x433   :  { %3215 = shalt.err (!%p3212_p4)  }
 0x434   :  { %905 = dma.hbm_to_vmem [thread:$0]  %s893_s8, 16, %s4667_s27, [#allocation3] }
 0x435   :  { %s912_s17 = scalar_lea.hbm %s5048_s1, %s1860_s10  ;;  %p926_p2 = scmp.gt.s32.totalorder %s4670_s24, 0 }
 0x436   :  { %s3216_s0 = scalar_lea.hbm %s912_s17, 16  ;;  %p3219_p13 = scmp.lt.s32.totalorder %s912_s17, %s5048_s1 }
 0x437   :  { %p3217_p9 = scmp.ne.s32.totalorder %s912_s17, %s3216_s0  ;;  %p3220_p8 = scmp.lt.s32.totalorder %s3719_s3, %s3216_s0 }
 0x439   :  { %p3221_p10 = por %p3220_p8, %p3219_p13 }
 0x43b   :  { %p3222_p5 = pnand %p3221_p10, %p3217_p9 }
 0x43d   :  { %3225 = shalt.err (!%p3222_p5)  }
 0x43e   :  { %s3226_s27 = scalar_lea.vmem %s4699_s15, 16  ;;  %p3231_p7 = scmp.lt.s32.totalorder %s4699_s15, %s3702_s16 }
 0x43f   :  { %p3227_p11 = scmp.ne.s32.totalorder %s4699_s15, %s3226_s27  ;;  %p3232_p0 = scmp.lt.s32.totalorder %s3728_s7, %s3226_s27 }
 0x441   :  { %p3233_p3 = por %p3232_p0, %p3231_p7 }
 0x443   :  { %p3234_p6 = pnand %p3233_p3, %p3227_p11 }
 0x445   :  { %3237 = shalt.err (!%p3234_p6)  }
 0x446   :  { %924 = dma.hbm_to_vmem [thread:$0]  %s912_s17, 16, %s4699_s15, [#allocation3] }
 0x447   :  { %s927_s13 = scalar_select %p926_p2, %s4670_s24, 0 }
 0x448   :  { %p1862_p12 = scmp.lt.s32.totalorder %s4670_s24, 2047  ;;  %s3665_s11 = smov [#allocation2 + $0x30]  }
 0x449   :  { %s940_s18 = sshll.u32 %s3665_s11, 4  ;;  %s4732_s23 = sld [smem:[#allocation5 + $0x83]]  ;;  %s941_s18 = int_to_ptr.vmem [resolvable:$true] %s940_s18 }
 0x44a   :  { %s5171_s13 = smov (!%p1862_p12, %s927_s13), 2047  ;;  %s3666_s4 = smov [#allocation2 + $0x31]  }
 0x44b   :  { %s1867_s30 = sshll.u32 %s5171_s13, 4  ;;  %s959_s29 = sshll.u32 %s3666_s4, 4  ;;  %s4737_s29 = int_to_ptr.vmem [resolvable:$true] %s959_s29 }
 0x44c   :  { %s931_s5 = scalar_lea.hbm %s5048_s1, %s1867_s30 }
 0x44d   :  { %s3238_s15 = scalar_lea.hbm %s931_s5, 16  ;;  %p3241_p4 = scmp.lt.s32.totalorder %s931_s5, %s5048_s1 }
 0x44e   :  { %p3239_p1 = scmp.ne.s32.totalorder %s931_s5, %s3238_s15  ;;  %p3242_p2 = scmp.lt.s32.totalorder %s3719_s3, %s3238_s15 }
 0x450   :  { %p3243_p9 = por %p3242_p2, %p3241_p4 }
 0x452   :  { %p3244_p13 = pnand %p3243_p9, %p3239_p1 }
 0x454   :  { %3247 = shalt.err (!%p3244_p13)  }
 0x455   :  { %s3248_s24 = scalar_lea.vmem %s941_s18, 16  ;;  %p3253_p10 = scmp.lt.s32.totalorder %s941_s18, %s3702_s16 }
 0x456   :  { %p3249_p8 = scmp.ne.s32.totalorder %s941_s18, %s3248_s24  ;;  %p3254_p5 = scmp.lt.s32.totalorder %s3728_s7, %s3248_s24 }
 0x458   :  { %p3255_p11 = por %p3254_p5, %p3253_p10 }
 0x45a   :  { %p3256_p7 = pnand %p3255_p11, %p3249_p8 }
 0x45c   :  { %3259 = shalt.err (!%p3256_p7)  }
 0x45d   :  { %943 = dma.hbm_to_vmem [thread:$0]  %s931_s5, 16, %s941_s18, [#allocation3] }
 0x45e   :  { %p945_p0 = scmp.gt.s32.totalorder %s4732_s23, 0  ;;  %p1869_p3 = scmp.lt.s32.totalorder %s4732_s23, 2047 }
 0x45f   :  { %s4747_s10 = sld [smem:[#allocation5 + $0x103]]  ;;  %s3667_s6 = smov [#allocation2 + $0x32]  }
 0x460   :  { %s5173_s23 = smov (!%p945_p0, %s4732_s23), 0  ;;  %s978_s14 = sshll.u32 %s3667_s6, 4  ;;  %s4752_s14 = int_to_ptr.vmem [resolvable:$true] %s978_s14 }
 0x461   :  { %s4750_s12 = sld [smem:[#allocation5 + $0x183]]  ;;  %s5175_s23 = smov (!%p1869_p3, %s5173_s23), 2047 }
 0x462   :  { %s1874_s21 = sshll.u32 %s5175_s23, 4  ;;  %s3668_s19 = smov [#allocation2 + $0x33]  }
 0x463   :  { %s997_s20 = sshll.u32 %s3668_s19, 4  ;;  %s950_s22 = scalar_lea.hbm %s5048_s1, %s1874_s21  ;;  %s4774_s20 = int_to_ptr.vmem [resolvable:$true] %s997_s20 }
 0x464   :  { %s3260_s26 = scalar_lea.hbm %s950_s22, 16  ;;  %p3263_p1 = scmp.lt.s32.totalorder %s950_s22, %s5048_s1 }
 0x465   :  { %p964_p6 = scmp.gt.s32.totalorder %s4747_s10, 0  ;;  %p3261_p12 = scmp.ne.s32.totalorder %s950_s22, %s3260_s26 }
 0x466   :  { %p3264_p4 = scmp.lt.s32.totalorder %s3719_s3, %s3260_s26 }
 0x468   :  { %p3265_p2 = por %p3264_p4, %p3263_p1 }
 0x46a   :  { %p3266_p9 = pnand %p3265_p2, %p3261_p12 }
 0x46c   :  { %3269 = shalt.err (!%p3266_p9)  }
 0x46d   :  { %s3270_s11 = scalar_lea.vmem %s4737_s29, 16  ;;  %p3275_p8 = scmp.lt.s32.totalorder %s4737_s29, %s3702_s16 }
 0x46e   :  { %p3271_p13 = scmp.ne.s32.totalorder %s4737_s29, %s3270_s11  ;;  %p3276_p10 = scmp.lt.s32.totalorder %s3728_s7, %s3270_s11 }
 0x470   :  { %p3277_p5 = por %p3276_p10, %p3275_p8 }
 0x472   :  { %p3278_p11 = pnand %p3277_p5, %p3271_p13 }
 0x474   :  { %3281 = shalt.err (!%p3278_p11)  }
 0x475   :  { %962 = dma.hbm_to_vmem [thread:$0]  %s950_s22, 16, %s4737_s29, [#allocation3] }
 0x476   :  { %s965_s18 = scalar_select %p964_p6, %s4747_s10, 0 }
 0x477   :  { %p1876_p7 = scmp.lt.s32.totalorder %s4747_s10, 2047  ;;  %p983_p0 = scmp.gt.s32.totalorder %s4750_s12, 0 }
 0x478   :  { %p1883_p3 = scmp.lt.s32.totalorder %s4750_s12, 2047  ;;  %s4777_s4 = sld [smem:[#allocation5 + $0x203]] }
 0x479   :  { %s5177_s18 = smov (!%p1876_p7, %s965_s18), 2047 }
 0x47a   :  { %s984_s23 = scalar_select %p983_p0, %s4750_s12, 0 }
 0x47b   :  { %s1881_s30 = sshll.u32 %s5177_s18, 4 }
 0x47c   :  { %s969_s5 = scalar_lea.hbm %s5048_s1, %s1881_s30 }
 0x47d   :  { %s3282_s15 = scalar_lea.hbm %s969_s5, 16  ;;  %p3285_p6 = scmp.lt.s32.totalorder %s969_s5, %s5048_s1 }
 0x47e   :  { %p3283_p12 = scmp.ne.s32.totalorder %s969_s5, %s3282_s15  ;;  %p3286_p1 = scmp.lt.s32.totalorder %s3719_s3, %s3282_s15 }
 0x480   :  { %p3287_p4 = por %p3286_p1, %p3285_p6 }
 0x482   :  { %p3288_p2 = pnand %p3287_p4, %p3283_p12 }
 0x484   :  { %3291 = shalt.err (!%p3288_p2)  }
 0x485   :  { %s3292_s8 = scalar_lea.vmem %s4752_s14, 16  ;;  %p3297_p13 = scmp.lt.s32.totalorder %s4752_s14, %s3702_s16 }
 0x486   :  { %p3293_p9 = scmp.ne.s32.totalorder %s4752_s14, %s3292_s8  ;;  %p3298_p8 = scmp.lt.s32.totalorder %s3728_s7, %s3292_s8 }
 0x488   :  { %p3299_p10 = por %p3298_p8, %p3297_p13 }
 0x48a   :  { %p3300_p5 = pnand %p3299_p10, %p3293_p9 }
 0x48c   :  { %3303 = shalt.err (!%p3300_p5)  }
 0x48d   :  { %981 = dma.hbm_to_vmem [thread:$0]  %s969_s5, 16, %s4752_s14, [#allocation3] }
 0x48e   :  { %s5179_s23 = smov (!%p1883_p3, %s984_s23), 2047  ;;  %s3669_s24 = smov [#allocation2 + $0x34]  }
 0x48f   :  { %s1016_s10 = sshll.u32 %s3669_s24, 4  ;;  %s4794_s6 = sld [smem:[#allocation5 + $0x283]]  ;;  %s4796_s10 = int_to_ptr.vmem [resolvable:$true] %s1016_s10 }
 0x490   :  { %s1888_s21 = sshll.u32 %s5179_s23, 4  ;;  %p1002_p11 = scmp.gt.s32.totalorder %s4777_s4, 0 }
 0x491   :  { %s988_s0 = scalar_lea.hbm %s5048_s1, %s1888_s21 }
 0x492   :  { %s3304_s22 = scalar_lea.hbm %s988_s0, 16  ;;  %p3307_p0 = scmp.lt.s32.totalorder %s988_s0, %s5048_s1 }
 0x493   :  { %p3305_p7 = scmp.ne.s32.totalorder %s988_s0, %s3304_s22  ;;  %p3308_p12 = scmp.lt.s32.totalorder %s3719_s3, %s3304_s22 }
 0x495   :  { %p3309_p3 = por %p3308_p12, %p3307_p0 }
 0x497   :  { %p3310_p6 = pnand %p3309_p3, %p3305_p7 }
 0x499   :  { %3313 = shalt.err (!%p3310_p6)  }
 0x49a   :  { %s3314_s14 = scalar_lea.vmem %s4774_s20, 16  ;;  %p3319_p4 = scmp.lt.s32.totalorder %s4774_s20, %s3702_s16 }
 0x49b   :  { %p3315_p1 = scmp.ne.s32.totalorder %s4774_s20, %s3314_s14  ;;  %p3320_p2 = scmp.lt.s32.totalorder %s3728_s7, %s3314_s14 }
 0x49d   :  { %p3321_p9 = por %p3320_p2, %p3319_p4 }
 0x49f   :  { %p3322_p13 = pnand %p3321_p9, %p3315_p1 }
 0x4a1   :  { %3325 = shalt.err (!%p3322_p13)  }
 0x4a2   :  { %1000 = dma.hbm_to_vmem [thread:$0]  %s988_s0, 16, %s4774_s20, [#allocation3] }
 0x4a3   :  { %s1003_s12 = scalar_select %p1002_p11, %s4777_s4, 0 }
 0x4a4   :  { %p1890_p8 = scmp.lt.s32.totalorder %s4777_s4, 2047  ;;  %p1021_p10 = scmp.gt.s32.totalorder %s4794_s6, 0 }
 0x4a5   :  { %p1897_p5 = scmp.lt.s32.totalorder %s4794_s6, 2047  ;;  %s3670_s18 = smov [#allocation2 + $0x35]  }
 0x4a6   :  { %s5181_s12 = smov (!%p1890_p8, %s1003_s12), 2047  ;;  %s1035_s23 = sshll.u32 %s3670_s18, 4  ;;  %s4822_s23 = int_to_ptr.vmem [resolvable:$true] %s1035_s23 }
 0x4a7   :  { %s1022_s13 = scalar_select %p1021_p10, %s4794_s6, 0 }
 0x4a8   :  { %s1895_s11 = sshll.u32 %s5181_s12, 4 }
 0x4a9   :  { %s1007_s28 = scalar_lea.hbm %s5048_s1, %s1895_s11 }
 0x4aa   :  { %s3326_s5 = scalar_lea.hbm %s1007_s28, 16  ;;  %p3329_p11 = scmp.lt.s32.totalorder %s1007_s28, %s5048_s1 }
 0x4ab   :  { %p3327_p7 = scmp.ne.s32.totalorder %s1007_s28, %s3326_s5  ;;  %p3330_p0 = scmp.lt.s32.totalorder %s3719_s3, %s3326_s5 }
 0x4ad   :  { %p3331_p12 = por %p3330_p0, %p3329_p11 }
 0x4af   :  { %p3332_p3 = pnand %p3331_p12, %p3327_p7 }
 0x4b1   :  { %3335 = shalt.err (!%p3332_p3)  }
 0x4b2   :  { %s3336_s4 = scalar_lea.vmem %s4796_s10, 16  ;;  %p3341_p1 = scmp.lt.s32.totalorder %s4796_s10, %s3702_s16 }
 0x4b3   :  { %p3337_p6 = scmp.ne.s32.totalorder %s4796_s10, %s3336_s4  ;;  %p3342_p4 = scmp.lt.s32.totalorder %s3728_s7, %s3336_s4 }
 0x4b5   :  { %p3343_p2 = por %p3342_p4, %p3341_p1 }
 0x4b7   :  { %p3344_p9 = pnand %p3343_p2, %p3337_p6 }
 0x4b9   :  { %3347 = shalt.err (!%p3344_p9)  }
 0x4ba   :  { %1019 = dma.hbm_to_vmem [thread:$0]  %s1007_s28, 16, %s4796_s10, [#allocation3] }
 0x4bb   :  { %s5183_s13 = smov (!%p1897_p5, %s1022_s13), 2047  ;;  %s4836_s9 = sld [smem:[#allocation5 + $0x303]] }
 0x4bc   :  { %s1902_s29 = sshll.u32 %s5183_s13, 4  ;;  %s3671_s8 = smov [#allocation2 + $0x36]  }
 0x4bd   :  { %s1054_s24 = sshll.u32 %s3671_s8, 4  ;;  %s1026_s17 = scalar_lea.hbm %s5048_s1, %s1902_s29  ;;  %s4841_s24 = int_to_ptr.vmem [resolvable:$true] %s1054_s24 }
 0x4be   :  { %s3348_s0 = scalar_lea.hbm %s1026_s17, 16  ;;  %p3351_p8 = scmp.lt.s32.totalorder %s1026_s17, %s5048_s1 }
 0x4bf   :  { %p3349_p13 = scmp.ne.s32.totalorder %s1026_s17, %s3348_s0  ;;  %p3352_p10 = scmp.lt.s32.totalorder %s3719_s3, %s3348_s0 }
 0x4c1   :  { %p3353_p7 = por %p3352_p10, %p3351_p8 }
 0x4c3   :  { %p3354_p5 = pnand %p3353_p7, %p3349_p13 }
 0x4c5   :  { %3357 = shalt.err (!%p3354_p5)  }
 0x4c6   :  { %s3358_s10 = scalar_lea.vmem %s4822_s23, 16  ;;  %p3363_p0 = scmp.lt.s32.totalorder %s4822_s23, %s3702_s16 }
 0x4c7   :  { %p3359_p11 = scmp.ne.s32.totalorder %s4822_s23, %s3358_s10  ;;  %p3364_p12 = scmp.lt.s32.totalorder %s3728_s7, %s3358_s10 }
 0x4c9   :  { %p3365_p3 = por %p3364_p12, %p3363_p0 }
 0x4cb   :  { %p3366_p6 = pnand %p3365_p3, %p3359_p11 }
 0x4cd   :  { %3369 = shalt.err (!%p3366_p6)  }
 0x4ce   :  { %1038 = dma.hbm_to_vmem [thread:$0]  %s1026_s17, 16, %s4822_s23, [#allocation3] }
 0x4cf   :  { %s4853_s6 = sld [smem:[#allocation5 + $0x383]]  ;;  %s3672_s27 = smov [#allocation2 + $0x37]  }
 0x4d0   :  { %s1073_s14 = sshll.u32 %s3672_s27, 4  ;;  %s4855_s12 = sld [smem:[#allocation5 + $0x403]]  ;;  %s4859_s14 = int_to_ptr.vmem [resolvable:$true] %s1073_s14 }
 0x4d1   :  { %p1040_p1 = scmp.gt.s32.totalorder %s4836_s9, 0  ;;  %p1904_p4 = scmp.lt.s32.totalorder %s4836_s9, 2047 }
 0x4d2   :  { %s3673_s13 = smov [#allocation2 + $0x38]   ;;  %s4862_s18 = sld [smem:[#allocation5 + $0x483]] }
 0x4d3   :  { %s5185_s9 = smov (!%p1040_p1, %s4836_s9), 0  ;;  %s1092_s11 = sshll.u32 %s3673_s13, 4  ;;  %s4891_s11 = int_to_ptr.vmem [resolvable:$true] %s1092_s11 }
 0x4d4   :  { %s5187_s9 = smov (!%p1904_p4, %s5185_s9), 2047 }
 0x4d5   :  { %p1059_p2 = scmp.gt.s32.totalorder %s4853_s6, 0  ;;  %p1911_p9 = scmp.lt.s32.totalorder %s4853_s6, 2047 }
 0x4d6   :  { %s1909_s23 = sshll.u32 %s5187_s9, 4  ;;  %p1078_p13 = scmp.gt.s32.totalorder %s4855_s12, 0 }
 0x4d7   :  { %s1045_s28 = scalar_lea.hbm %s5048_s1, %s1909_s23  ;;  %p1918_p8 = scmp.lt.s32.totalorder %s4855_s12, 2047 }
 0x4d8   :  { %s3370_s5 = scalar_lea.hbm %s1045_s28, 16  ;;  %p3373_p7 = scmp.lt.s32.totalorder %s1045_s28, %s5048_s1 }
 0x4d9   :  { %p3371_p10 = scmp.ne.s32.totalorder %s1045_s28, %s3370_s5  ;;  %p3374_p5 = scmp.lt.s32.totalorder %s3719_s3, %s3370_s5 }
 0x4db   :  { %p3375_p11 = por %p3374_p5, %p3373_p7 }
 0x4dd   :  { %p3376_p0 = pnand %p3375_p11, %p3371_p10 }
 0x4df   :  { %3379 = shalt.err (!%p3376_p0)  }
 0x4e0   :  { %s3380_s4 = scalar_lea.vmem %s4841_s24, 16  ;;  %p3385_p3 = scmp.lt.s32.totalorder %s4841_s24, %s3702_s16 }
 0x4e1   :  { %p3381_p12 = scmp.ne.s32.totalorder %s4841_s24, %s3380_s4  ;;  %p3386_p6 = scmp.lt.s32.totalorder %s3728_s7, %s3380_s4 }
 0x4e3   :  { %p3387_p1 = por %p3386_p6, %p3385_p3 }
 0x4e5   :  { %p3388_p4 = pnand %p3387_p1, %p3381_p12 }
 0x4e7   :  { %3391 = shalt.err (!%p3388_p4)  }
 0x4e8   :  { %1057 = dma.hbm_to_vmem [thread:$0]  %s1045_s28, 16, %s4841_s24, [#allocation3] }
 0x4e9   :  { %s1060_s9 = scalar_select %p1059_p2, %s4853_s6, 0 }
 0x4ea   :  { %s1079_s29 = scalar_select %p1078_p13, %s4855_s12, 0 }
 0x4eb   :  { %s5189_s9 = smov (!%p1911_p9, %s1060_s9), 2047 }
 0x4ec   :  { %s5191_s29 = smov (!%p1918_p8, %s1079_s29), 2047  ;;  %s1916_s8 = sshll.u32 %s5189_s9, 4 }
 0x4ed   :  { %s1064_s17 = scalar_lea.hbm %s5048_s1, %s1916_s8  ;;  %s1923_s0 = sshll.u32 %s5191_s29, 4 }
 0x4ee   :  { %s3392_s22 = scalar_lea.hbm %s1064_s17, 16  ;;  %p3395_p2 = scmp.lt.s32.totalorder %s1064_s17, %s5048_s1 }
 0x4ef   :  { %p3393_p10 = scmp.ne.s32.totalorder %s1064_s17, %s3392_s22  ;;  %p3396_p7 = scmp.lt.s32.totalorder %s3719_s3, %s3392_s22 }
 0x4f1   :  { %p3397_p13 = por %p3396_p7, %p3395_p2 }
 0x4f3   :  { %p3398_p5 = pnand %p3397_p13, %p3393_p10 }
 0x4f5   :  { %3401 = shalt.err (!%p3398_p5)  }
 0x4f6   :  { %s3402_s10 = scalar_lea.vmem %s4859_s14, 16  ;;  %p3407_p8 = scmp.lt.s32.totalorder %s4859_s14, %s3702_s16 }
 0x4f7   :  { %p3403_p9 = scmp.ne.s32.totalorder %s4859_s14, %s3402_s10  ;;  %p3408_p11 = scmp.lt.s32.totalorder %s3728_s7, %s3402_s10 }
 0x4f9   :  { %p3409_p0 = por %p3408_p11, %p3407_p8 }
 0x4fb   :  { %p3410_p12 = pnand %p3409_p0, %p3403_p9 }
 0x4fd   :  { %3413 = shalt.err (!%p3410_p12)  }
 0x4fe   :  { %1076 = dma.hbm_to_vmem [thread:$0]  %s1064_s17, 16, %s4859_s14, [#allocation3] }
 0x4ff   :  { %s1083_s12 = scalar_lea.hbm %s5048_s1, %s1923_s0  ;;  %p1097_p3 = scmp.gt.s32.totalorder %s4862_s18, 0 }
 0x500   :  { %s3414_s13 = scalar_lea.hbm %s1083_s12, 16  ;;  %p3417_p1 = scmp.lt.s32.totalorder %s1083_s12, %s5048_s1 }
 0x501   :  { %p3415_p6 = scmp.ne.s32.totalorder %s1083_s12, %s3414_s13  ;;  %p3418_p4 = scmp.lt.s32.totalorder %s3719_s3, %s3414_s13 }
 0x503   :  { %p3419_p10 = por %p3418_p4, %p3417_p1 }
 0x505   :  { %p3420_p2 = pnand %p3419_p10, %p3415_p6 }
 0x507   :  { %3423 = shalt.err (!%p3420_p2)  }
 0x508   :  { %s3424_s14 = scalar_lea.vmem %s4891_s11, 16  ;;  %p3429_p13 = scmp.lt.s32.totalorder %s4891_s11, %s3702_s16 }
 0x509   :  { %p3425_p7 = scmp.ne.s32.totalorder %s4891_s11, %s3424_s14  ;;  %p3430_p5 = scmp.lt.s32.totalorder %s3728_s7, %s3424_s14 }
 0x50b   :  { %p3431_p9 = por %p3430_p5, %p3429_p13 }
 0x50d   :  { %p3432_p8 = pnand %p3431_p9, %p3425_p7 }
 0x50f   :  { %3435 = shalt.err (!%p3432_p8)  }
 0x510   :  { %1095 = dma.hbm_to_vmem [thread:$0]  %s1083_s12, 16, %s4891_s11, [#allocation3] }
 0x511   :  { %s1098_s25 = scalar_select %p1097_p3, %s4862_s18, 0 }
 0x512   :  { %p1925_p11 = scmp.lt.s32.totalorder %s4862_s18, 2047  ;;  %s3674_s28 = smov [#allocation2 + $0x39]  }
 0x513   :  { %s1111_s5 = sshll.u32 %s3674_s28, 4  ;;  %s4924_s15 = sld [smem:[#allocation5 + $0x503]]  ;;  %s1112_s5 = int_to_ptr.vmem [resolvable:$true] %s1111_s5 }
 0x514   :  { %s5193_s25 = smov (!%p1925_p11, %s1098_s25), 2047  ;;  %s3675_s4 = smov [#allocation2 + $0x3a]  }
 0x515   :  { %s1930_s20 = sshll.u32 %s5193_s25, 4  ;;  %s1130_s9 = sshll.u32 %s3675_s4, 4  ;;  %s4929_s9 = int_to_ptr.vmem [resolvable:$true] %s1130_s9 }
 0x516   :  { %s1102_s21 = scalar_lea.hbm %s5048_s1, %s1930_s20 }
 0x517   :  { %s3436_s11 = scalar_lea.hbm %s1102_s21, 16  ;;  %p3439_p12 = scmp.lt.s32.totalorder %s1102_s21, %s5048_s1 }
 0x518   :  { %p3437_p0 = scmp.ne.s32.totalorder %s1102_s21, %s3436_s11  ;;  %p3440_p3 = scmp.lt.s32.totalorder %s3719_s3, %s3436_s11 }
 0x51a   :  { %p3441_p6 = por %p3440_p3, %p3439_p12 }
 0x51c   :  { %p3442_p1 = pnand %p3441_p6, %p3437_p0 }
 0x51e   :  { %3445 = shalt.err (!%p3442_p1)  }
 0x51f   :  { %s3446_s18 = scalar_lea.vmem %s1112_s5, 16  ;;  %p3451_p10 = scmp.lt.s32.totalorder %s1112_s5, %s3702_s16 }
 0x520   :  { %p3447_p4 = scmp.ne.s32.totalorder %s1112_s5, %s3446_s18  ;;  %p3452_p2 = scmp.lt.s32.totalorder %s3728_s7, %s3446_s18 }
 0x522   :  { %p3453_p7 = por %p3452_p2, %p3451_p10 }
 0x524   :  { %p3454_p13 = pnand %p3453_p7, %p3447_p4 }
 0x526   :  { %3457 = shalt.err (!%p3454_p13)  }
 0x527   :  { %1114 = dma.hbm_to_vmem [thread:$0]  %s1102_s21, 16, %s1112_s5, [#allocation3] }
 0x528   :  { %p1116_p5 = scmp.gt.s32.totalorder %s4924_s15, 0  ;;  %p1932_p9 = scmp.lt.s32.totalorder %s4924_s15, 2047 }
 0x529   :  { %s4939_s0 = sld [smem:[#allocation5 + $0x583]]  ;;  %s3676_s22 = smov [#allocation2 + $0x3b]  }
 0x52a   :  { %s5195_s15 = smov (!%p1116_p5, %s4924_s15), 0  ;;  %s1149_s26 = sshll.u32 %s3676_s22, 4  ;;  %s4944_s26 = int_to_ptr.vmem [resolvable:$true] %s1149_s26 }
 0x52b   :  { %s4942_s24 = sld [smem:[#allocation5 + $0x603]]  ;;  %s5197_s15 = smov (!%p1932_p9, %s5195_s15), 2047 }
 0x52c   :  { %s1937_s10 = sshll.u32 %s5197_s15, 4  ;;  %s3677_s6 = smov [#allocation2 + $0x3c]  }
 0x52d   :  { %s1168_s27 = sshll.u32 %s3677_s6, 4  ;;  %s1121_s23 = scalar_lea.hbm %s5048_s1, %s1937_s10  ;;  %s4966_s27 = int_to_ptr.vmem [resolvable:$true] %s1168_s27 }
 0x52e   :  { %s3458_s30 = scalar_lea.hbm %s1121_s23, 16  ;;  %p3461_p0 = scmp.lt.s32.totalorder %s1121_s23, %s5048_s1 }
 0x52f   :  { %p1135_p8 = scmp.gt.s32.totalorder %s4939_s0, 0  ;;  %p3459_p11 = scmp.ne.s32.totalorder %s1121_s23, %s3458_s30 }
 0x530   :  { %p3462_p12 = scmp.lt.s32.totalorder %s3719_s3, %s3458_s30 }
 0x532   :  { %p3463_p3 = por %p3462_p12, %p3461_p0 }
 0x534   :  { %p3464_p6 = pnand %p3463_p3, %p3459_p11 }
 0x536   :  { %3467 = shalt.err (!%p3464_p6)  }
 0x537   :  { %s3468_s28 = scalar_lea.vmem %s4929_s9, 16  ;;  %p3473_p4 = scmp.lt.s32.totalorder %s4929_s9, %s3702_s16 }
 0x538   :  { %p3469_p1 = scmp.ne.s32.totalorder %s4929_s9, %s3468_s28  ;;  %p3474_p10 = scmp.lt.s32.totalorder %s3728_s7, %s3468_s28 }
 0x53a   :  { %p3475_p2 = por %p3474_p10, %p3473_p4 }
 0x53c   :  { %p3476_p7 = pnand %p3475_p2, %p3469_p1 }
 0x53e   :  { %3479 = shalt.err (!%p3476_p7)  }
 0x53f   :  { %1133 = dma.hbm_to_vmem [thread:$0]  %s1121_s23, 16, %s4929_s9, [#allocation3] }
 0x540   :  { %s1136_s5 = scalar_select %p1135_p8, %s4939_s0, 0 }
 0x541   :  { %p1939_p13 = scmp.lt.s32.totalorder %s4939_s0, 2047  ;;  %p1154_p5 = scmp.gt.s32.totalorder %s4942_s24, 0 }
 0x542   :  { %p1946_p9 = scmp.lt.s32.totalorder %s4942_s24, 2047  ;;  %s4969_s4 = sld [smem:[#allocation5 + $0x683]] }
 0x543   :  { %s5199_s5 = smov (!%p1939_p13, %s1136_s5), 2047 }
 0x544   :  { %s1155_s15 = scalar_select %p1154_p5, %s4942_s24, 0 }
 0x545   :  { %s1944_s20 = sshll.u32 %s5199_s5, 4 }
 0x546   :  { %s1140_s21 = scalar_lea.hbm %s5048_s1, %s1944_s20 }
 0x547   :  { %s3480_s11 = scalar_lea.hbm %s1140_s21, 16  ;;  %p3483_p8 = scmp.lt.s32.totalorder %s1140_s21, %s5048_s1 }
 0x548   :  { %p3481_p11 = scmp.ne.s32.totalorder %s1140_s21, %s3480_s11  ;;  %p3484_p0 = scmp.lt.s32.totalorder %s3719_s3, %s3480_s11 }
 0x54a   :  { %p3485_p12 = por %p3484_p0, %p3483_p8 }
 0x54c   :  { %p3486_p3 = pnand %p3485_p12, %p3481_p11 }
 0x54e   :  { %3489 = shalt.err (!%p3486_p3)  }
 0x54f   :  { %s3490_s17 = scalar_lea.vmem %s4944_s26, 16  ;;  %p3495_p1 = scmp.lt.s32.totalorder %s4944_s26, %s3702_s16 }
 0x550   :  { %p3491_p6 = scmp.ne.s32.totalorder %s4944_s26, %s3490_s17  ;;  %p3496_p4 = scmp.lt.s32.totalorder %s3728_s7, %s3490_s17 }
 0x552   :  { %p3497_p10 = por %p3496_p4, %p3495_p1 }
 0x554   :  { %p3498_p2 = pnand %p3497_p10, %p3491_p6 }
 0x556   :  { %3501 = shalt.err (!%p3498_p2)  }
 0x557   :  { %1152 = dma.hbm_to_vmem [thread:$0]  %s1140_s21, 16, %s4944_s26, [#allocation3] }
 0x558   :  { %s5201_s15 = smov (!%p1946_p9, %s1155_s15), 2047  ;;  %s3678_s18 = smov [#allocation2 + $0x3d]  }
 0x559   :  { %s1187_s0 = sshll.u32 %s3678_s18, 4  ;;  %s4986_s22 = sld [smem:[#allocation5 + $0x703]]  ;;  %s4988_s0 = int_to_ptr.vmem [resolvable:$true] %s1187_s0 }
 0x55a   :  { %s1951_s10 = sshll.u32 %s5201_s15, 4  ;;  %p1173_p7 = scmp.gt.s32.totalorder %s4969_s4, 0 }
 0x55b   :  { %s1159_s13 = scalar_lea.hbm %s5048_s1, %s1951_s10 }
 0x55c   :  { %s3502_s23 = scalar_lea.hbm %s1159_s13, 16  ;;  %p3505_p5 = scmp.lt.s32.totalorder %s1159_s13, %s5048_s1 }
 0x55d   :  { %p3503_p13 = scmp.ne.s32.totalorder %s1159_s13, %s3502_s23  ;;  %p3506_p11 = scmp.lt.s32.totalorder %s3719_s3, %s3502_s23 }
 0x55f   :  { %p3507_p9 = por %p3506_p11, %p3505_p5 }
 0x561   :  { %p3508_p8 = pnand %p3507_p9, %p3503_p13 }
 0x563   :  { %3511 = shalt.err (!%p3508_p8)  }
 0x564   :  { %s3512_s26 = scalar_lea.vmem %s4966_s27, 16  ;;  %p3517_p12 = scmp.lt.s32.totalorder %s4966_s27, %s3702_s16 }
 0x565   :  { %p3513_p0 = scmp.ne.s32.totalorder %s4966_s27, %s3512_s26  ;;  %p3518_p3 = scmp.lt.s32.totalorder %s3728_s7, %s3512_s26 }
 0x567   :  { %p3519_p6 = por %p3518_p3, %p3517_p12 }
 0x569   :  { %p3520_p1 = pnand %p3519_p6, %p3513_p0 }
 0x56b   :  { %3523 = shalt.err (!%p3520_p1)  }
 0x56c   :  { %1171 = dma.hbm_to_vmem [thread:$0]  %s1159_s13, 16, %s4966_s27, [#allocation3] }
 0x56d   :  { %s1174_s24 = scalar_select %p1173_p7, %s4969_s4, 0 }
 0x56e   :  { %p1953_p4 = scmp.lt.s32.totalorder %s4969_s4, 2047  ;;  %p1192_p10 = scmp.gt.s32.totalorder %s4986_s22, 0 }
 0x56f   :  { %p1960_p2 = scmp.lt.s32.totalorder %s4986_s22, 2047  ;;  %s3679_s29 = smov [#allocation2 + $0x3e]  }
 0x570   :  { %s5203_s24 = smov (!%p1953_p4, %s1174_s24), 2047  ;;  %s1206_s8 = sshll.u32 %s3679_s29, 4  ;;  %s1207_s8 = int_to_ptr.vmem [resolvable:$true] %s1206_s8 }
 0x571   :  { %s1193_s25 = scalar_select %p1192_p10, %s4986_s22, 0 }
 0x572   :  { %s1958_s28 = sshll.u32 %s5203_s24, 4 }
 0x573   :  { %s1178_s20 = scalar_lea.hbm %s5048_s1, %s1958_s28 }
 0x574   :  { %s3524_s21 = scalar_lea.hbm %s1178_s20, 16  ;;  %p3527_p5 = scmp.lt.s32.totalorder %s1178_s20, %s5048_s1 }
 0x575   :  { %p3525_p13 = scmp.ne.s32.totalorder %s1178_s20, %s3524_s21  ;;  %p3528_p11 = scmp.lt.s32.totalorder %s3719_s3, %s3524_s21 }
 0x577   :  { %p3529_p7 = por %p3528_p11, %p3527_p5 }
 0x579   :  { %p3530_p9 = pnand %p3529_p7, %p3525_p13 }
 0x57b   :  { %3533 = shalt.err (!%p3530_p9)  }
 0x57c   :  { %s3534_s27 = scalar_lea.vmem %s4988_s0, 16  ;;  %p3539_p0 = scmp.lt.s32.totalorder %s4988_s0, %s3702_s16 }
 0x57d   :  { %p3535_p8 = scmp.ne.s32.totalorder %s4988_s0, %s3534_s27  ;;  %p3540_p12 = scmp.lt.s32.totalorder %s3728_s7, %s3534_s27 }
 0x57f   :  { %p3541_p3 = por %p3540_p12, %p3539_p0 }
 0x581   :  { %p3542_p6 = pnand %p3541_p3, %p3535_p8 }
 0x583   :  { %3545 = shalt.err (!%p3542_p6)  }
 0x584   :  { %1190 = dma.hbm_to_vmem [thread:$0]  %s1178_s20, 16, %s4988_s0, [#allocation3] }
 0x585   :  { %s5205_s25 = smov (!%p1960_p2, %s1193_s25), 2047  ;;  %s1966_s4 = sld [smem:[#allocation5 + $0x783]] }
 0x586   :  { %s1965_s9 = sshll.u32 %s5205_s25, 4 }
 0x587   :  { %s1197_s10 = scalar_lea.hbm %s5048_s1, %s1965_s9 }
 0x588   :  { %s3546_s6 = scalar_lea.hbm %s1197_s10, 16  ;;  %p3549_p4 = scmp.lt.s32.totalorder %s1197_s10, %s5048_s1 }
 0x589   :  { %p3547_p1 = scmp.ne.s32.totalorder %s1197_s10, %s3546_s6  ;;  %p3550_p10 = scmp.lt.s32.totalorder %s3719_s3, %s3546_s6 }
 0x58b   :  { %p3551_p13 = por %p3550_p10, %p3549_p4 }
 0x58d   :  { %p3552_p5 = pnand %p3551_p13, %p3547_p1 }
 0x58f   :  { %3555 = shalt.err (!%p3552_p5)  }
 0x590   :  { %s3556_s0 = scalar_lea.vmem %s1207_s8, 16  ;;  %p3561_p11 = scmp.lt.s32.totalorder %s1207_s8, %s3702_s16 }
 0x591   :  { %p3557_p2 = scmp.ne.s32.totalorder %s1207_s8, %s3556_s0  ;;  %p3562_p7 = scmp.lt.s32.totalorder %s3728_s7, %s3556_s0 }
 0x593   :  { %p3563_p9 = por %p3562_p7, %p3561_p11 }
 0x595   :  { %p3564_p8 = pnand %p3563_p9, %p3557_p2 }
 0x597   :  { %3567 = shalt.err (!%p3564_p8)  }
 0x598   :  { %1209 = dma.hbm_to_vmem [thread:$0]  %s1197_s10, 16, %s1207_s8, [#allocation3] }
 0x599   :  { %p1211_p0 = scmp.gt.s32.totalorder %s1966_s4, 0  ;;  %p1967_p12 = scmp.lt.s32.totalorder %s1966_s4, 2047 }
 0x59a   :  { %s3680_s22 = smov [#allocation2 + $0x3f]  }
 0x59b   :  { %s1225_s23 = sshll.u32 %s3680_s22, 4  ;;  %s5207_s4 = smov (!%p1211_p0, %s1966_s4), 0  ;;  %s1226_s23 = int_to_ptr.vmem [resolvable:$true] %s1225_s23 }
 0x59c   :  { %s5209_s4 = smov (!%p1967_p12, %s5207_s4), 2047 }
 0x59d   :  { %s1972_s30 = sshll.u32 %s5209_s4, 4 }
 0x59e   :  { %s1216_s24 = scalar_lea.hbm %s5048_s1, %s1972_s30 }
 0x59f   :  { %s3568_s25 = scalar_lea.hbm %s1216_s24, 16  ;;  %p3571_p6 = scmp.lt.s32.totalorder %s1216_s24, %s5048_s1 }
 0x5a0   :  { %p3569_p3 = scmp.ne.s32.totalorder %s1216_s24, %s3568_s25  ;;  %p3572_p1 = scmp.lt.s32.totalorder %s3719_s3, %s3568_s25 }
 0x5a2   :  { %p3573_p4 = por %p3572_p1, %p3571_p6 }
 0x5a4   :  { %p3574_p10 = pnand %p3573_p4, %p3569_p3 }
 0x5a6   :  { %3577 = shalt.err (!%p3574_p10)  }
 0x5a7   :  { %s3578_s15 = scalar_lea.vmem %s1226_s23, 16  ;;  %p3583_p5 = scmp.lt.s32.totalorder %s1226_s23, %s3702_s16 }
 0x5a8   :  { %p3579_p13 = scmp.ne.s32.totalorder %s1226_s23, %s3578_s15  ;;  %p3584_p2 = scmp.lt.s32.totalorder %s3728_s7, %s3578_s15 }
 0x5aa   :  { %p3585_p11 = por %p3584_p2, %p3583_p5 }
 0x5ac   :  { %p3586_p7 = pnand %p3585_p11, %p3579_p13 }
 0x5ae   :  { %3589 = shalt.err (!%p3586_p7)  }
 0x5af   :  { %1228 = dma.hbm_to_vmem [thread:$0]  %s1216_s24, 16, %s1226_s23, [#allocation3] }
 0x5b0   :  { %3612 = dma.done.wait [#allocation3], 1024 }
 0x5b1   :  { %3613 = vsyncadd [#allocation3], 4294966272  ;;  %v1358_v0 = vld [vmem:[#allocation2] sm:$0xff]  ;;  %v1360_v1 = vld [vmem:[#allocation2 + $0x10] sm:$0xff]  ;;  %s3681_s1 = smov [#allocation6]  }
 0x5b2   :  { %v1364_v2 = vld [vmem:[#allocation2 + $0x20] sm:$0xff]  ;;  %v1362_v3 = vadd.f32 %v1360_v1, %v1358_v0  ;;  %v1359_v4 = vld [vmem:[#allocation2 + $0x8] sm:$0xff]  ;;  %v1361_v5 = vld [vmem:[#allocation2 + $0x18] sm:$0xff]  ;;  %s1381_s16 = sshll.u32 %s3681_s1, 4  ;;  %s1382_s16 = int_to_ptr.vmem [resolvable:$true] %s1381_s16 }
 0x5b3   :  { %v1368_v6 = vld [vmem:[#allocation2 + $0x30] sm:$0xff]  ;;  %v1363_v7 = vadd.f32 %v1361_v5, %v1359_v4  ;;  %v1365_v8 = vld [vmem:[#allocation2 + $0x28] sm:$0xff]  ;;  %v1369_v10 = vld [vmem:[#allocation2 + $0x38] sm:$0xff]  ;;  %s3590_s3 = scalar_lea.vmem %s1382_s16, 256  ;;  %p3595_p8 = scmp.lt.s32.totalorder %s1382_s16, %s1382_s16 }
 0x5b4   :  { %v1366_v9 = vadd.f32 %v1364_v2, %v1362_v3  ;;  %p3591_p9 = scmp.ne.s32.totalorder %s1382_s16, %s3590_s3  ;;  %p3596_p0 = scmp.lt.s32.totalorder %s3590_s3, %s3590_s3 }
 0x5b5   :  { %v1367_v11 = vadd.f32 %v1365_v8, %v1363_v7 }
 0x5b6   :  { %v1370_v12 = vadd.f32 %v1368_v6, %v1366_v9  ;;  %p3597_p12 = por %p3596_p0, %p3595_p8 }
 0x5b7   :  { %v1371_v13 = vadd.f32 %v1369_v10, %v1367_v11 }
 0x5b8   :  { %v1372_v14 = vmul.f32 0.25, %v1370_v12  ;;  %p3598_p3 = pnand %p3597_p12, %p3591_p9 }
 0x5b9   :  { %v1373_v15 = vmul.f32 0.25, %v1371_v13 }
 0x5ba   :  { %1374 = vst [vmem:[#allocation6] sm:$0xff] %v1372_v14 }
 0x5bb   :  { %1375 = vst [vmem:[#allocation6 + $0x8] sm:$0xff] %v1373_v15 }
 0x5bc   :  { %3601 = shalt.err (!%p3598_p3)
}
 0x5bd   :  { %s3682_s7 = smov 128   ;;  %s3683_s20 = smov 8  }
 0x5be   :  { %1387 = dma.vmem_to_hbm [thread:$0]  %s1382_s16, 256, %s5049_s2, [#allocation7], %s3682_s7, %s3682_s7, %s3683_s20  }
 0x5bf   :  { %3614 = dma.done.wait [#allocation7], 256  }
 0x5c0   :  { %3615 = vsyncadd [#allocation7], 4294967040 }
 0x5c1   :  { %1391 = vsyncpa [#allocation7], 1 }
 0x5c2   :  { %1392 = vsyncmov [#allocation3] }
 0x5c5   :  { %s1393_s21 = vpop.sfrf %1392 }
 0x5c6   :  { %p1973_p6 = scmp.ne.s32.totalorder %s1393_s21, 0 }
 0x5c8   :  { %1397 = shalt.err (%p1973_p6)  }

</bundles_post_ra>
